<compile_context>
chip_gen: v6e
topology: v6e:2x2x1
jax: 0.10.0
libtpu: 0.0.40
codegen_flags: <defaults>
</compile_context>

<pallas_src>
import functools

import jax
import jax.numpy as jnp
from jax import lax
from jax.experimental import pallas as pl
from jax.experimental.pallas import tpu as pltpu


def _basic_block_kernel(xpad_ref, w1_ref, s1_ref, b1_ref, w2_ref, s2_ref, b2_ref,
                        out_ref, mid_ref, *, H, W, Cin, Cout):
    # xpad_ref: (1, H+2, W+2, Cin) bf16  zero-padded input (one batch element)
    # w1_ref  : (9*Cin, Cout)      bf16  conv1 weights, (kh, kw, cin) tap order
    # w2_ref  : (9*Cout, Cout)     bf16  conv2 weights, (kh, kw, c) tap order
    # s*/b*   : (1, Cout)          f32   folded BatchNorm scale / bias
    # out_ref : (1, H, W, Cout)    f32
    # mid_ref : (H+2, W+2, Cout)   bf16  padded scratch for relu(bn1(conv1(x)))
    x = xpad_ref[0]                                          # (H+2, W+2, Cin)

    # ---- conv1 -> bn1 -> relu : one im2col matmul over the whole image ----
    cols1 = [x[kh:kh + H, kw:kw + W, :] for kh in range(3) for kw in range(3)]
    a1 = jnp.concatenate(cols1, axis=-1).reshape(H * W, 9 * Cin)       # bf16
    acc1 = jnp.dot(a1, w1_ref[...], preferred_element_type=jnp.float32)
    y1 = jnp.maximum(acc1 * s1_ref[...] + b1_ref[...], 0.0)            # (H*W, Cout) f32

    # ---- stage conv1 result into padded scratch (zero only the 1-px border) ----
    zrow = jnp.zeros((1, W + 2, Cout), mid_ref.dtype)
    zcol = jnp.zeros((H, 1, Cout), mid_ref.dtype)
    mid_ref[0:1, :, :] = zrow
    mid_ref[H + 1:H + 2, :, :] = zrow
    mid_ref[1:1 + H, 0:1, :] = zcol
    mid_ref[1:1 + H, W + 1:W + 2, :] = zcol
    mid_ref[1:1 + H, 1:1 + W, :] = y1.reshape(H, W, Cout).astype(mid_ref.dtype)

    # ---- conv2 -> bn2 -> (+identity) -> relu : one im2col matmul ----
    m = mid_ref[...]                                         # (H+2, W+2, Cout)
    cols2 = [m[kh:kh + H, kw:kw + W, :] for kh in range(3) for kw in range(3)]
    a2 = jnp.concatenate(cols2, axis=-1).reshape(H * W, 9 * Cout)      # bf16
    acc2 = jnp.dot(a2, w2_ref[...], preferred_element_type=jnp.float32)
    ident = x[1:1 + H, 1:1 + W, :].reshape(H * W, Cin).astype(jnp.float32)
    y2 = jnp.maximum(acc2 * s2_ref[...] + b2_ref[...] + ident, 0.0)
    out_ref[0] = y2.reshape(H, W, Cout).astype(out_ref.dtype)


def _fold_bn(gamma, beta, mean, var, eps=1e-5):
    scale = gamma / jnp.sqrt(var + eps)
    bias = beta - mean * scale
    return (scale.reshape(1, -1).astype(jnp.float32),
            bias.reshape(1, -1).astype(jnp.float32))


def basic_block_forward(x_nchw, w1_oihw, bn1, w2_oihw, bn2):
    """BasicBlock forward. x_nchw: (N, C, H, W). Returns (N, C, H, W) f32."""
    N, Cin, H, W = x_nchw.shape
    Cout = w1_oihw.shape[0]
    assert Cin == Cout, "stride=1 / downsample=None requires inplanes == planes"

    # NHWC, bf16 activations, spatial zero-padding for padding=1.
    x = jnp.transpose(x_nchw, (0, 2, 3, 1)).astype(jnp.bfloat16)
    xpad = jnp.pad(x, ((0, 0), (1, 1), (1, 1), (0, 0)))
    # OIHW -> HWIO -> (9*Cin, Cout), matching the kernel's im2col tap order.
    w1 = jnp.transpose(w1_oihw, (2, 3, 1, 0)).reshape(9 * Cin, Cout).astype(jnp.bfloat16)
    w2 = jnp.transpose(w2_oihw, (2, 3, 1, 0)).reshape(9 * Cout, Cout).astype(jnp.bfloat16)
    s1, b1 = _fold_bn(*bn1)
    s2, b2 = _fold_bn(*bn2)

    kernel = functools.partial(_basic_block_kernel, H=H, W=W, Cin=Cin, Cout=Cout)

    out_nhwc = pl.pallas_call(
        kernel,
        out_shape=jax.ShapeDtypeStruct((N, H, W, Cout), jnp.float32),
        grid_spec=pltpu.PrefetchScalarGridSpec(
            num_scalar_prefetch=0,
            grid=(N,),
            in_specs=[
                pl.BlockSpec((1, H + 2, W + 2, Cin), lambda n: (n, 0, 0, 0)),
                pl.BlockSpec((9 * Cin, Cout), lambda n: (0, 0)),
                pl.BlockSpec((1, Cout), lambda n: (0, 0)),
                pl.BlockSpec((1, Cout), lambda n: (0, 0)),
                pl.BlockSpec((9 * Cout, Cout), lambda n: (0, 0)),
                pl.BlockSpec((1, Cout), lambda n: (0, 0)),
                pl.BlockSpec((1, Cout), lambda n: (0, 0)),
            ],
            out_specs=pl.BlockSpec((1, H, W, Cout), lambda n: (n, 0, 0, 0)),
            scratch_shapes=[pltpu.VMEM((H + 2, W + 2, Cout), jnp.bfloat16)],
        ),
        compiler_params=pltpu.CompilerParams(
            dimension_semantics=("parallel",)),
    )(xpad, w1, s1, b1, w2, s2, b2)

    return jnp.transpose(out_nhwc, (0, 3, 1, 2))                      # back to NCHW


def _reference_forward(x_nchw, w1_oihw, bn1, w2_oihw, bn2):
    """Pure-JAX reference with the same bf16-in / f32-accumulate policy."""
    x = jnp.transpose(x_nchw, (0, 2, 3, 1)).astype(jnp.bfloat16)
    w1 = jnp.transpose(w1_oihw, (2, 3, 1, 0)).astype(jnp.bfloat16)
    w2 = jnp.transpose(w2_oihw, (2, 3, 1, 0)).astype(jnp.bfloat16)
    s1, b1 = _fold_bn(*bn1)
    s2, b2 = _fold_bn(*bn2)
    dn = ("NHWC", "HWIO", "NHWC")
    y = lax.conv_general_dilated(x, w1, (1, 1), ((1, 1), (1, 1)),
                                 dimension_numbers=dn,
                                 preferred_element_type=jnp.float32)
    y = jnp.maximum(y * s1 + b1, 0.0).astype(jnp.bfloat16)
    y = lax.conv_general_dilated(y, w2, (1, 1), ((1, 1), (1, 1)),
                                 dimension_numbers=dn,
                                 preferred_element_type=jnp.float32)
    y = jnp.maximum(y * s2 + b2 + x.astype(jnp.float32), 0.0)
    return jnp.transpose(y, (0, 3, 1, 2))


if __name__ == "__main__":
    key = jax.random.PRNGKey(0)
    N, C, H, W = 2, 4, 16, 16          # inplanes = planes = 4, stride = 1
    ks = jax.random.split(key, 11)

    x = jax.random.normal(ks[0], (N, C, H, W), jnp.float32)
    w1 = 0.2 * jax.random.normal(ks[1], (C, C, 3, 3), jnp.float32)   # conv1 OIHW
    w2 = 0.2 * jax.random.normal(ks[2], (C, C, 3, 3), jnp.float32)   # conv2 OIHW

    bn1 = (1.0 + 0.1 * jax.random.normal(ks[3], (C,), jnp.float32),  # gamma
           0.1 * jax.random.normal(ks[4], (C,), jnp.float32),        # beta
           0.1 * jax.random.normal(ks[5], (C,), jnp.float32),        # running_mean
           0.5 + jnp.abs(jax.random.normal(ks[6], (C,), jnp.float32)))  # running_var
    bn2 = (1.0 + 0.1 * jax.random.normal(ks[7], (C,), jnp.float32),
           0.1 * jax.random.normal(ks[8], (C,), jnp.float32),
           0.1 * jax.random.normal(ks[9], (C,), jnp.float32),
           0.5 + jnp.abs(jax.random.normal(ks[10], (C,), jnp.float32)))

    out = basic_block_forward(x, w1, bn1, w2, bn2)
    out = jax.block_until_ready(out)

    ref = _reference_forward(x, w1, bn1, w2, bn2)
    assert out.shape == (N, C, H, W), out.shape
    max_err = float(jnp.max(jnp.abs(out - ref)))
    assert jnp.allclose(out, ref, atol=3e-2, rtol=3e-2), f"max abs err={max_err}"

    print("KERNEL_OK")
</pallas_src>

<mosaic_0001>
module attributes {stable_mosaic.version = 11 : i64} {
  func.func @_basic_block_kernel(%arg0: i32, %arg1: memref<1x18x18x4xbf16, #tpu.memory_space<vmem>>, %arg2: memref<36x4xbf16, #tpu.memory_space<vmem>>, %arg3: memref<1x4xf32, #tpu.memory_space<vmem>>, %arg4: memref<1x4xf32, #tpu.memory_space<vmem>>, %arg5: memref<36x4xbf16, #tpu.memory_space<vmem>>, %arg6: memref<1x4xf32, #tpu.memory_space<vmem>>, %arg7: memref<1x4xf32, #tpu.memory_space<vmem>>, %arg8: memref<1x16x16x4xf32, #tpu.memory_space<vmem>>, %arg9: memref<18x18x4xbf16, #tpu.memory_space<vmem>>) attributes {dimension_semantics = [#tpu.dimension_semantics<parallel>], iteration_bounds = array<i64: 2>, scalar_prefetch = 0 : i64, scratch_operands = 1 : i64, tpu.core_type = #tpu.core_type<tc>, window_params = [{transform_indices = @transform_0, window_bounds = array<i64: 1, 18, 18, 4>}, {pipeline_mode = #tpu.pipeline_mode<synchronous>, transform_indices = @transform_1, window_bounds = array<i64: 36, 4>}, {pipeline_mode = #tpu.pipeline_mode<synchronous>, transform_indices = @transform_2, window_bounds = array<i64: 1, 4>}, {pipeline_mode = #tpu.pipeline_mode<synchronous>, transform_indices = @transform_3, window_bounds = array<i64: 1, 4>}, {pipeline_mode = #tpu.pipeline_mode<synchronous>, transform_indices = @transform_4, window_bounds = array<i64: 36, 4>}, {pipeline_mode = #tpu.pipeline_mode<synchronous>, transform_indices = @transform_5, window_bounds = array<i64: 1, 4>}, {pipeline_mode = #tpu.pipeline_mode<synchronous>, transform_indices = @transform_6, window_bounds = array<i64: 1, 4>}, {transform_indices = @transform_7, window_bounds = array<i64: 1, 16, 16, 4>}]} {
    %c0 = arith.constant 0 : index
    %c0_0 = arith.constant 0 : index
    %c0_1 = arith.constant 0 : index
    %c0_2 = arith.constant 0 : index
    %0 = vector.load %arg1[%c0, %c0_0, %c0_1, %c0_2] : memref<1x18x18x4xbf16, #tpu.memory_space<vmem>>, vector<1x18x18x4xbf16>
    %1 = vector.shape_cast %0 : vector<1x18x18x4xbf16> to vector<18x18x4xbf16>
    %2 = vector.extract_strided_slice %1 {offsets = [0, 0, 0], sizes = [16, 16, 4], strides = [1, 1, 1]} : vector<18x18x4xbf16> to vector<16x16x4xbf16>
    %3 = vector.extract_strided_slice %1 {offsets = [0, 1, 0], sizes = [16, 16, 4], strides = [1, 1, 1]} : vector<18x18x4xbf16> to vector<16x16x4xbf16>
    %4 = vector.extract_strided_slice %1 {offsets = [0, 2, 0], sizes = [16, 16, 4], strides = [1, 1, 1]} : vector<18x18x4xbf16> to vector<16x16x4xbf16>
    %5 = vector.extract_strided_slice %1 {offsets = [1, 0, 0], sizes = [16, 16, 4], strides = [1, 1, 1]} : vector<18x18x4xbf16> to vector<16x16x4xbf16>
    %6 = vector.extract_strided_slice %1 {offsets = [1, 1, 0], sizes = [16, 16, 4], strides = [1, 1, 1]} : vector<18x18x4xbf16> to vector<16x16x4xbf16>
    %7 = vector.extract_strided_slice %1 {offsets = [1, 2, 0], sizes = [16, 16, 4], strides = [1, 1, 1]} : vector<18x18x4xbf16> to vector<16x16x4xbf16>
    %8 = vector.extract_strided_slice %1 {offsets = [2, 0, 0], sizes = [16, 16, 4], strides = [1, 1, 1]} : vector<18x18x4xbf16> to vector<16x16x4xbf16>
    %9 = vector.extract_strided_slice %1 {offsets = [2, 1, 0], sizes = [16, 16, 4], strides = [1, 1, 1]} : vector<18x18x4xbf16> to vector<16x16x4xbf16>
    %10 = vector.extract_strided_slice %1 {offsets = [2, 2, 0], sizes = [16, 16, 4], strides = [1, 1, 1]} : vector<18x18x4xbf16> to vector<16x16x4xbf16>
    %11 = tpu.concatenate %2, %3, %4, %5, %6, %7, %8, %9, %10 in 2 : vector<16x16x4xbf16>, vector<16x16x4xbf16>, vector<16x16x4xbf16>, vector<16x16x4xbf16>, vector<16x16x4xbf16>, vector<16x16x4xbf16>, vector<16x16x4xbf16>, vector<16x16x4xbf16>, vector<16x16x4xbf16> -> vector<16x16x36xbf16>
    %12 = vector.shape_cast %11 : vector<16x16x36xbf16> to vector<256x36xbf16>
    %c0_3 = arith.constant 0 : index
    %c0_4 = arith.constant 0 : index
    %13 = vector.load %arg2[%c0_3, %c0_4] : memref<36x4xbf16, #tpu.memory_space<vmem>>, vector<36x4xbf16>
    %cst = arith.constant dense<0.000000e+00> : vector<256x4xf32>
    %14 = tpu.matmul %12, %13, %cst {dimension_numbers = #tpu.dot_dimension_numbers<[1], [0], [0], [1], [0, 0, 1, 1], [], []>} : vector<256x36xbf16>, vector<36x4xbf16>, vector<256x4xf32> -> vector<256x4xf32>
    %c0_5 = arith.constant 0 : index
    %c0_6 = arith.constant 0 : index
    %15 = vector.load %arg3[%c0_5, %c0_6] : memref<1x4xf32, #tpu.memory_space<vmem>>, vector<1x4xf32>
    %16 = vector.broadcast %15 : vector<1x4xf32> to vector<256x4xf32>
    %17 = arith.mulf %14, %16 : vector<256x4xf32>
    %c0_7 = arith.constant 0 : index
    %c0_8 = arith.constant 0 : index
    %18 = vector.load %arg4[%c0_7, %c0_8] : memref<1x4xf32, #tpu.memory_space<vmem>>, vector<1x4xf32>
    %19 = vector.broadcast %18 : vector<1x4xf32> to vector<256x4xf32>
    %20 = arith.addf %17, %19 : vector<256x4xf32>
    %cst_9 = arith.constant 0.000000e+00 : f32
    %21 = vector.broadcast %cst_9 : f32 to vector<256x4xf32>
    %22 = arith.maximumf %20, %21 : vector<256x4xf32>
    %cst_10 = arith.constant 0.000000e+00 : bf16
    %23 = vector.broadcast %cst_10 : bf16 to vector<1x18x4xbf16>
    %cst_11 = arith.constant 0.000000e+00 : bf16
    %24 = vector.broadcast %cst_11 : bf16 to vector<16x1x4xbf16>
    %c0_12 = arith.constant 0 : index
    %c0_13 = arith.constant 0 : index
    %c0_14 = arith.constant 0 : index
    %25 = vector.load %arg9[%c0_12, %c0_13, %c0_14] : memref<18x18x4xbf16, #tpu.memory_space<vmem>>, vector<1x18x4xbf16>
    tpu.vector_store %arg9[%c0_12, %c0_13, %c0_14], %23 {strides = array<i32>} : memref<18x18x4xbf16, #tpu.memory_space<vmem>>, vector<1x18x4xbf16>,
    %c17 = arith.constant 17 : index
    %c0_15 = arith.constant 0 : index
    %c0_16 = arith.constant 0 : index
    %26 = vector.load %arg9[%c17, %c0_15, %c0_16] : memref<18x18x4xbf16, #tpu.memory_space<vmem>>, vector<1x18x4xbf16>
    tpu.vector_store %arg9[%c17, %c0_15, %c0_16], %23 {strides = array<i32>} : memref<18x18x4xbf16, #tpu.memory_space<vmem>>, vector<1x18x4xbf16>,
    %c1 = arith.constant 1 : index
    %c0_17 = arith.constant 0 : index
    %c0_18 = arith.constant 0 : index
    %27 = vector.load %arg9[%c1, %c0_17, %c0_18] : memref<18x18x4xbf16, #tpu.memory_space<vmem>>, vector<16x1x4xbf16>
    tpu.vector_store %arg9[%c1, %c0_17, %c0_18], %24 {strides = array<i32>} : memref<18x18x4xbf16, #tpu.memory_space<vmem>>, vector<16x1x4xbf16>,
    %c1_19 = arith.constant 1 : index
    %c17_20 = arith.constant 17 : index
    %c0_21 = arith.constant 0 : index
    %28 = vector.load %arg9[%c1_19, %c17_20, %c0_21] : memref<18x18x4xbf16, #tpu.memory_space<vmem>>, vector<16x1x4xbf16>
    tpu.vector_store %arg9[%c1_19, %c17_20, %c0_21], %24 {strides = array<i32>} : memref<18x18x4xbf16, #tpu.memory_space<vmem>>, vector<16x1x4xbf16>,
    %29 = vector.shape_cast %22 : vector<256x4xf32> to vector<16x16x4xf32>
    %30 = arith.truncf %29 : vector<16x16x4xf32> to vector<16x16x4xbf16>
    %c1_22 = arith.constant 1 : index
    %c1_23 = arith.constant 1 : index
    %c0_24 = arith.constant 0 : index
    %31 = vector.load %arg9[%c1_22, %c1_23, %c0_24] : memref<18x18x4xbf16, #tpu.memory_space<vmem>>, vector<16x16x4xbf16>
    tpu.vector_store %arg9[%c1_22, %c1_23, %c0_24], %30 {strides = array<i32>} : memref<18x18x4xbf16, #tpu.memory_space<vmem>>, vector<16x16x4xbf16>,
    %c0_25 = arith.constant 0 : index
    %c0_26 = arith.constant 0 : index
    %c0_27 = arith.constant 0 : index
    %32 = vector.load %arg9[%c0_25, %c0_26, %c0_27] : memref<18x18x4xbf16, #tpu.memory_space<vmem>>, vector<18x18x4xbf16>
    %33 = vector.extract_strided_slice %32 {offsets = [0, 0, 0], sizes = [16, 16, 4], strides = [1, 1, 1]} : vector<18x18x4xbf16> to vector<16x16x4xbf16>
    %34 = vector.extract_strided_slice %32 {offsets = [0, 1, 0], sizes = [16, 16, 4], strides = [1, 1, 1]} : vector<18x18x4xbf16> to vector<16x16x4xbf16>
    %35 = vector.extract_strided_slice %32 {offsets = [0, 2, 0], sizes = [16, 16, 4], strides = [1, 1, 1]} : vector<18x18x4xbf16> to vector<16x16x4xbf16>
    %36 = vector.extract_strided_slice %32 {offsets = [1, 0, 0], sizes = [16, 16, 4], strides = [1, 1, 1]} : vector<18x18x4xbf16> to vector<16x16x4xbf16>
    %37 = vector.extract_strided_slice %32 {offsets = [1, 1, 0], sizes = [16, 16, 4], strides = [1, 1, 1]} : vector<18x18x4xbf16> to vector<16x16x4xbf16>
    %38 = vector.extract_strided_slice %32 {offsets = [1, 2, 0], sizes = [16, 16, 4], strides = [1, 1, 1]} : vector<18x18x4xbf16> to vector<16x16x4xbf16>
    %39 = vector.extract_strided_slice %32 {offsets = [2, 0, 0], sizes = [16, 16, 4], strides = [1, 1, 1]} : vector<18x18x4xbf16> to vector<16x16x4xbf16>
    %40 = vector.extract_strided_slice %32 {offsets = [2, 1, 0], sizes = [16, 16, 4], strides = [1, 1, 1]} : vector<18x18x4xbf16> to vector<16x16x4xbf16>
    %41 = vector.extract_strided_slice %32 {offsets = [2, 2, 0], sizes = [16, 16, 4], strides = [1, 1, 1]} : vector<18x18x4xbf16> to vector<16x16x4xbf16>
    %42 = tpu.concatenate %33, %34, %35, %36, %37, %38, %39, %40, %41 in 2 : vector<16x16x4xbf16>, vector<16x16x4xbf16>, vector<16x16x4xbf16>, vector<16x16x4xbf16>, vector<16x16x4xbf16>, vector<16x16x4xbf16>, vector<16x16x4xbf16>, vector<16x16x4xbf16>, vector<16x16x4xbf16> -> vector<16x16x36xbf16>
    %43 = vector.shape_cast %42 : vector<16x16x36xbf16> to vector<256x36xbf16>
    %c0_28 = arith.constant 0 : index
    %c0_29 = arith.constant 0 : index
    %44 = vector.load %arg5[%c0_28, %c0_29] : memref<36x4xbf16, #tpu.memory_space<vmem>>, vector<36x4xbf16>
    %cst_30 = arith.constant dense<0.000000e+00> : vector<256x4xf32>
    %45 = tpu.matmul %43, %44, %cst_30 {dimension_numbers = #tpu.dot_dimension_numbers<[1], [0], [0], [1], [0, 0, 1, 1], [], []>} : vector<256x36xbf16>, vector<36x4xbf16>, vector<256x4xf32> -> vector<256x4xf32>
    %46 = vector.extract_strided_slice %1 {offsets = [1, 1, 0], sizes = [16, 16, 4], strides = [1, 1, 1]} : vector<18x18x4xbf16> to vector<16x16x4xbf16>
    %47 = vector.shape_cast %46 : vector<16x16x4xbf16> to vector<256x4xbf16>
    %48 = arith.extf %47 : vector<256x4xbf16> to vector<256x4xf32>
    %c0_31 = arith.constant 0 : index
    %c0_32 = arith.constant 0 : index
    %49 = vector.load %arg6[%c0_31, %c0_32] : memref<1x4xf32, #tpu.memory_space<vmem>>, vector<1x4xf32>
    %50 = vector.broadcast %49 : vector<1x4xf32> to vector<256x4xf32>
    %51 = arith.mulf %45, %50 : vector<256x4xf32>
    %c0_33 = arith.constant 0 : index
    %c0_34 = arith.constant 0 : index
    %52 = vector.load %arg7[%c0_33, %c0_34] : memref<1x4xf32, #tpu.memory_space<vmem>>, vector<1x4xf32>
    %53 = vector.broadcast %52 : vector<1x4xf32> to vector<256x4xf32>
    %54 = arith.addf %51, %53 : vector<256x4xf32>
    %55 = arith.addf %54, %48 : vector<256x4xf32>
    %cst_35 = arith.constant 0.000000e+00 : f32
    %56 = vector.broadcast %cst_35 : f32 to vector<256x4xf32>
    %57 = arith.maximumf %55, %56 : vector<256x4xf32>
    %58 = vector.shape_cast %57 : vector<256x4xf32> to vector<16x16x4xf32>
    %c0_36 = arith.constant 0 : index
    %c0_37 = arith.constant 0 : index
    %c0_38 = arith.constant 0 : index
    %c0_39 = arith.constant 0 : index
    %59 = vector.load %arg8[%c0_36, %c0_37, %c0_38, %c0_39] : memref<1x16x16x4xf32, #tpu.memory_space<vmem>>, vector<1x16x16x4xf32>
    %60 = vector.shape_cast %59 : vector<1x16x16x4xf32> to vector<16x16x4xf32>
    %61 = vector.shape_cast %58 : vector<16x16x4xf32> to vector<1x16x16x4xf32>
    tpu.vector_store %arg8[%c0_36, %c0_37, %c0_38, %c0_39], %61 {strides = array<i32>} : memref<1x16x16x4xf32, #tpu.memory_space<vmem>>, vector<1x16x16x4xf32>,
    return
  }
  func.func @transform_0(%arg0: i32) -> (i32, i32, i32, i32) {
    %c0_i32 = arith.constant 0 : i32
    %c0_i32_0 = arith.constant 0 : i32
    %c0_i32_1 = arith.constant 0 : i32
    %c0_i32_2 = arith.constant 0 : i32
    return %arg0, %c0_i32, %c0_i32_0, %c0_i32_1 : i32, i32, i32, i32
  }
  func.func @transform_1(%arg0: i32) -> (i32, i32) {
    %c0_i32 = arith.constant 0 : i32
    %c0_i32_0 = arith.constant 0 : i32
    %c0_i32_1 = arith.constant 0 : i32
    return %c0_i32, %c0_i32_0 : i32, i32
  }
  func.func @transform_2(%arg0: i32) -> (i32, i32) {
    %c0_i32 = arith.constant 0 : i32
    %c0_i32_0 = arith.constant 0 : i32
    %c0_i32_1 = arith.constant 0 : i32
    return %c0_i32, %c0_i32_0 : i32, i32
  }
  func.func @transform_3(%arg0: i32) -> (i32, i32) {
    %c0_i32 = arith.constant 0 : i32
    %c0_i32_0 = arith.constant 0 : i32
    %c0_i32_1 = arith.constant 0 : i32
    return %c0_i32, %c0_i32_0 : i32, i32
  }
  func.func @transform_4(%arg0: i32) -> (i32, i32) {
    %c0_i32 = arith.constant 0 : i32
    %c0_i32_0 = arith.constant 0 : i32
    %c0_i32_1 = arith.constant 0 : i32
    return %c0_i32, %c0_i32_0 : i32, i32
  }
  func.func @transform_5(%arg0: i32) -> (i32, i32) {
    %c0_i32 = arith.constant 0 : i32
    %c0_i32_0 = arith.constant 0 : i32
    %c0_i32_1 = arith.constant 0 : i32
    return %c0_i32, %c0_i32_0 : i32, i32
  }
  func.func @transform_6(%arg0: i32) -> (i32, i32) {
    %c0_i32 = arith.constant 0 : i32
    %c0_i32_0 = arith.constant 0 : i32
    %c0_i32_1 = arith.constant 0 : i32
    return %c0_i32, %c0_i32_0 : i32, i32
  }
  func.func @transform_7(%arg0: i32) -> (i32, i32, i32, i32) {
    %c0_i32 = arith.constant 0 : i32
    %c0_i32_0 = arith.constant 0 : i32
    %c0_i32_1 = arith.constant 0 : i32
    %c0_i32_2 = arith.constant 0 : i32
    return %arg0, %c0_i32, %c0_i32_0, %c0_i32_1 : i32, i32, i32, i32
  }
}

</mosaic_0001>

<bundles_post_ra>
// kernel: tpu_custom_call.1
= control target key start
LH: loop header
LB: loop body
LE: loop exit
PB: predicated region body
PF: predicated region fallthrough
CT: control target
= control target key end

     0   :  { %s4635_s24 = smov 0   ;;  %s6366_s0 = inlined_call_operand.vmem [shape: bf16[2,18,18,4], index: 0, kind: input, shape index: {}]   ;;  %s6367_s1 = inlined_call_operand.vmem [shape: bf16[36,4], index: 1, kind: input, shape index: {}]   ;;  %s6368_s2 = inlined_call_operand.vmem [shape: f32[1,4], index: 2, kind: input, shape index: {}]   ;;  %s6369_s3 = inlined_call_operand.vmem [shape: f32[1,4], index: 3, kind: input, shape index: {}]   ;;  %s6370_s4 = inlined_call_operand.vmem [shape: bf16[36,4], index: 4, kind: input, shape index: {}]   ;;  %s6371_s5 = inlined_call_operand.vmem [shape: f32[1,4], index: 5, kind: input, shape index: {}]   ;;  %s6372_s6 = inlined_call_operand.vmem [shape: f32[1,4], index: 6, kind: input, shape index: {}]   ;;  %s6373_s7 = inlined_call_operand.vmem [shape: f32[2,16,16,4], index: 7, kind: output, shape index: {}]  }
   0x1 LB: > { %s4117_s25 = sadd.s32 4294967295, %s4584_s24   ;;  %p4121_p0 = scmp.ge.s32.totalorder %s4584_s24, 1  ;;  %s4584_s24 = sphi %s4635_s24, %s17_s24  }
   0x2   : > { %p237_p1 = scmp.lt.s32.totalorder %s4584_s24, 3 }
   0x4   : > { %p238_p2 = pnand %p4121_p0, %p237_p1 }
   0x5   : > { %p269_p3 = scmp.lt.s32.totalorder (!%p238_p2), %s4117_s25, 1  ;;  %s4586_s30 = smov (!%p238_p2), 12  }
   0x6   : > { %241 = sbr.rel (%p238_p2) target bundleno = 982 (0x3d6), region = 48  ;;  %s4587_s8 = smov (!%p238_p2), 20  }
   0x7   : > { %s4588_s9 = smov (!%p238_p2), 8   ;;  %s4589_s10 = smov (!%p238_p2), 4  }
   0x8   : > { %s4590_s11 = smov (!%p238_p2), 16   ;;  %s4591_s12 = smov (!%p238_p2), 24  }
   0x9   : > { %s4592_s13 = smov (!%p238_p2), 28   ;;  %s4593_s14 = smov (!%p238_p2), 32  }
   0xb   : > { %s6434_s25 = smov (!%p269_p3, %s4117_s25), 1  ;;  %vm6377_vm0 = vcmask 1046528   ;;  %vm6376_vm1 = vsmask.f32 7424  ;;  %vm6374_vm2 = vcmask 1041408   ;;  %vm1006_vm3 = vcmask 31744  }
   0xc   : > { %s4422_s26 = smul.u32 216, %s6434_s25  ;;  %v4460_v60 = vld [vmem:[%s6367_s1 + $0x10] ss:$0 sps:$4 sm:$0x33]   ;;  %vm1039_vm4 = vcmask 64512   ;;  %vm1072_vm5 = vcmask 97280  }
   0xd   : > { %4420 = vmatprep.subr.msk.bf16.mxu0 %vm6374_vm2, %v4460_v60  ;;  %vm1105_vm6 = vcmask 130048   ;;  %vm1138_vm7 = vcmask 162816   ;;  %vm1171_vm8 = vcmask 195584   ;;  %vm1204_vm9 = vcmask 228352  }
   0xe   : > { %s4649_s29 = scalar_lea.vmem %s6366_s0, %s4422_s26  ;;  %vm1237_vm10 = vcmask 261120   ;;  %vm6378_vm11 = vcmask 293888   ;;  %vm1598_vm12 = vcmask 27648   ;;  %vm1601_vm13 = vcmask 24576  }
   0xf   : > { %v286_v0 = vld [vmem:[%s4649_s29 + $0x18] sm:$0xf]  ;;  %v287_v1 = vld [vmem:[%s4649_s29 + $0x1c] sm:$0xf]  ;;  %v283_v2 = vld [vmem:[%s4649_s29 + $0xc] sm:$0xf] }
  0x10   : > { %v4654_v3 = vcombine.low %v286_v0, %v287_v1  ;;  %v284_v4 = vld [vmem:[%s4649_s29 + $0x10] sm:$0xf]  ;;  %v285_v5 = vld [vmem:[%s4649_s29 + $0x14] sm:$0x1]  ;;  %v4661_v8 = vld [vmem:[%s4649_s29] sm:$0xff]   ;;  %v1325_v1 = vsel %vm6374_vm2, %v4460_v60, 0 }
  0x11   : > { %v4658_v6 = vcombine.low %v283_v2, %v284_v4  ;;  %v4142_v7 = vcombine.low %v285_v5, %v285_v5  ;;  %v4444_v9 = vld [vmem:[%s4649_s29 + $0x8] ss:$0 sps:$4 sm:$0x11]   ;;  %v288_v10 = vld [vmem:[%s4649_s29 + $0x20] sm:$0x1]  ;;  %v688_v13 = vrot.slane %v4661_v8, 1  ;;  %4345 = vmatpush3.bf16.msra.mxu0 %v1325_v1 }
  0x12   : > { %775 = vrot.lane.b32.xlu1 %v4654_v3, %s4586_s30  ;;  %v689_v14 = vrot.slane %v4444_v9, 1  ;;  %v464_v15 = vshrl.u32 %v4661_v8, 16  ;;  %v466_v16 = vshll.u32 %v4661_v8, 16  ;;  %v471_v17 = vshll.u32 %v4444_v9, 16  ;;  %v289_v21 = vld [vmem:[%s4649_s29 + $0x24] sm:$0xf] }
  0x13   : > { %773 = vrot.lane.b32.xlu0 %v4658_v6, %s4586_s30  ;;  %v691_v11 = vrot.slane %v4658_v6, 1  ;;  %v692_v12 = vrot.slane %v4142_v7, 1  ;;  %v4143_v19 = vcombine.low %v288_v10, %v288_v10  ;;  %v476_v20 = vshrl.u32 %v4658_v6, 16  ;;  %v290_v26 = vld [vmem:[%s4649_s29 + $0x28] sm:$0xf]  ;;  %v4464_v10 = vld [vmem:[%s6367_s1] sm:$0xff]  }
  0x14   : > { %v690_v22 = vsel %vm6377_vm0, %v688_v13, %v689_v14  ;;  %v468_v23 = vrot.slane %v466_v16, 1  ;;  %v473_v24 = vrot.slane %v471_v17, 1  ;;  %v478_v25 = vshll.u32 %v4658_v6, 16  ;;  %v291_v35 = vld [vmem:[%s4649_s29 + $0x2c] sm:$0x1] }
  0x15   : > { %v693_v18 = vsel %vm6377_vm0, %v691_v11, %v692_v12  ;;  %v694_v27 = vrot.slane %v4654_v3, 1  ;;  %v695_v28 = vrot.slane %v4143_v19, 1  ;;  %v483_v29 = vshll.u32 %v4142_v7, 16  ;;  %v292_v54 = vld [vmem:[%s4649_s29 + $0x30] sm:$0xf]  ;;  %v4462_v0 = vld [vmem:[%s6367_s1 + $0x8] sm:$0xff]  }
  0x16   : > { %736 = vrot.lane.b32.xlu1 %v690_v22, %s4588_s9  ;;  %v488_v30 = vshrl.u32 %v4654_v3, 16  ;;  %v469_v31 = vor.u32 %v468_v23, %v464_v15  ;;  %v480_v32 = vrot.slane %v478_v25, 1  ;;  %v490_v33 = vshll.u32 %v4654_v3, 16  ;;  %v293_v55 = vld [vmem:[%s4649_s29 + $0x34] sm:$0xf]  ;;  %4346 = vmatprep.subr.bf16.mxu0 %v4462_v0 }
  0x17   : > { %855 = vrot.lane.b32.xlu0 %v693_v18, %s4587_s8  ;;  %v495_v34 = vshll.u32 %v4143_v19, 16  ;;  %v485_v36 = vrot.slane %v483_v29, 1  ;;  %v4685_v37 = vcombine.low %v289_v21, %v290_v26  ;;  %v696_v41 = vsel %vm6377_vm0, %v694_v27, %v695_v28  ;;  %v294_v59 = vld [vmem:[%s4649_s29 + $0x38] sm:$0x1]  ;;  %v295_v7 = vld [vmem:[%s4649_s29 + $0x3c] sm:$0xf]  ;;  %4347 = vmatpush3.bf16.msra.mxu0 %v4462_v0 }
  0x18   : > { %v474_v38 = vsel %vm6376_vm1, %v469_v31, %v473_v24  ;;  %v481_v39 = vor.u32 %v480_v32, %v476_v20  ;;  %v492_v40 = vrot.slane %v490_v33, 1  ;;  %v4144_v42 = vcombine.low %v291_v35, %v291_v35  ;;  %v296_v9 = vld [vmem:[%s4649_s29 + $0x40] sm:$0xf]  ;;  %v297_v14 = vld [vmem:[%s4649_s29 + $0x44] sm:$0x1]  ;;  %4348 = vmatprep.subr.bf16.mxu0 %v4464_v10 }
  0x19   : > { %v497_v45 = vrot.slane %v495_v34, 1  ;;  %v502_v46 = vshll.u32 %v4685_v37, 16  ;;  %v500_v48 = vshrl.u32 %v4685_v37, 16  ;;  %v697_v56 = vrot.slane %v4685_v37, 1  ;;  %v298_v27 = vld [vmem:[%s4649_s29 + $0x48] sm:$0xf] }
  0x1a   : > { %738 = vrot.lane.b32.xlu1 %v693_v18, %s4588_s9  ;;  %v486_v43 = vsel %vm6376_vm1, %v481_v39, %v485_v36  ;;  %v493_v44 = vor.u32 %v492_v40, %v488_v30  ;;  %v507_v50 = vshll.u32 %v4144_v42, 16  ;;  %v698_v57 = vrot.slane %v4144_v42, 1  ;;  %v299_v28 = vld [vmem:[%s4649_s29 + $0x4c] sm:$0xf]  ;;  %v300_v32 = vld [vmem:[%s4649_s29 + $0x50] sm:$0x1] }
  0x1b   : > { %655 = vrot.lane.b32.xlu0 %v474_v38, %s4589_s10  ;;  %v504_v49 = vrot.slane %v502_v46, 1  ;;  %v4709_v58 = vcombine.low %v292_v54, %v293_v55  ;;  %v4145_v62 = vcombine.low %v294_v59, %v294_v59  ;;  %v4734_v13 = vcombine.low %v295_v7, %v296_v9  ;;  %4349 = vmatpush3.bf16.msra.mxu0 %v4464_v10  ;;  %v301_v40 = vld [vmem:[%s4649_s29 + $0x54] sm:$0xf]  ;;  %v304_v59 = vld [vmem:[%s4649_s29 + $0x60] sm:$0xf] }
  0x1c   : > { %v498_v47 = vsel %vm6376_vm1, %v493_v44, %v497_v45  ;;  %v509_v52 = vrot.slane %v507_v50, 1  ;;  %v699_v61 = vsel %vm6377_vm0, %v697_v56, %v698_v57  ;;  %v4146_v18 = vcombine.low %v297_v14, %v297_v14  ;;  %v303_v45 = vld [vmem:[%s4649_s29 + $0x5c] sm:$0x1]  ;;  %v305_v60 = vld [vmem:[%s4649_s29 + $0x64] sm:$0xf] }
  0x1d   : > { %v505_v51 = vor.u32 %v504_v49, %v500_v48  ;;  %v514_v63 = vshll.u32 %v4709_v58, 16  ;;  %v512_v2 = vshrl.u32 %v4709_v58, 16  ;;  %v519_v5 = vshll.u32 %v4145_v62, 16  ;;  %v306_v0 = vld [vmem:[%s4649_s29 + $0x68] sm:$0x1] }
  0x1e   : > { %857 = vrot.lane.b32.xlu1 %v696_v41, %s4587_s8  ;;  %v700_v15 = vrot.slane %v4709_v58, 1  ;;  %v701_v17 = vrot.slane %v4145_v62, 1  ;;  %v526_v19 = vshll.u32 %v4734_v13, 16  ;;  %v524_v21 = vshrl.u32 %v4734_v13, 16  ;;  %v307_v10 = vld [vmem:[%s4649_s29 + $0x6c] sm:$0xf] }
  0x1f   : > { %657 = vrot.lane.b32.xlu0 %v486_v43, %s4589_s10  ;;  %v510_v53 = vsel %vm6376_vm1, %v505_v51, %v509_v52  ;;  %v516_v4 = vrot.slane %v514_v63, 1  ;;  %v521_v12 = vrot.slane %v519_v5, 1  ;;  %v531_v23 = vshll.u32 %v4146_v18, 16 }
  0x20   : > { %v702_v20 = vsel %vm6377_vm0, %v700_v15, %v701_v17  ;;  %v528_v22 = vrot.slane %v526_v19, 1  ;;  %v703_v29 = vrot.slane %v4734_v13, 1  ;;  %v704_v30 = vrot.slane %v4146_v18, 1 }
  0x21   : > { %v517_v11 = vor.u32 %v516_v4, %v512_v2  ;;  %v533_v25 = vrot.slane %v531_v23, 1  ;;  %v4760_v31 = vcombine.low %v298_v27, %v299_v28  ;;  %v4147_v34 = vcombine.low %v300_v32, %v300_v32 }
  0x22   : > { %822 = vrot.lane.b32.xlu1 %v498_v47, %s4590_s11  ;;  %v529_v24 = vor.u32 %v528_v22, %v524_v21  ;;  %v705_v33 = vsel %vm6377_vm0, %v703_v29, %v704_v30  ;;  %v4148_v49 = vcombine.low %v303_v45, %v303_v45  ;;  %v4800_v63 = vcombine.low %v304_v59, %v305_v60 }
  0x23   : > { %820 = vrot.lane.b32.xlu0 %v486_v43, %s4590_s11  ;;  %v522_v16 = vsel %vm6376_vm1, %v517_v11, %v521_v12  ;;  %v538_v35 = vshll.u32 %v4760_v31, 16  ;;  %v536_v36 = vshrl.u32 %v4760_v31, 16  ;;  %v543_v39 = vshll.u32 %v4147_v34, 16  ;;  %v308_v11 = vld [vmem:[%s4649_s29 + $0x70] sm:$0xf] }
  0x24   : > { %v534_v26 = vsel %vm6376_vm1, %v529_v24, %v533_v25  ;;  %v706_v46 = vrot.slane %v4760_v31, 1  ;;  %v707_v48 = vrot.slane %v4147_v34, 1  ;;  %v555_v54 = vshll.u32 %v4148_v49, 16  ;;  %v310_v34 = vld [vmem:[%s4649_s29 + $0x78] sm:$0xf] }
  0x25   : > { %v540_v38 = vrot.slane %v538_v35, 1  ;;  %v545_v43 = vrot.slane %v543_v39, 1  ;;  %v710_v62 = vrot.slane %v4148_v49, 1  ;;  %v4149_v2 = vcombine.low %v306_v0, %v306_v0  ;;  %v311_v35 = vld [vmem:[%s4649_s29 + $0x7c] sm:$0xf] }
  0x26   : > { %894 = vrot.lane.b32.xlu1 %v4685_v37, %s4591_s12  ;;  %v708_v51 = vsel %vm6377_vm0, %v706_v46, %v707_v48  ;;  %v557_v56 = vrot.slane %v555_v54, 1  ;;  %v562_v4 = vshll.u32 %v4800_v63, 16  ;;  %v560_v5 = vshrl.u32 %v4800_v63, 16 }
  0x27   : > { %892 = vrot.lane.b32.xlu0 %v4654_v3, %s4591_s12  ;;  %v541_v42 = vor.u32 %v540_v38, %v536_v36  ;;  %v567_v9 = vshll.u32 %v4149_v2, 16  ;;  %v4814_v15 = vcombine.low %v307_v10, %v308_v11  ;;  %v712_v17 = vrot.slane %v4800_v63, 1 }
  0x28   : > { %v564_v7 = vrot.slane %v562_v4, 1  ;;  %v713_v19 = vrot.slane %v4149_v2, 1  ;;  %v4840_v39 = vcombine.low %v310_v34, %v311_v35  ;;  %vm6375_vm14 = vsmask.f32 256 }
  0x29   : > { %v569_v14 = vrot.slane %v567_v9, 1  ;;  %v574_v21 = vshll.u32 %v4814_v15, 16  ;;  %v572_v23 = vshrl.u32 %v4814_v15, 16  ;;  %v715_v36 = vrot.slane %v4814_v15, 1  ;;  %vm5049_vm15 = vmand %vm1601_vm13, %vm6375_vm14 }
  0x2a   : > { %941 = vrot.lane.b32.xlu1 %v510_v53, %s4592_s13  ;;  %v565_v12 = vor.u32 %v564_v7, %v560_v5  ;;  %v714_v22 = vsel %vm6377_vm0, %v712_v17, %v713_v19  ;;  %v586_v46 = vshll.u32 %v4840_v39, 16  ;;  %v584_v49 = vshrl.u32 %v4840_v39, 16 }
  0x2b   : > { %939 = vrot.lane.b32.xlu0 %v498_v47, %s4592_s13  ;;  %v576_v24 = vrot.slane %v574_v21, 1  ;;  %vm1659_vm2 = vsmask.f32 7938 }
  0x2c   : > { %v570_v18 = vsel %vm6376_vm1, %v565_v12, %v569_v14  ;;  %vm5071_vm14 = vmand %vm1601_vm13, %vm1659_vm2 }
  0x2d   : > { %v577_v27 = vor.u32 %v576_v24, %v572_v23 }
  0x2e   : > { %659 = vrot.lane.b32.xlu1 %v498_v47, %s4589_s10  ;;  %v546_v47 = vsel %vm6376_vm1, %v541_v42, %v545_v43  ;;  %v312_v42 = vld [vmem:[%s4649_s29 + $0x80] sm:$0x1] }
  0x2f   : > { %974 = vrot.lane.b32.xlu0 %v696_v41, %s4593_s14  ;;  %v4151_v45 = vcombine.low %v312_v42, %v312_v42  ;;  %v316_v42 = vld [vmem:[%s4649_s29 + $0x90] sm:$0xf] }
  0x31   : > { %v719_v5 = vrot.slane %v4151_v45, 1 }
  0x32   : > { %661 = vrot.lane.b32.xlu1 %v510_v53, %s4589_s10 }
  0x33   : > { %976 = vrot.lane.b32.xlu0 %v699_v61, %s4593_s14 }
  0x36   : > { %742 = vrot.lane.b32.xlu1 %v699_v61, %s4588_s9 }
  0x37   : > { %740 = vrot.lane.b32.xlu0 %v696_v41, %s4588_s9  ;;  %v302_v41 = vld [vmem:[%s4649_s29 + $0x58] sm:$0xf] }
  0x38   : > { %v4774_v44 = vcombine.low %v301_v40, %v302_v41 }
  0x3a   : > { %779 = vrot.lane.b32.xlu1 %v4709_v58, %s4586_s30  ;;  %v550_v50 = vshll.u32 %v4774_v44, 16  ;;  %v548_v52 = vshrl.u32 %v4774_v44, 16 }
  0x3b   : > { %777 = vrot.lane.b32.xlu0 %v4685_v37, %s4586_s30 }
  0x3e   : > { %826 = vrot.lane.b32.xlu1 %v522_v16, %s4590_s11 }
  0x3f   : > { %824 = vrot.lane.b32.xlu0 %v510_v53, %s4590_s11  ;;  %v552_v53 = vrot.slane %v550_v50, 1  ;;  %v588_v50 = vrot.slane %v586_v46, 1 }
  0x41   : > { %v553_v55 = vor.u32 %v552_v53, %v548_v52  ;;  %v589_v60 = vor.u32 %v588_v50, %v584_v49  ;;  %v318_v50 = vld [vmem:[%s4649_s29 + $0x98] sm:$0x1] }
  0x42   : > { %861 = vrot.lane.b32.xlu1 %v702_v20, %s4587_s8 }
  0x43   : > { %859 = vrot.lane.b32.xlu0 %v699_v61, %s4587_s8  ;;  %v558_v57 = vsel %vm6376_vm1, %v553_v55, %v557_v56  ;;  %v709_v61 = vrot.slane %v4774_v44, 1  ;;  %v313_v55 = vld [vmem:[%s4649_s29 + $0x84] sm:$0xf]  ;;  %v314_v56 = vld [vmem:[%s4649_s29 + $0x88] sm:$0xf] }
  0x45   : > { %v711_v1 = vsel %vm6377_vm0, %v709_v61, %v710_v62  ;;  %v4859_v62 = vcombine.low %v313_v55, %v314_v56 }
  0x46   : > { %898 = vrot.lane.b32.xlu1 %v4734_v13, %s4591_s12 }
  0x47   : > { %896 = vrot.lane.b32.xlu0 %v4709_v58, %s4591_s12  ;;  %v598_v11 = vshll.u32 %v4859_v62, 16  ;;  %v596_v19 = vshrl.u32 %v4859_v62, 16 }
  0x4a   : > { %945 = vrot.lane.b32.xlu1 %v534_v26, %s4592_s13 }
  0x4b   : > { %943 = vrot.lane.b32.xlu0 %v522_v16, %s4592_s13 }
  0x4e   : > { %663 = vrot.lane.b32.xlu1 %v522_v16, %s4589_s10  ;;  %v309_v16 = vld [vmem:[%s4649_s29 + $0x74] sm:$0x1] }
  0x4f   : > { %978 = vrot.lane.b32.xlu0 %v702_v20, %s4593_s14 }
  0x52   : > { %665 = vrot.lane.b32.xlu1 %v534_v26, %s4589_s10 }
  0x53   : > { %980 = vrot.lane.b32.xlu0 %v705_v33, %s4593_s14 }
  0x56   : > { %746 = vrot.lane.b32.xlu1 %v705_v33, %s4588_s9 }
  0x57   : > { %744 = vrot.lane.b32.xlu0 %v702_v20, %s4588_s9  ;;  %v4150_v20 = vcombine.low %v309_v16, %v309_v16 }
  0x59   : > { %v579_v25 = vshll.u32 %v4150_v20, 16  ;;  %v716_v38 = vrot.slane %v4150_v20, 1 }
  0x5a   : > { %783 = vrot.lane.b32.xlu1 %v4760_v31, %s4586_s30 }
  0x5b   : > { %781 = vrot.lane.b32.xlu0 %v4734_v13, %s4586_s30  ;;  %v581_v28 = vrot.slane %v579_v25, 1  ;;  %v717_v43 = vsel %vm6377_vm0, %v715_v36, %v716_v38 }
  0x5d   : > { %v582_v30 = vsel %vm6376_vm1, %v577_v27, %v581_v28 }
  0x5e   : > { %830 = vrot.lane.b32.xlu1 %v546_v47, %s4590_s11 }
  0x5f   : > { %828 = vrot.lane.b32.xlu0 %v534_v26, %s4590_s11 }
  0x62   : > { %865 = vrot.lane.b32.xlu1 %v708_v51, %s4587_s8 }
  0x63   : > { %863 = vrot.lane.b32.xlu0 %v705_v33, %s4587_s8 }
  0x66   : > { %902 = vrot.lane.b32.xlu1 %v4774_v44, %s4591_s12 }
  0x67   : > { %900 = vrot.lane.b32.xlu0 %v4760_v31, %s4591_s12 }
  0x6a   : > { %949 = vrot.lane.b32.xlu1 %v558_v57, %s4592_s13 }
  0x6b   : > { %947 = vrot.lane.b32.xlu0 %v546_v47, %s4592_s13 }
  0x6e   : > { %667 = vrot.lane.b32.xlu1 %v546_v47, %s4589_s10 }
  0x6f   : > { %982 = vrot.lane.b32.xlu0 %v708_v51, %s4593_s14 }
  0x72   : > { %669 = vrot.lane.b32.xlu1 %v558_v57, %s4589_s10 }
  0x73   : > { %984 = vrot.lane.b32.xlu0 %v711_v1, %s4593_s14 }
  0x76   : > { %750 = vrot.lane.b32.xlu1 %v711_v1, %s4588_s9 }
  0x77   : > { %748 = vrot.lane.b32.xlu0 %v708_v51, %s4588_s9  ;;  %v591_v51 = vshll.u32 %v4151_v45, 16  ;;  %v721_v45 = vrot.slane %v4859_v62, 1 }
  0x79   : > { %v593_v61 = vrot.slane %v591_v51, 1 }
  0x7a   : > { %787 = vrot.lane.b32.xlu1 %v4800_v63, %s4586_s30 }
  0x7b   : > { %785 = vrot.lane.b32.xlu0 %v4774_v44, %s4586_s30  ;;  %v594_v9 = vsel %vm6376_vm1, %v589_v60, %v593_v61 }
  0x7e   : > { %834 = vrot.lane.b32.xlu1 %v570_v18, %s4590_s11 }
  0x7f   : > { %832 = vrot.lane.b32.xlu0 %v558_v57, %s4590_s11 }
  0x82   : > { %869 = vrot.lane.b32.xlu1 %v714_v22, %s4587_s8 }
  0x83   : > { %867 = vrot.lane.b32.xlu0 %v711_v1, %s4587_s8  ;;  %v315_v1 = vld [vmem:[%s4649_s29 + $0x8c] sm:$0x1] }
  0x84   : > { %v776_v26 = vpop.permute.xlu1 %775  ;;  %v4152_v10 = vcombine.low %v315_v1, %v315_v1 }
  0x85   : > { %v774_v29 = vpop.permute.xlu0 %773 }
  0x86   : > { %906 = vrot.lane.b32.xlu1 %v4814_v15, %s4591_s12  ;;  %v603_v23 = vshll.u32 %v4152_v10, 16  ;;  %v722_v46 = vrot.slane %v4152_v10, 1 }
  0x87   : > { %904 = vrot.lane.b32.xlu0 %v4800_v63, %s4591_s12 }
  0x88   : > { %v737_v33 = vpop.permute.xlu1 %736  ;;  %v723_v51 = vsel %vm6377_vm0, %v721_v45, %v722_v46 }
  0x89   : > { %v856_v32 = vpop.permute.xlu0 %855 }
  0x8a   : > { %953 = vrot.lane.b32.xlu1 %v582_v30, %s4592_s13 }
  0x8b   : > { %951 = vrot.lane.b32.xlu0 %v570_v18, %s4592_s13 }
  0x8c   : > { %v739_v40 = vpop.permute.xlu1 %738 }
  0x8d   : > { %v656_v41 = vpop.permute.xlu0 %655 }
  0x8e   : > { %671 = vrot.lane.b32.xlu1 %v570_v18, %s4589_s10  ;;  %v1008_v52 = vsel %vm1006_vm3, %v4661_v8, %v656_v41 }
  0x8f   : > { %986 = vrot.lane.b32.xlu0 %v714_v22, %s4593_s14  ;;  %v1041_v59 = vsel %vm1039_vm4, %v1008_v52, %v737_v33  ;;  %v4153_v52 = vcombine.low %v318_v50, %v318_v50  ;;  %v322_v50 = vld [vmem:[%s4649_s29 + $0xa8] sm:$0xf] }
  0x90   : > { %v858_v47 = vpop.permute.xlu1 %857  ;;  %v1074_v4 = vsel %vm1072_vm5, %v1041_v59, %v774_v29 }
  0x91   : > { %v658_v48 = vpop.permute.xlu0 %657  ;;  %v615_v59 = vshll.u32 %v4153_v52, 16 }
  0x92   : > { %673 = vrot.lane.b32.xlu1 %v582_v30, %s4589_s10  ;;  %v1010_v57 = vsel %vm1006_vm3, %v4658_v6, %v658_v48  ;;  %v718_v6 = vrot.slane %v4840_v39, 1 }
  0x93   : > { %988 = vrot.lane.b32.xlu0 %v717_v43, %s4593_s14  ;;  %v1043_v2 = vsel %vm1039_vm4, %v1010_v57, %v739_v40 }
  0x94   : > { %v823_v53 = vpop.permute.xlu1 %822  ;;  %v1076_v12 = vsel %vm1072_vm5, %v1043_v2, %v776_v26  ;;  %v720_v18 = vsel %vm6377_vm0, %v718_v6, %v719_v5  ;;  %v617_v2 = vrot.slane %v615_v59, 1 }
  0x95   : > { %v821_v54 = vpop.permute.xlu0 %820  ;;  %v1109_v20 = vsel %vm1105_vm6, %v1076_v12, %v823_v53 }
  0x96   : > { %754 = vrot.lane.b32.xlu1 %v717_v43, %s4588_s9  ;;  %v1107_v7 = vsel %vm1105_vm6, %v1074_v4, %v821_v54  ;;  %v1142_v28 = vsel %vm1138_vm7, %v1109_v20, %v858_v47 }
  0x97   : > { %752 = vrot.lane.b32.xlu0 %v714_v22, %s4588_s9  ;;  %v1140_v17 = vsel %vm1138_vm7, %v1107_v7, %v856_v32  ;;  %v600_v22 = vrot.slane %v598_v11, 1  ;;  %v605_v32 = vrot.slane %v603_v23, 1  ;;  %v321_v7 = vld [vmem:[%s4649_s29 + $0xa4] sm:$0x1]  ;;  %v725_v11 = vrot.slane %v4153_v52, 1 }
  0x98   : > { %v895_v8 = vpop.permute.xlu1 %894 }
  0x99   : > { %v893_v0 = vpop.permute.xlu0 %892  ;;  %v1175_v29 = vsel %vm1171_vm8, %v1142_v28, %v895_v8  ;;  %v319_v8 = vld [vmem:[%s4649_s29 + $0x9c] sm:$0xf] }
  0x9a   : > { %791 = vrot.lane.b32.xlu1 %v4840_v39, %s4586_s30  ;;  %v1173_v21 = vsel %vm1171_vm8, %v1140_v17, %v893_v0  ;;  %v320_v0 = vld [vmem:[%s4649_s29 + $0xa0] sm:$0xf] }
  0x9b   : > { %789 = vrot.lane.b32.xlu0 %v4814_v15, %s4586_s30  ;;  %v4914_v4 = vcombine.low %v319_v8, %v320_v0 }
  0x9c   : > { %v942_v14 = vpop.permute.xlu1 %941 }
  0x9d   : > { %v940_v16 = vpop.permute.xlu0 %939  ;;  %v1208_v33 = vsel %vm1204_vm9, %v1175_v29, %v942_v14  ;;  %v622_v17 = vshll.u32 %v4914_v4, 16  ;;  %v727_v52 = vrot.slane %v4914_v4, 1 }
  0x9e   : > { %838 = vrot.lane.b32.xlu1 %v594_v9, %s4590_s11  ;;  %v1206_v24 = vsel %vm1204_vm9, %v1173_v21, %v940_v16  ;;  %v4154_v16 = vcombine.low %v321_v7, %v321_v7 }
  0x9f   : > { %836 = vrot.lane.b32.xlu0 %v582_v30, %s4590_s11  ;;  %v601_v30 = vor.u32 %v600_v22, %v596_v19 }
  0xa0   : > { %v660_v25 = vpop.permute.xlu1 %659 }
  0xa1   : > { %v975_v26 = vpop.permute.xlu0 %974  ;;  %v606_v38 = vsel %vm6376_vm1, %v601_v30, %v605_v32 }
  0xa2   : > { %v1239_v27 = vsel %vm1237_vm10, %v1206_v24, %v975_v26  ;;  %873 = vrot.lane.b32.xlu1 %v720_v18, %s4587_s8  ;;  %v620_v24 = vshrl.u32 %v4914_v4, 16  ;;  %v624_v26 = vrot.slane %v622_v17, 1 }
  0xa3   : > { %871 = vrot.lane.b32.xlu0 %v717_v43, %s4587_s8  ;;  %4350 = vmatprep.mubr.msk.bf16.mxu0 %vm6378_vm11, %v1239_v27  ;;  %v317_v43 = vld [vmem:[%s4649_s29 + $0x94] sm:$0xf]  ;;  %v627_v27 = vshll.u32 %v4154_v16, 16 }
  0xa4   : > { %v662_v34 = vpop.permute.xlu1 %661  ;;  %v4900_v47 = vcombine.low %v316_v42, %v317_v43 }
  0xa5   : > { %v977_v35 = vpop.permute.xlu0 %976 }
  0xa6   : > { %v1241_v36 = vsel %vm1237_vm10, %v1208_v33, %v977_v35  ;;  %910 = vrot.lane.b32.xlu1 %v4859_v62, %s4591_s12  ;;  %v610_v53 = vshll.u32 %v4900_v47, 16  ;;  %v608_v56 = vshrl.u32 %v4900_v47, 16  ;;  %v724_v10 = vrot.slane %v4900_v47, 1 }
  0xa7   : > { %908 = vrot.lane.b32.xlu0 %v4840_v39, %s4591_s12  ;;  %4351 = vmatmul.mubr.msk.bf16.vlgmr.msra.gmra.mxu0 %vm6378_vm11, %v1241_v36 }
  0xa8   : > { %v743_v40 = vpop.permute.xlu1 %742  ;;  %v612_v57 = vrot.slane %v610_v53, 1  ;;  %v726_v23 = vsel %vm6377_vm0, %v724_v10, %v725_v11  ;;  %v728_v53 = vrot.slane %v4154_v16, 1  ;;  %v326_v10 = vld [vmem:[%s4649_s29 + $0xb8] sm:$0xf] }
  0xa9   : > { %v741_v41 = vpop.permute.xlu0 %740 }
  0xaa   : > { %957 = vrot.lane.b32.xlu1 %v606_v38, %s4592_s13  ;;  %v613_v1 = vor.u32 %v612_v57, %v608_v56  ;;  %v324_v57 = vld [vmem:[%s4649_s29 + $0xb0] sm:$0x1]  ;;  %v729_v59 = vsel %vm6377_vm0, %v727_v52, %v728_v53 }
  0xab   : > { %955 = vrot.lane.b32.xlu0 %v594_v9, %s4592_s13 }
  0xac   : > { %v780_v48 = vpop.permute.xlu1 %779  ;;  %v618_v14 = vsel %vm6376_vm1, %v613_v1, %v617_v2 }
  0xad   : > { %v778_v49 = vpop.permute.xlu0 %777 }
  0xae   : > { %675 = vrot.lane.b32.xlu1 %v594_v9, %s4589_s10  ;;  %v1012_v9 = vsel %vm1006_vm3, %v4654_v3, %v660_v25 }
  0xaf   : > { %990 = vrot.lane.b32.xlu0 %v720_v18, %s4593_s14  ;;  %v1045_v12 = vsel %vm1039_vm4, %v1012_v9, %v741_v41  ;;  %v325_v9 = vld [vmem:[%s4649_s29 + $0xb4] sm:$0xf] }
  0xb0   : > { %v827_v54 = vpop.permute.xlu1 %826  ;;  %v1078_v3 = vsel %vm1072_vm5, %v1045_v12, %v778_v49 }
  0xb1   : > { %v825_v55 = vpop.permute.xlu0 %824 }
  0xb2   : > { %677 = vrot.lane.b32.xlu1 %v606_v38, %s4589_s10  ;;  %v1111_v21 = vsel %vm1105_vm6, %v1078_v3, %v825_v55 }
  0xb3   : > { %992 = vrot.lane.b32.xlu0 %v723_v51, %s4593_s14 }
  0xb4   : > { %v862_v60 = vpop.permute.xlu1 %861 }
  0xb5   : > { %v860_v61 = vpop.permute.xlu0 %859 }
  0xb6   : > { %758 = vrot.lane.b32.xlu1 %v723_v51, %s4588_s9  ;;  %v1144_v22 = vsel %vm1138_vm7, %v1111_v21, %v860_v61 }
  0xb7   : > { %756 = vrot.lane.b32.xlu0 %v720_v18, %s4588_s9  ;;  %v1014_v18 = vsel %vm1006_vm3, %v4685_v37, %v662_v34 }
  0xb8   : > { %v899_v6 = vpop.permute.xlu1 %898  ;;  %v1047_v25 = vsel %vm1039_vm4, %v1014_v18, %v743_v40  ;;  %v629_v40 = vrot.slane %v627_v27, 1  ;;  %v327_v18 = vld [vmem:[%s4649_s29 + $0xbc] sm:$0x1] }
  0xb9   : > { %v897_v5 = vpop.permute.xlu0 %896  ;;  %v1080_v28 = vsel %vm1072_vm5, %v1047_v25, %v780_v48 }
  0xba   : > { %795 = vrot.lane.b32.xlu1 %v4900_v47, %s4586_s30  ;;  %v1177_v37 = vsel %vm1171_vm8, %v1144_v22, %v897_v5  ;;  %v1113_v33 = vsel %vm1105_vm6, %v1080_v28, %v827_v54 }
  0xbb   : > { %793 = vrot.lane.b32.xlu0 %v4859_v62, %s4586_s30  ;;  %v1146_v35 = vsel %vm1138_vm7, %v1113_v33, %v862_v60  ;;  %v4155_v60 = vcombine.low %v324_v57, %v324_v57  ;;  %v328_v57 = vld [vmem:[%s4649_s29 + $0xc0] sm:$0xf] }
  0xbc   : > { %v946_v19 = vpop.permute.xlu1 %945  ;;  %v1179_v36 = vsel %vm1171_vm8, %v1146_v35, %v899_v6 }
  0xbd   : > { %v944_v20 = vpop.permute.xlu0 %943  ;;  %v1212_v41 = vsel %vm1204_vm9, %v1179_v36, %v946_v19  ;;  %v639_v6 = vshll.u32 %v4155_v60, 16 }
  0xbe   : > { %842 = vrot.lane.b32.xlu1 %v618_v14, %s4590_s11  ;;  %v1210_v29 = vsel %vm1204_vm9, %v1177_v37, %v944_v20  ;;  %v731_v20 = vrot.slane %v4155_v60, 1 }
  0xbf   : > { %840 = vrot.lane.b32.xlu0 %v606_v38, %s4590_s11  ;;  %v625_v38 = vor.u32 %v624_v26, %v620_v24  ;;  %v641_v12 = vrot.slane %v639_v6, 1 }
  0xc0   : > { %v664_v30 = vpop.permute.xlu1 %663 }
  0xc1   : > { %v979_v32 = vpop.permute.xlu0 %978  ;;  %v630_v46 = vsel %vm6376_vm1, %v625_v38, %v629_v40  ;;  %v1016_v3 = vsel %vm1006_vm3, %v4709_v58, %v664_v30 }
  0xc2   : > { %v1243_v34 = vsel %vm1237_vm10, %v1210_v29, %v979_v32  ;;  %877 = vrot.lane.b32.xlu1 %v726_v23, %s4587_s8 }
  0xc3   : > { %875 = vrot.lane.b32.xlu0 %v723_v51, %s4587_s8  ;;  %4354 = vmatprep.mubr.msk.bf16.mxu0 %vm6378_vm11, %v1243_v34  ;;  %v323_v51 = vld [vmem:[%s4649_s29 + $0xac] sm:$0xf] }
  0xc4   : > { %v666_v42 = vpop.permute.xlu1 %665  ;;  %v4960_v54 = vcombine.low %v322_v50, %v323_v51 }
  0xc5   : > { %v981_v43 = vpop.permute.xlu0 %980  ;;  %v1018_v58 = vsel %vm1006_vm3, %v4734_v13, %v666_v42 }
  0xc6   : > { %v1245_v45 = vsel %vm1237_vm10, %v1212_v41, %v981_v43  ;;  %914 = vrot.lane.b32.xlu1 %v4914_v4, %s4591_s12  ;;  %v634_v61 = vshll.u32 %v4960_v54, 16  ;;  %v632_v1 = vshrl.u32 %v4960_v54, 16  ;;  %v730_v19 = vrot.slane %v4960_v54, 1 }
  0xc7   : > { %912 = vrot.lane.b32.xlu0 %v4900_v47, %s4591_s12  ;;  %4355 = vmatmul.mubr.msk.bf16.gmra.mxu0 %vm6378_vm11, %v1245_v45 }
  0xc8   : > { %v747_v48 = vpop.permute.xlu1 %746  ;;  %v636_v2 = vrot.slane %v634_v61, 1  ;;  %v5000_v29 = vsel %vm6377_vm0, %v730_v19, %v731_v20  ;;  %v1664_v20 = vld [vmem:[#allocation2 + $0x20] sm:$0x1] }
  0xc9   : > { %v745_v49 = vpop.permute.xlu0 %744  ;;  %v1051_v13 = vsel %vm1039_vm4, %v1018_v58, %v747_v48  ;;  %v1661_v58 = vld [vmem:[#allocation2 + $0x14] sm:$0x1] }
  0xca   : > { %961 = vrot.lane.b32.xlu1 %v630_v46, %s4592_s13  ;;  %v637_v11 = vor.u32 %v636_v2, %v632_v1  ;;  %v1049_v21 = vsel %vm1039_vm4, %v1016_v3, %v745_v49  ;;  %v330_v2 = vld [vmem:[%s4649_s29 + $0xc8] sm:$0x1] }
  0xcb   : > { %959 = vrot.lane.b32.xlu0 %v618_v14, %s4592_s13 }
  0xcc   : > { %v784_v55 = vpop.permute.xlu1 %783  ;;  %v4986_v22 = vsel %vm6376_vm1, %v637_v11, %v641_v12  ;;  %v4158_v12 = vcombine.low %v330_v2, %v330_v2 }
  0xcd   : > { %v782_v56 = vpop.permute.xlu0 %781  ;;  %v1084_v35 = vsel %vm1072_vm5, %v1051_v13, %v784_v55 }
  0xce   : > { %679 = vrot.lane.b32.xlu1 %v618_v14, %s4589_s10  ;;  %v4974_v14 = vcombine.low %v325_v9, %v326_v10  ;;  %v1082_v25 = vsel %vm1072_vm5, %v1049_v21, %v782_v56  ;;  %v4594_v9 = vmov 0   ;;  %v1611_v10 = vld [vmem:[#allocation2 + $0xc] sm:$0x1]  ;;  %v1665_v21 = vsel %vm5071_vm14, 0, %v1664_v20 }
  0xcf   : > { %994 = vrot.lane.b32.xlu0 %v726_v23, %s4593_s14  ;;  %1599 = vst.msk [vmem:[#allocation2] sm:$0xf] %vm1598_vm12, %v4594_v9  ;;  %1600 = vst.msk [vmem:[#allocation2 + $0x4] sm:$0xf] %vm1598_vm12, %v4594_v9 }
  0xd0   : > { %v831_v8 = vpop.permute.xlu1 %830  ;;  %v646_v24 = vshll.u32 %v4974_v14, 16  ;;  %v644_v30 = vshrl.u32 %v4974_v14, 16  ;;  %v733_v60 = vrot.slane %v4974_v14, 1  ;;  %1602 = vst.msk [vmem:[#allocation2 + $0x8] sm:$0x1] %vm1601_vm13, %v4594_v9 }
  0xd1   : > { %v829_v0 = vpop.permute.xlu0 %828  ;;  %v1117_v41 = vsel %vm1105_vm6, %v1084_v35, %v831_v8  ;;  %1604 = vst.msk [vmem:[#allocation2 + $0xcc] sm:$0xf] %vm1598_vm12, %v4594_v9  ;;  %1605 = vst.msk [vmem:[#allocation2 + $0xd0] sm:$0xf] %vm1598_vm12, %v4594_v9 }
  0xd2   : > { %681 = vrot.lane.b32.xlu1 %v630_v46, %s4589_s10  ;;  %v1115_v27 = vsel %vm1105_vm6, %v1082_v25, %v829_v0  ;;  %v648_v33 = vrot.slane %v646_v24, 1  ;;  %1606 = vst.msk [vmem:[#allocation2 + $0xd4] sm:$0x1] %vm1601_vm13, %v4594_v9  ;;  %1666 = vst [vmem:[#allocation2 + $0x20] sm:$0x1] %v1665_v21  ;;  %v816_v24 = vshll.u32 %v4158_v12, 16 }
  0xd3   : > { %996 = vrot.lane.b32.xlu0 %v729_v59, %s4593_s14  ;;  %vm5264_vm13 = vmand %vm1598_vm12, %vm1659_vm2  ;;  %vm6385_vm2 = vsmask.f32 256 }
  0xd4   : > { %v866_v5 = vpop.permute.xlu1 %865 }
  0xd5   : > { %v864_v7 = vpop.permute.xlu0 %863  ;;  %v1150_v43 = vsel %vm1138_vm7, %v1117_v41, %v866_v5  ;;  %v1614_v5 = vld [vmem:[#allocation2 + $0x18] sm:$0x1]  ;;  %v853_v41 = vrot.slane %v4158_v12, 1 }
  0xd6   : > { %762 = vrot.lane.b32.xlu1 %v729_v59, %s4588_s9  ;;  %v1148_v28 = vsel %vm1138_vm7, %v1115_v27, %v864_v7  ;;  %v1615_v7 = vsel %vm5049_vm15, 0, %v1614_v5  ;;  %v5087_v27 = vld [vmem:[%s4649_s29 + $0xcc] sm:$0xff]  }
  0xd7   : > { %760 = vrot.lane.b32.xlu0 %v726_v23, %s4588_s9  ;;  %v4988_v23 = vcombine.low %v327_v18, %v327_v18  ;;  %1616 = vst [vmem:[#allocation2 + $0x18] sm:$0x1] %v1615_v7  ;;  %v930_v35 = vshll.u32 %v5087_v27, 16 }
  0xd8   : > { %v903_v16 = vpop.permute.xlu1 %902 }
  0xd9   : > { %v901_v17 = vpop.permute.xlu0 %900  ;;  %v651_v34 = vshll.u32 %v4988_v23, 16  ;;  %v1183_v45 = vsel %vm1171_vm8, %v1150_v43, %v903_v16  ;;  %v734_v61 = vrot.slane %v4988_v23, 1 }
  0xda   : > { %799 = vrot.lane.b32.xlu1 %v4960_v54, %s4586_s30  ;;  %v1181_v32 = vsel %vm1171_vm8, %v1148_v28, %v901_v17  ;;  %v1612_v17 = vsel %vm5049_vm15, 0, %v1611_v10 }
  0xdb   : > { %797 = vrot.lane.b32.xlu0 %v4914_v4, %s4586_s30  ;;  %v653_v48 = vrot.slane %v651_v34, 1  ;;  %v735_v11 = vsel %vm6377_vm0, %v733_v60, %v734_v61  ;;  %1613 = vst [vmem:[#allocation2 + $0xc] sm:$0x1] %v1612_v17  ;;  %v4478_v34 = vld [vmem:[%s4649_s29 + $0xd4] ss:$0 sps:$4 sm:$0x11]  }
  0xdc   : > { %v950_v37 = vpop.permute.xlu1 %949 }
  0xdd   : > { %v948_v26 = vpop.permute.xlu0 %947  ;;  %v1216_v49 = vsel %vm1204_vm9, %v1183_v45, %v950_v37 }
  0xde   : > { %846 = vrot.lane.b32.xlu1 %v4986_v22, %s4590_s11  ;;  %v1214_v36 = vsel %vm1204_vm9, %v1181_v32, %v948_v26  ;;  %v1662_v26 = vsel %vm5071_vm14, 0, %v1661_v58 }
  0xdf   : > { %844 = vrot.lane.b32.xlu0 %v630_v46, %s4590_s11  ;;  %v649_v46 = vor.u32 %v648_v33, %v644_v30  ;;  %1663 = vst [vmem:[#allocation2 + $0x14] sm:$0x1] %v1662_v26  ;;  %v818_v30 = vrot.slane %v816_v24, 1 }
  0xe0   : > { %v5008_v38 = vpop.permute.xlu1 %667 }
  0xe1   : > { %v983_v40 = vpop.permute.xlu0 %982  ;;  %v5028_v53 = vsel %vm6376_vm1, %v649_v46, %v653_v48  ;;  %v1020_v33 = vsel %vm1006_vm3, %v4760_v31, %v5008_v38  ;;  %v928_v48 = vshrl.u32 %v5087_v27, 16 }
  0xe2   : > { %v1247_v42 = vsel %vm1237_vm10, %v1214_v36, %v983_v40  ;;  %881 = vrot.lane.b32.xlu1 %v5000_v29, %s4587_s8 }
  0xe3   : > { %879 = vrot.lane.b32.xlu0 %v729_v59, %s4587_s8  ;;  %4358 = vmatprep.mubr.msk.bf16.mxu0 %vm6378_vm11, %v1247_v42  ;;  %v329_v59 = vld [vmem:[%s4649_s29 + $0xc4] sm:$0xf] }
  0xe4   : > { %v5019_v50 = vpop.permute.xlu1 %669  ;;  %v5042_v8 = vcombine.low %v328_v57, %v329_v59 }
  0xe5   : > { %v985_v51 = vpop.permute.xlu0 %984  ;;  %v1022_v31 = vsel %vm1006_vm3, %v4774_v44, %v5019_v50 }
  0xe6   : > { %v1249_v52 = vsel %vm1237_vm10, %v1216_v49, %v985_v51  ;;  %918 = vrot.lane.b32.xlu1 %v4974_v14, %s4591_s12  ;;  %v811_v16 = vshll.u32 %v5042_v8, 16  ;;  %v852_v40 = vrot.slane %v5042_v8, 1  ;;  %v932_v49 = vrot.slane %v930_v35, 1 }
  0xe7   : > { %916 = vrot.lane.b32.xlu0 %v4960_v54, %s4591_s12  ;;  %4359 = vmatmul.mubr.msk.bf16.gmra.mxu0 %vm6378_vm11, %v1249_v52  ;;  %v935_v51 = vshll.u32 %v4478_v34, 16 }
  0xe8   : > { %v5030_v55 = vpop.permute.xlu1 %750  ;;  %v813_v23 = vrot.slane %v811_v16, 1  ;;  %v854_v52 = vsel %vm6377_vm0, %v852_v40, %v853_v41 }
  0xe9   : > { %v5032_v56 = vpop.permute.xlu0 %748  ;;  %v1055_v44 = vsel %vm1039_vm4, %v1022_v31, %v5030_v55  ;;  %v933_v55 = vor.u32 %v932_v49, %v928_v48  ;;  %v937_v5 = vrot.slane %v935_v51, 1 }
  0xea   : > { %965 = vrot.lane.b32.xlu1 %v5028_v53, %s4592_s13 }
  0xeb   : > { %963 = vrot.lane.b32.xlu0 %v4986_v22, %s4592_s13 }
  0xec   : > { %v5044_v0 = vpop.permute.xlu1 %787 }
  0xed   : > { %v786_v1 = vpop.permute.xlu0 %785  ;;  %v1088_v57 = vsel %vm1072_vm5, %v1055_v44, %v5044_v0  ;;  %v4480_v0 = vld [vmem:[#allocation2 + $0x8] ss:$0 sps:$4 sm:$0x11]  }
  0xee   : > { %683 = vrot.lane.b32.xlu1 %v4986_v22, %s4589_s10  ;;  %v809_v22 = vshrl.u32 %v5042_v8, 16 }
  0xef   : > { %998 = vrot.lane.b32.xlu0 %v5000_v29, %s4593_s14 }
  0xf0   : > { %v835_v18 = vpop.permute.xlu1 %834  ;;  %v814_v28 = vor.u32 %v813_v23, %v809_v22  ;;  %v2431_v22 = vshll.u32 %v4480_v0, 16 }
  0xf1   : > { %v833_v3 = vpop.permute.xlu0 %832 }
  0xf2   : > { %685 = vrot.lane.b32.xlu1 %v5028_v53, %s4589_s10  ;;  %v819_v36 = vsel %vm6376_vm1, %v814_v28, %v818_v30  ;;  %v1620_v28 = vld [vmem:[#allocation2 + $0x30] sm:$0x1] }
  0xf3   : > { %1000 = vrot.lane.b32.xlu0 %v735_v11, %s4593_s14 }
  0xf4   : > { %v870_v25 = vpop.permute.xlu1 %869 }
  0xf5   : > { %v868_v37 = vpop.permute.xlu0 %867 }
  0xf6   : > { %766 = vrot.lane.b32.xlu1 %v735_v11, %s4588_s9 }
  0xf7   : > { %764 = vrot.lane.b32.xlu0 %v5000_v29, %s4588_s9  ;;  %v1053_v29 = vsel %vm1039_vm4, %v1020_v33, %v5032_v56  ;;  %v4479_v56 = vld [vmem:[#allocation2] sm:$0xff]  }
  0xf8   : > { %v907_v13 = vpop.permute.xlu1 %906  ;;  %v1086_v38 = vsel %vm1072_vm5, %v1053_v29, %v786_v1  ;;  %v2426_v9 = vshll.u32 %v4479_v56, 16  ;;  %v2424_v20 = vshrl.u32 %v4479_v56, 16  ;;  %v1617_v33 = vld [vmem:[#allocation2 + $0x24] sm:$0x1] }
  0xf9   : > { %v905_v32 = vpop.permute.xlu0 %904  ;;  %v1119_v45 = vsel %vm1105_vm6, %v1086_v38, %v833_v3  ;;  %v972_v3 = vrot.slane %v4478_v34, 1  ;;  %v1618_v29 = vsel %vm5049_vm15, 0, %v1617_v33 }
  0xfa   : > { %803 = vrot.lane.b32.xlu1 %v5042_v8, %s4586_s30  ;;  %v1152_v46 = vsel %vm1138_vm7, %v1119_v45, %v868_v37  ;;  %v2428_v21 = vrot.slane %v2426_v9, 1  ;;  %1619 = vst [vmem:[#allocation2 + $0x24] sm:$0x1] %v1618_v29 }
  0xfb   : > { %801 = vrot.lane.b32.xlu0 %v4974_v14, %s4586_s30  ;;  %v1185_v50 = vsel %vm1171_vm8, %v1152_v46, %v905_v32  ;;  %v2648_v32 = vrot.slane %v4480_v0, 1 }
  0xfc   : > { %v954_v42 = vpop.permute.xlu1 %953 }
  0xfd   : > { %v952_v43 = vpop.permute.xlu0 %951 }
  0xfe   : > { %850 = vrot.lane.b32.xlu1 %v819_v36, %s4590_s11  ;;  %v1218_v59 = vsel %vm1204_vm9, %v1185_v50, %v952_v43 }
  0xff   : > { %848 = vrot.lane.b32.xlu0 %v5028_v53, %s4590_s11  ;;  %v1121_v53 = vsel %vm1105_vm6, %v1088_v57, %v835_v18  ;;  %v971_v18 = vrot.slane %v5087_v27, 1 }
 0x100   : > { %v672_v60 = vpop.permute.xlu1 %671  ;;  %v1154_v2 = vsel %vm1138_vm7, %v1121_v53, %v870_v25  ;;  %v2429_v25 = vor.u32 %v2428_v21, %v2424_v20 }
 0x101   : > { %v987_v61 = vpop.permute.xlu0 %986  ;;  %v1187_v7 = vsel %vm1171_vm8, %v1154_v2, %v907_v13  ;;  %v973_v58 = vsel %vm6377_vm0, %v971_v18, %v972_v3  ;;  %v2647_v13 = vrot.slane %v4479_v56, 1  ;;  %v1024_v48 = vsel %vm1006_vm3, %v4800_v63, %v672_v60  ;;  %v1626_v18 = vld [vmem:[#allocation2 + $0x48] sm:$0x1] }
 0x102   : > { %v1251_v1 = vsel %vm1237_vm10, %v1218_v59, %v987_v61  ;;  %885 = vrot.lane.b32.xlu1 %v854_v52, %s4587_s8  ;;  %v1220_v10 = vsel %vm1204_vm9, %v1187_v7, %v954_v42  ;;  %v1667_v42 = vld [vmem:[#allocation2 + $0x2c] sm:$0x1]  ;;  %v1627_v3 = vsel %vm5049_vm15, 0, %v1626_v18 }
 0x103   : > { %883 = vrot.lane.b32.xlu0 %v735_v11, %s4587_s8  ;;  %4362 = vmatprep.mubr.msk.bf16.mxu0 %vm6378_vm11, %v1251_v1  ;;  %v938_v11 = vsel %vm6376_vm1, %v933_v55, %v937_v5  ;;  %v2649_v41 = vsel %vm6377_vm0, %v2647_v13, %v2648_v32  ;;  %v1668_v43 = vsel %vm5071_vm14, 0, %v1667_v42  ;;  %1628 = vst [vmem:[#allocation2 + $0x48] sm:$0x1] %v1627_v3 }
 0x104   : > { %v674_v12 = vpop.permute.xlu1 %673  ;;  %1669 = vst [vmem:[#allocation2 + $0x2c] sm:$0x1] %v1668_v43 }
 0x105   : > { %v989_v16 = vpop.permute.xlu0 %988  ;;  %v1026_v51 = vsel %vm1006_vm3, %v4814_v15, %v674_v12 }
 0x106   : > { %v1253_v17 = vsel %vm1237_vm10, %v1220_v10, %v989_v16  ;;  %922 = vrot.lane.b32.xlu1 %v5087_v27, %s4591_s12  ;;  %v1621_v27 = vsel %vm5049_vm15, 0, %v1620_v28 }
 0x107   : > { %920 = vrot.lane.b32.xlu0 %v5042_v8, %s4591_s12  ;;  %4363 = vmatmul.mubr.msk.bf16.gmra.mxu0 %vm6378_vm11, %v1253_v17  ;;  %v2433_v8 = vrot.slane %v2431_v22, 1  ;;  %1622 = vst [vmem:[#allocation2 + $0x30] sm:$0x1] %v1621_v27  ;;  %v1623_v22 = vld [vmem:[#allocation2 + $0x3c] sm:$0x1] }
 0x108   : > { %v755_v23 = vpop.permute.xlu1 %754 }
 0x109   : > { %v753_v24 = vpop.permute.xlu0 %752  ;;  %v2434_v30 = vsel %vm6376_vm1, %v2429_v25, %v2433_v8  ;;  %v1059_v59 = vsel %vm1039_vm4, %v1026_v51, %v755_v23  ;;  %v1624_v23 = vsel %vm5049_vm15, 0, %v1623_v22  ;;  %vm1805_vm1 = vsmask.f32 4368 }
 0x10a   : > { %969 = vrot.lane.b32.xlu1 %v938_v11, %s4592_s13  ;;  %v1057_v49 = vsel %vm1039_vm4, %v1024_v48, %v753_v24  ;;  %1625 = vst [vmem:[#allocation2 + $0x3c] sm:$0x1] %v1624_v23  ;;  %v1676_v24 = vld [vmem:[#allocation2 + $0x50] sm:$0x1]  ;;  %vm5276_vm0 = vmor %vm6385_vm2, %vm1805_vm1  ;;  %vm6388_vm1 = vcmask 1046528  }
 0x10b   : > { %967 = vrot.lane.b32.xlu0 %v819_v36, %s4592_s13  ;;  %v1670_v36 = vld [vmem:[#allocation2 + $0x38] sm:$0x1]  ;;  %v1677_v8 = vsel %vm5071_vm14, 0, %v1676_v24  ;;  %vm6389_vm2 = vmmov %vm6388_vm1 }
 0x10c   : > { %v792_v37 = vpop.permute.xlu1 %791  ;;  %v1671_v40 = vsel %vm5071_vm14, 0, %v1670_v36  ;;  %1678 = vst [vmem:[#allocation2 + $0x50] sm:$0x1] %v1677_v8 }
 0x10d   : > { %v790_v26 = vpop.permute.xlu0 %789  ;;  %1672 = vst [vmem:[#allocation2 + $0x38] sm:$0x1] %v1671_v40  ;;  %v1092_v53 = vsel %vm1072_vm5, %v1059_v59, %v792_v37  ;;  %v1673_v37 = vld [vmem:[#allocation2 + $0x44] sm:$0x1]  ;;  %v1632_v59 = vld [vmem:[#allocation2 + $0x60] sm:$0x1] }
 0x10e   : > { %1004 = vrot.lane.b32.xlu1 %v973_v58, %s4593_s14  ;;  %v1090_v44 = vsel %vm1072_vm5, %v1057_v49, %v790_v26  ;;  %v1674_v26 = vsel %vm5071_vm14, 0, %v1673_v37 }
 0x10f   : > { %1002 = vrot.lane.b32.xlu0 %v854_v52, %s4593_s14  ;;  %1675 = vst [vmem:[#allocation2 + $0x44] sm:$0x1] %v1674_v26 }
 0x110   : > { %v839_v34 = vpop.permute.xlu1 %838 }
 0x111   : > { %v837_v35 = vpop.permute.xlu0 %836  ;;  %v1125_v15 = vsel %vm1105_vm6, %v1092_v53, %v839_v34 }
 0x112   : > { %v1123_v56 = vsel %vm1105_vm6, %v1090_v44, %v837_v35 }
 0x113   : > { %2615 = vrot.lane.b32.xlu0 %v2434_v30, %s4589_s10 }
 0x114   : > { %v874_v31 = vpop.permute.xlu1 %873 }
 0x115   : > { %v872_v38 = vpop.permute.xlu0 %871  ;;  %v1158_v55 = vsel %vm1138_vm7, %v1125_v15, %v874_v31  ;;  %v1682_v15 = vld [vmem:[#allocation2 + $0x68] sm:$0x1] }
 0x116   : > { %v1156_v57 = vsel %vm1138_vm7, %v1123_v56, %v872_v38 }
 0x117   : > { %2695 = vrot.lane.b32.xlu0 %v2649_v41, %s4588_s9 }
 0x118   : > { %v911_v45 = vpop.permute.xlu1 %910 }
 0x119   : > { %v909_v46 = vpop.permute.xlu0 %908  ;;  %v1191_v5 = vsel %vm1171_vm8, %v1158_v55, %v911_v45 }
 0x11a   : > { %v1189_v61 = vsel %vm1171_vm8, %v1156_v57, %v909_v46 }
 0x11c   : > { %v958_v50 = vpop.permute.xlu1 %957 }
 0x11d   : > { %v956_v52 = vpop.permute.xlu0 %955  ;;  %v1224_v7 = vsel %vm1204_vm9, %v1191_v5, %v958_v50  ;;  %v1683_v5 = vsel %vm5071_vm14, 0, %v1682_v15 }
 0x11e   : > { %v1222_v63 = vsel %vm1204_vm9, %v1189_v61, %v956_v52  ;;  %v1633_v61 = vsel %vm5049_vm15, 0, %v1632_v59  ;;  %1684 = vst [vmem:[#allocation2 + $0x68] sm:$0x1] %v1683_v5 }
 0x11f   : > { %1634 = vst [vmem:[#allocation2 + $0x60] sm:$0x1] %v1633_v61 }
 0x120   : > { %v676_v60 = vpop.permute.xlu1 %675 }
 0x121   : > { %v991_v1 = vpop.permute.xlu0 %990  ;;  %v1028_v30 = vsel %vm1006_vm3, %v4840_v39, %v676_v60  ;;  %v1629_v60 = vld [vmem:[#allocation2 + $0x54] sm:$0x1] }
 0x122   : > { %v1255_v2 = vsel %vm1237_vm10, %v1222_v63, %v991_v1  ;;  %v1630_v1 = vsel %vm5049_vm15, 0, %v1629_v60  ;;  %v1635_v60 = vld [vmem:[#allocation2 + $0x6c] sm:$0x1] }
 0x123   : > { %4366 = vmatprep.mubr.msk.bf16.mxu0 %vm6378_vm11, %v1255_v2  ;;  %1631 = vst [vmem:[#allocation2 + $0x54] sm:$0x1] %v1630_v1 }
 0x124   : > { %v678_v0 = vpop.permute.xlu1 %677 }
 0x125   : > { %v993_v9 = vpop.permute.xlu0 %992  ;;  %v1030_v32 = vsel %vm1006_vm3, %v4859_v62, %v678_v0 }
 0x126   : > { %v1257_v10 = vsel %vm1237_vm10, %v1224_v7, %v993_v9  ;;  %v1679_v7 = vld [vmem:[#allocation2 + $0x5c] sm:$0x1] }
 0x127   : > { %4367 = vmatmul.mubr.msk.bf16.gmra.mxu0 %vm6378_vm11, %v1257_v10  ;;  %v1680_v0 = vsel %vm5071_vm14, 0, %v1679_v7  ;;  %v2136_v7 = vld [vmem:[#allocation2 + $0x18] sm:$0xf] }
 0x128   : > { %v759_v12 = vpop.permute.xlu1 %758  ;;  %1681 = vst [vmem:[#allocation2 + $0x5c] sm:$0x1] %v1680_v0 }
 0x129   : > { %v757_v16 = vpop.permute.xlu0 %756  ;;  %v1063_v40 = vsel %vm1039_vm4, %v1030_v32, %v759_v12  ;;  %v5232_v32 = vld [vmem:[%s6368_s2] ss:$0 sm:$0xff] }
 0x12a   : > { %v1061_v13 = vsel %vm1039_vm4, %v1028_v30, %v757_v16 }
 0x12c   : > { %v796_v17 = vpop.permute.xlu1 %795 }
 0x12d   : > { %v794_v11 = vpop.permute.xlu0 %793  ;;  %v1096_v31 = vsel %vm1072_vm5, %v1063_v40, %v796_v17 }
 0x12e   : > { %v1094_v33 = vsel %vm1072_vm5, %v1061_v13, %v794_v11 }
 0x130   : > { %v843_v20 = vpop.permute.xlu1 %842 }
 0x131   : > { %v841_v21 = vpop.permute.xlu0 %840  ;;  %v1129_v62 = vsel %vm1105_vm6, %v1096_v31, %v843_v20 }
 0x132   : > { %v1127_v29 = vsel %vm1105_vm6, %v1094_v33, %v841_v21 }
 0x134   : > { %v878_v58 = vpop.permute.xlu1 %877 }
 0x135   : > { %v876_v25 = vpop.permute.xlu0 %875  ;;  %v1162_v45 = vsel %vm1138_vm7, %v1129_v62, %v878_v58 }
 0x136   : > { %v1160_v36 = vsel %vm1138_vm7, %v1127_v29, %v876_v25 }
 0x138   : > { %v915_v28 = vpop.permute.xlu1 %914 }
 0x139   : > { %v913_v27 = vpop.permute.xlu0 %912  ;;  %v1195_v46 = vsel %vm1171_vm8, %v1162_v45, %v915_v28 }
 0x13a   : > { %v1193_v41 = vsel %vm1171_vm8, %v1160_v36, %v913_v27 }
 0x13c   : > { %v962_v34 = vpop.permute.xlu1 %961 }
 0x13d   : > { %v960_v35 = vpop.permute.xlu0 %959  ;;  %v1228_v48 = vsel %vm1204_vm9, %v1195_v46, %v962_v34  ;;  %v5238_v34 = vld [vmem:[%s6369_s3] ss:$0 sm:$0xff] }
 0x13e   : > { %v1226_v39 = vsel %vm1204_vm9, %v1193_v41, %v960_v35 }
 0x140   : > { %v680_v38 = vpop.permute.xlu1 %679 }
 0x141   : > { %v995_v42 = vpop.permute.xlu0 %994  ;;  %v1032_v12 = vsel %vm1006_vm3, %v4900_v47, %v680_v38  ;;  %v1638_v38 = vld [vmem:[#allocation2 + $0x78] sm:$0x1] }
 0x142   : > { %v1259_v43 = vsel %vm1237_vm10, %v1226_v39, %v995_v42 }
 0x143   : > { %4370 = vmatprep.mubr.msk.bf16.mxu0 %vm6378_vm11, %v1259_v43 }
 0x144   : > { %v682_v49 = vpop.permute.xlu1 %681 }
 0x145   : > { %v997_v51 = vpop.permute.xlu0 %996  ;;  %v1034_v17 = vsel %vm1006_vm3, %v4914_v4, %v682_v49 }
 0x146   : > { %v1261_v44 = vsel %vm1237_vm10, %v1228_v48, %v997_v51  ;;  %v1639_v48 = vsel %vm5049_vm15, 0, %v1638_v38 }
 0x147   : > { %4371 = vmatmul.mubr.msk.bf16.gmra.mxu0 %vm6378_vm11, %v1261_v44  ;;  %1640 = vst [vmem:[#allocation2 + $0x78] sm:$0x1] %v1639_v48 }
 0x148   : > { %v763_v50 = vpop.permute.xlu1 %762 }
 0x149   : > { %v761_v52 = vpop.permute.xlu0 %760  ;;  %v1067_v22 = vsel %vm1039_vm4, %v1034_v17, %v763_v50 }
 0x14a   : > { %v1065_v16 = vsel %vm1039_vm4, %v1032_v12, %v761_v52 }
 0x14c   : > { %v800_v56 = vpop.permute.xlu1 %799 }
 0x14d   : > { %v798_v57 = vpop.permute.xlu0 %797  ;;  %v1100_v24 = vsel %vm1072_vm5, %v1067_v22, %v800_v56  ;;  %v1685_v22 = vld [vmem:[#allocation2 + $0x74] sm:$0x1] }
 0x14e   : > { %v1098_v11 = vsel %vm1072_vm5, %v1065_v16, %v798_v57 }
 0x150   : > { %v847_v53 = vpop.permute.xlu1 %846 }
 0x151   : > { %v845_v63 = vpop.permute.xlu0 %844  ;;  %v1133_v4 = vsel %vm1105_vm6, %v1100_v24, %v847_v53 }
 0x152   : > { %v1131_v20 = vsel %vm1105_vm6, %v1098_v11, %v845_v63 }
 0x154   : > { %v882_v2 = vpop.permute.xlu1 %881 }
 0x155   : > { %v880_v55 = vpop.permute.xlu0 %879  ;;  %v1166_v37 = vsel %vm1138_vm7, %v1133_v4, %v882_v2 }
 0x156   : > { %v1164_v21 = vsel %vm1138_vm7, %v1131_v20, %v880_v55  ;;  %v2129_v20 = vld [vmem:[#allocation2 + $0xc] sm:$0xf] }
 0x158   : > { %v919_v9 = vpop.permute.xlu1 %918 }
 0x159   : > { %v917_v10 = vpop.permute.xlu0 %916  ;;  %v1199_v26 = vsel %vm1171_vm8, %v1166_v37, %v919_v9  ;;  %v1636_v9 = vsel %vm5049_vm15, 0, %v1635_v60  ;;  %v2140_v37 = vld [vmem:[#allocation2 + $0x20] sm:$0x1] }
 0x15a   : > { %v1197_v23 = vsel %vm1171_vm8, %v1164_v21, %v917_v10  ;;  %1637 = vst [vmem:[#allocation2 + $0x6c] sm:$0x1] %v1636_v9 }
 0x15c   : > { %v966_v18 = vpop.permute.xlu1 %965 }
 0x15d   : > { %v964_v3 = vpop.permute.xlu0 %963  ;;  %v1232_v28 = vsel %vm1204_vm9, %v1199_v26, %v966_v18 }
 0x15e   : > { %v1230_v47 = vsel %vm1204_vm9, %v1197_v23, %v964_v3  ;;  %v1688_v3 = vld [vmem:[#allocation2 + $0x80] sm:$0x1] }
 0x160   : > { %v5220_v58 = vpop.permute.xlu1 %683 }
 0x161   : > { %v999_v25 = vpop.permute.xlu0 %998 }
 0x162   : > { %v1263_v8 = vsel %vm1237_vm10, %v1230_v47, %v999_v25 }
 0x163   : > { %4374 = vmatprep.mubr.msk.bf16.mxu0 %vm6378_vm11, %v1263_v8 }
 0x164   : > { %v686_v27 = vpop.permute.xlu1 %685 }
 0x165   : > { %v1001_v30 = vpop.permute.xlu0 %1000  ;;  %v1038_v4 = vsel %vm1006_vm3, %v4974_v14, %v686_v27 }
 0x166   : > { %v1265_v13 = vsel %vm1237_vm10, %v1232_v28, %v1001_v30  ;;  %v1689_v28 = vsel %vm5071_vm14, 0, %v1688_v3  ;;  %v1686_v30 = vsel %vm5071_vm14, 0, %v1685_v22 }
 0x167   : > { %4375 = vmatmul.mubr.msk.bf16.gmra.mxu0 %vm6378_vm11, %v1265_v13  ;;  %v4352_v33 = vpop.f32.mrf.mxu0  ;;  %1690 = vst [vmem:[#allocation2 + $0x80] sm:$0x1] %v1689_v28  ;;  %1687 = vst [vmem:[#allocation2 + $0x74] sm:$0x1] %v1686_v30  ;;  %v1644_v28 = vld [vmem:[#allocation2 + $0x90] sm:$0x1] }
 0x168   : > { %v1497_v35 = vmul.f32 %v4352_v33, %v5232_v32  ;;  %v5241_v29 = vpop.permute.xlu1 %766 }
 0x169   : > { %v5243_v36 = vpop.permute.xlu0 %764  ;;  %v1361_v40 = vpop.f32.mrf.mxu0  ;;  %v1071_v38 = vsel %vm1039_vm4, %v1038_v4, %v5241_v29 }
 0x16a   : > { %v1536_v41 = vadd.f32 %v5238_v34, %v1497_v35  ;;  %v1495_v31 = vmul.f32 %v5232_v32, %v1361_v40 }
 0x16b   : > { %v4353_v39 = vpop.f32.mrf.mxu0 }
 0x16c   : > { %v1568_v42 = vmax.f32 %v1536_v41, 0.0  ;;  %v1534_v62 = vadd.f32 %v5238_v34, %v1495_v31  ;;  %v1498_v43 = vmul.f32 %v4353_v39, %v5232_v32  ;;  %v5249_v45 = vpop.permute.xlu1 %803  ;;  %v1036_v39 = vsel %vm1006_vm3, %v4960_v54, %v5220_v58 }
 0x16d   : > { %v5251_v46 = vpop.permute.xlu0 %801  ;;  %v1364_v49 = vpop.f32.mrf.mxu0  ;;  %v1104_v54 = vsel %vm1072_vm5, %v1071_v38, %v5249_v45 }
 0x16e   : > { %v4276_v51 = vpack.c.bf16 %v1568_v42, %v1568_v42  ;;  %v1566_v44 = vmax.f32 %v1534_v62, 0.0  ;;  %v1537_v50 = vadd.f32 %v5238_v34, %v1498_v43  ;;  %v1496_v52 = vmul.f32 %v5232_v32, %v1364_v49  ;;  %v2133_v43 = vld [vmem:[#allocation2 + $0x14] sm:$0x1] }
 0x16f   : > { %v1069_v49 = vsel %vm1039_vm4, %v1036_v39, %v5243_v36 }
 0x170   : > { %v1825_v56 = vshrl.u32 %v4276_v51, 16  ;;  %v4274_v57 = vpack.c.bf16 %v1566_v44, %v1566_v44  ;;  %v1569_v59 = vmax.f32 %v1537_v50, 0.0  ;;  %v5257_v61 = vpop.permute.xlu1 %850  ;;  %v1535_v63 = vadd.f32 %v5238_v34, %v1496_v52 }
 0x171   : > { %v5259_v53 = vpop.permute.xlu0 %848  ;;  %v1828_v15 = vshll.u32 %v4276_v51, 16  ;;  %v1102_v58 = vsel %vm1072_vm5, %v1069_v49, %v5251_v46  ;;  %v1137_v36 = vsel %vm1105_vm6, %v1104_v54, %v5257_v61  ;;  %v1641_v49 = vld [vmem:[#allocation2 + $0x84] sm:$0x1] }
 0x172   : > { %v1827_v1 = vrot.slane %v1825_v56, 7  ;;  %v1808_v2 = vshrl.u32 %v4274_v57, 16  ;;  %v4277_v55 = vpack.c.bf16 %v1569_v59, %v1569_v59  ;;  %v1567_v0 = vmax.f32 %v1535_v63, 0.0 }
 0x173   : > { %v1811_v16 = vshll.u32 %v4274_v57, 16  ;;  %v1135_v57 = vsel %vm1105_vm6, %v1102_v58, %v5259_v53 }
 0x174   : > { %v1830_v10 = vor.u32 %v1828_v15, %v1827_v1  ;;  %v1810_v12 = vrot.slane %v1808_v2, 7  ;;  %v1833_v17 = vshrl.u32 %v4277_v55, 16  ;;  %v886_v11 = vpop.permute.xlu1 %885  ;;  %v4275_v21 = vpack.c.bf16 %v1567_v0, %v1567_v0 }
 0x175   : > { %v884_v18 = vpop.permute.xlu0 %883  ;;  %v1836_v25 = vshll.u32 %v4277_v55, 16  ;;  %v1831_v13 = vrot.slane %v1827_v1, 4  ;;  %v1170_v45 = vsel %vm1138_vm7, %v1137_v36, %v886_v11 }
 0x176   : > { %v2137_v23 = vsel %vm5264_vm13, %v1830_v10, %v2136_v7  ;;  %v1813_v24 = vor.u32 %v1811_v16, %v1810_v12  ;;  %v1835_v47 = vrot.slane %v1833_v17, 7  ;;  %v1816_v26 = vshrl.u32 %v4275_v21, 16 }
 0x177   : > { %2138 = vst [vmem:[#allocation2 + $0x18] sm:$0xf] %v2137_v23  ;;  %v1819_v31 = vshll.u32 %v4275_v21, 16  ;;  %v1814_v48 = vrot.slane %v1810_v12, 4  ;;  %v1168_v46 = vsel %vm1138_vm7, %v1135_v57, %v884_v18 }
 0x178   : > { %v2130_v33 = vsel %vm5264_vm13, %v1813_v24, %v2129_v20  ;;  %v1838_v14 = vor.u32 %v1836_v25, %v1835_v47  ;;  %v1840_v27 = vrot.slane %v1835_v47, 4  ;;  %v923_v35 = vpop.permute.xlu1 %922  ;;  %v1818_v41 = vrot.slane %v1816_v26, 7 }
 0x179   : > { %v921_v40 = vpop.permute.xlu0 %920  ;;  %2131 = vst [vmem:[#allocation2 + $0xc] sm:$0xf] %v2130_v33  ;;  %v1203_v59 = vsel %vm1171_vm8, %v1170_v45, %v923_v35 }
 0x17a   : > { %v1839_v42 = vsel %vm5276_vm0, %v1831_v13, %v1838_v14  ;;  %v2141_v62 = vsel %vm5049_vm15, %v1840_v27, %v2140_v37  ;;  %v1821_v51 = vor.u32 %v1819_v31, %v1818_v41  ;;  %v1823_v44 = vrot.slane %v1818_v41, 4 }
 0x17b   : > { %2139 = vst.msk [vmem:[#allocation2 + $0x1c] sm:$0xf] %vm1598_vm12, %v1839_v42  ;;  %2142 = vst [vmem:[#allocation2 + $0x20] sm:$0x1] %v2141_v62  ;;  %v1201_v63 = vsel %vm1171_vm8, %v1168_v46, %v921_v40  ;;  %v1645_v14 = vsel %vm5049_vm15, 0, %v1644_v28 }
 0x17c   : > { %v970_v29 = vpop.permute.xlu1 %969  ;;  %v1822_v52 = vsel %vm5276_vm0, %v1814_v48, %v1821_v51  ;;  %v2134_v56 = vsel %vm5049_vm15, %v1823_v44, %v2133_v43  ;;  %1646 = vst [vmem:[#allocation2 + $0x90] sm:$0x1] %v1645_v14 }
 0x17d   : > { %v968_v50 = vpop.permute.xlu0 %967  ;;  %2132 = vst.msk [vmem:[#allocation2 + $0x10] sm:$0xf] %vm1598_vm12, %v1822_v52  ;;  %2135 = vst [vmem:[#allocation2 + $0x14] sm:$0x1] %v2134_v56  ;;  %v1236_v60 = vsel %vm1204_vm9, %v1203_v59, %v970_v29  ;;  %v2150_v29 = vld [vmem:[#allocation2 + $0x30] sm:$0xf] }
 0x17e   : > { %v1234_v1 = vsel %vm1204_vm9, %v1201_v63, %v968_v50  ;;  %v1642_v52 = vsel %vm5049_vm15, 0, %v1641_v49  ;;  %v1694_v56 = vld [vmem:[#allocation2 + $0x98] sm:$0x1]  ;;  %v2143_v59 = vld [vmem:[#allocation2 + $0x24] sm:$0xf] }
 0x17f   : > { %1643 = vst [vmem:[#allocation2 + $0x84] sm:$0x1] %v1642_v52  ;;  %v1650_v49 = vld [vmem:[#allocation2 + $0xa8] sm:$0x1] }
 0x180   : > { %v1005_v15 = vpop.permute.xlu1 %1004 }
 0x181   : > { %v1003_v61 = vpop.permute.xlu0 %1002  ;;  %v1269_v2 = vsel %vm1237_vm10, %v1236_v60, %v1005_v15  ;;  %v1695_v60 = vsel %vm5071_vm14, 0, %v1694_v56 }
 0x182   : > { %v1267_v53 = vsel %vm1237_vm10, %v1234_v1, %v1003_v61  ;;  %v4481_v55 = vld [vmem:[#allocation2 + $0x18] sm:$0xff]   ;;  %v4482_v7 = vld [vmem:[#allocation2 + $0x20] ss:$0 sps:$4 sm:$0x11]   ;;  %v1691_v1 = vld [vmem:[#allocation2 + $0x8c] sm:$0x1] }
 0x183   : > { %4378 = vmatprep.mubr.msk.bf16.mxu0 %vm6378_vm11, %v1267_v53  ;;  %2734 = vrot.lane.b32.xlu1 %v4481_v55, %s4586_s30  ;;  %v2653_v0 = vrot.slane %v4481_v55, 1  ;;  %v2450_v9 = vshll.u32 %v4481_v55, 16  ;;  %v2654_v10 = vrot.slane %v4482_v7, 1  ;;  %v2448_v23 = vshrl.u32 %v4481_v55, 16  ;;  %1696 = vst [vmem:[#allocation2 + $0x98] sm:$0x1] %v1695_v60 }
 0x184   : > { %4379 = vmatmul.mubr.msk.bf16.gmra.mxu0 %vm6378_vm11, %v1269_v2  ;;  %2851 = vrot.lane.b32.xlu0 %v4481_v55, %s4591_s12  ;;  %v5323_v12 = vld [vmem:[#allocation2 + $0xc] sm:$0xff]   ;;  %v5325_v16 = vld [vmem:[#allocation2 + $0x14] ss:$0 sps:$4 sm:$0x11]   ;;  %v2455_v24 = vshll.u32 %v4482_v7, 16 }
 0x185   : > { %v2655_v11 = vsel %vm6388_vm1, %v2653_v0, %v2654_v10  ;;  %v2650_v18 = vrot.slane %v5323_v12, 1  ;;  %v2452_v3 = vrot.slane %v2450_v9, 1  ;;  %v2651_v21 = vrot.slane %v5325_v16, 1  ;;  %v2154_v55 = vld [vmem:[#allocation2 + $0x38] sm:$0x1] }
 0x186   : > { %v2457_v35 = vrot.slane %v2455_v24, 1  ;;  %vm6390_vm1 = vsmask.f32 7424  ;;  %v1692_v0 = vsel %vm5071_vm14, 0, %v1691_v1  ;;  %v2436_v28 = vshrl.u32 %v5323_v12, 16 }
 0x187   : > { %v4356_v17 = vpop.f32.mrf.mxu0  ;;  %2816 = vrot.lane.b32.xlu1 %v2655_v11, %s4587_s8  ;;  %v2652_v37 = vsel %vm6389_vm2, %v2650_v18, %v2651_v21  ;;  %v2453_v26 = vor.u32 %v2452_v3, %v2448_v23  ;;  %1693 = vst [vmem:[#allocation2 + $0x8c] sm:$0x1] %v1692_v0  ;;  %vm6391_vm2 = vmmov %vm6390_vm1  ;;  %vm6396_vm11 = vsmask.f32 7424 }
 0x188   : > { %v1501_v20 = vmul.f32 %v4356_v17, %v5232_v32  ;;  %2732 = vrot.lane.b32.xlu0 %v5323_v12, %s4586_s30 }
 0x189   : > { %v1377_v22 = vpop.f32.mrf.mxu0  ;;  %v2458_v38 = vsel %vm6390_vm1, %v2453_v26, %v2457_v35  ;;  %vm6392_vm1 = vcmask 1046528  }
 0x18a   : > { %v1540_v47 = vadd.f32 %v5238_v34, %v1501_v20  ;;  %v1499_v25 = vmul.f32 %v5232_v32, %v1377_v22  ;;  %v2147_v22 = vld [vmem:[#allocation2 + $0x2c] sm:$0x1] }
 0x18b   : > { %v4357_v4 = vpop.f32.mrf.mxu0  ;;  %2697 = vrot.lane.b32.xlu1 %v2652_v37, %s4588_s9 }
 0x18c   : > { %v1572_v30 = vmax.f32 %v1540_v47, 0.0  ;;  %v1538_v13 = vadd.f32 %v5238_v34, %v1499_v25  ;;  %v1502_v33 = vmul.f32 %v4357_v4, %v5232_v32  ;;  %2933 = vrot.lane.b32.xlu0 %v2655_v11, %s4593_s14  ;;  %v2438_v25 = vshll.u32 %v5323_v12, 16 }
 0x18d   : > { %v1380_v27 = vpop.f32.mrf.mxu0 }
 0x18e   : > { %v4280_v40 = vpack.c.bf16 %v1572_v30, %v1572_v30  ;;  %v1570_v41 = vmax.f32 %v1538_v13, 0.0  ;;  %v1541_v31 = vadd.f32 %v5238_v34, %v1502_v33  ;;  %v1500_v39 = vmul.f32 %v5232_v32, %v1380_v27 }
 0x18f   : > { %2781 = vrot.lane.b32.xlu1 %v2458_v38, %s4590_s11  ;;  %v2440_v26 = vrot.slane %v2438_v25, 1  ;;  %v2443_v30 = vshll.u32 %v5325_v16, 16 }
 0x190   : > { %v1859_v42 = vshrl.u32 %v4280_v40, 16  ;;  %v4278_v62 = vpack.c.bf16 %v1570_v41, %v1570_v41  ;;  %v1573_v43 = vmax.f32 %v1541_v31, 0.0  ;;  %2699 = vrot.lane.b32.xlu0 %v2655_v11, %s4588_s9  ;;  %v1539_v48 = vadd.f32 %v5238_v34, %v1500_v39 }
 0x191   : > { %v1862_v44 = vshll.u32 %v4280_v40, 16  ;;  %v2441_v33 = vor.u32 %v2440_v26, %v2436_v28  ;;  %v2445_v14 = vrot.slane %v2443_v30, 1  ;;  %v1697_v28 = vld [vmem:[#allocation2 + $0xa4] sm:$0x1] }
 0x192   : > { %v1861_v51 = vrot.slane %v1859_v42, 7  ;;  %v1842_v54 = vshrl.u32 %v4278_v62, 16  ;;  %v4281_v58 = vpack.c.bf16 %v1573_v43, %v1573_v43  ;;  %v1571_v50 = vmax.f32 %v1539_v48, 0.0 }
 0x193   : > { %v1845_v45 = vshll.u32 %v4278_v62, 16  ;;  %2619 = vrot.lane.b32.xlu1 %v2458_v38, %s4589_s10  ;;  %v2446_v35 = vsel %vm6391_vm2, %v2441_v33, %v2445_v14  ;;  %vm6393_vm2 = vmmov %vm6392_vm1 }
 0x194   : > { %v1864_v36 = vor.u32 %v1862_v44, %v1861_v51  ;;  %v1844_v57 = vrot.slane %v1842_v54, 7  ;;  %v1867_v46 = vshrl.u32 %v4281_v58, 16  ;;  %2814 = vrot.lane.b32.xlu0 %v2652_v37, %s4587_s8  ;;  %v4279_v63 = vpack.c.bf16 %v1571_v50, %v1571_v50 }
 0x195   : > { %v1870_v53 = vshll.u32 %v4281_v58, 16  ;;  %v1865_v9 = vrot.slane %v1861_v51, 4  ;;  %v1651_v58 = vsel %vm5049_vm15, 0, %v1650_v49 }
 0x196   : > { %v2151_v15 = vsel %vm5264_vm13, %v1864_v36, %v2150_v29  ;;  %v1847_v61 = vor.u32 %v1845_v45, %v1844_v57  ;;  %v1869_v2 = vrot.slane %v1867_v46, 7  ;;  %v1850_v7 = vshrl.u32 %v4279_v63, 16  ;;  %1652 = vst [vmem:[#allocation2 + $0xa8] sm:$0x1] %v1651_v58  ;;  %v4505_v58 = vld [vmem:[%s6370_s4] sm:$0xff]  }
 0x197   : > { %2152 = vst [vmem:[#allocation2 + $0x30] sm:$0xf] %v2151_v15  ;;  %v1853_v3 = vshll.u32 %v4279_v63, 16  ;;  %v1848_v23 = vrot.slane %v1844_v57, 4 }
 0x198   : > { %v2144_v10 = vsel %vm5264_vm13, %v1847_v61, %v2143_v59  ;;  %v1872_v17 = vor.u32 %v1870_v53, %v1869_v2  ;;  %v1874_v11 = vrot.slane %v1869_v2, 4  ;;  %2898 = vrot.lane.b32.xlu0 %v2458_v38, %s4592_s13  ;;  %v1852_v18 = vrot.slane %v1850_v7, 7  ;;  %v1647_v53 = vld [vmem:[#allocation2 + $0x9c] sm:$0x1] }
 0x199   : > { %2145 = vst [vmem:[#allocation2 + $0x24] sm:$0xf] %v2144_v10  ;;  %v4503_v10 = vld [vmem:[%s6370_s4 + $0x10] ss:$0 sps:$4 sm:$0x33]  }
 0x19a   : > { %v1873_v20 = vsel %vm5276_vm0, %v1865_v9, %v1872_v17  ;;  %v2155_v21 = vsel %vm5049_vm15, %v1874_v11, %v2154_v55  ;;  %v1855_v24 = vor.u32 %v1853_v3, %v1852_v18  ;;  %v1857_v47 = vrot.slane %v1852_v18, 4  ;;  %v2164_v17 = vld [vmem:[#allocation2 + $0x48] sm:$0xf] }
 0x19b   : > { %2153 = vst.msk [vmem:[#allocation2 + $0x34] sm:$0xf] %vm1598_vm12, %v1873_v20  ;;  %2156 = vst [vmem:[#allocation2 + $0x38] sm:$0x1] %v2155_v21  ;;  %v1648_v20 = vsel %vm5049_vm15, 0, %v1647_v53 }
 0x19c   : > { %v1856_v4 = vsel %vm5276_vm0, %v1848_v23, %v1855_v24  ;;  %v2148_v37 = vsel %vm5049_vm15, %v1857_v47, %v2147_v22  ;;  %v1700_v21 = vld [vmem:[#allocation2 + $0xb0] sm:$0x1]  ;;  %v2157_v47 = vld [vmem:[#allocation2 + $0x3c] sm:$0xf]  ;;  %1649 = vst [vmem:[#allocation2 + $0x9c] sm:$0x1] %v1648_v20 }
 0x19d   : > { %2146 = vst.msk [vmem:[#allocation2 + $0x28] sm:$0xf] %vm1598_vm12, %v1856_v4  ;;  %2149 = vst [vmem:[#allocation2 + $0x2c] sm:$0x1] %v2148_v37  ;;  %v1701_v26 = vsel %vm5071_vm14, 0, %v1700_v21 }
 0x19e   : > { %1702 = vst [vmem:[#allocation2 + $0xb0] sm:$0x1] %v1701_v26 }
 0x1a2   : > { %v4485_v13 = vld [vmem:[#allocation2 + $0x30] sm:$0xff]   ;;  %v4487_v40 = vld [vmem:[#allocation2 + $0x38] ss:$0 sps:$4 sm:$0x11]  }
 0x1a3   : > { %2738 = vrot.lane.b32.xlu1 %v4485_v13, %s4586_s30  ;;  %2855 = vrot.lane.b32.xlu0 %v4485_v13, %s4591_s12  ;;  %v2659_v38 = vrot.slane %v4485_v13, 1  ;;  %v2474_v42 = vshll.u32 %v4485_v13, 16  ;;  %v2660_v43 = vrot.slane %v4487_v40, 1  ;;  %v2472_v61 = vshrl.u32 %v4485_v13, 16 }
 0x1a4   : > { %v5383_v39 = vld [vmem:[#allocation2 + $0x24] sm:$0xff]   ;;  %v5385_v48 = vld [vmem:[#allocation2 + $0x2c] ss:$0 sps:$4 sm:$0x11]   ;;  %v2479_v2 = vshll.u32 %v4487_v40, 16 }
 0x1a5   : > { %v2661_v57 = vsel %vm6392_vm1, %v2659_v38, %v2660_v43  ;;  %v2656_v45 = vrot.slane %v5383_v39, 1  ;;  %v2657_v46 = vrot.slane %v5385_v48, 1  ;;  %v2476_v59 = vrot.slane %v2474_v42, 1  ;;  %v2168_v40 = vld [vmem:[#allocation2 + $0x50] sm:$0x1] }
 0x1a6   : > { %v2481_v37 = vrot.slane %v2479_v2, 1  ;;  %vm6394_vm1 = vcmask 1041408  }
 0x1a7   : > { %v4360_v27 = vpop.f32.mrf.mxu0  ;;  %2617 = vrot.lane.b32.xlu1 %v2446_v35, %s4589_s10  ;;  %2779 = vrot.lane.b32.xlu0 %v2446_v35, %s4590_s11  ;;  %v2658_v18 = vsel %vm6393_vm2, %v2656_v45, %v2657_v46  ;;  %v2477_v3 = vor.u32 %v2476_v59, %v2472_v61  ;;  %vm6395_vm2 = vmmov %vm6394_vm1  ;;  %v4504_v35 = vld [vmem:[%s6370_s4 + $0x8] sm:$0xff]   ;;  %v2460_v46 = vshrl.u32 %v5383_v39, 16  ;;  %v2467_v59 = vshll.u32 %v5385_v48, 16 }
 0x1a8   : > { %v1505_v41 = vmul.f32 %v4360_v27, %v5232_v32  ;;  %4421 = vmatprep.subr.msk.bf16.mxu1 %vm6394_vm1, %v4503_v10  ;;  %v3274_v30 = vsel %vm6395_vm2, %v4503_v10, 0  ;;  %vm6397_vm1 = vcmask 1046528   ;;  %vm6399_vm2 = vmmov %vm6396_vm11 }
 0x1a9   : > { %v1393_v12 = vpop.f32.mrf.mxu0  ;;  %4383 = vmatpush3.bf16.msra.mxu1 %v3274_v30 }
 0x1aa   : > { %v1544_v16 = vadd.f32 %v5238_v34, %v1505_v41  ;;  %v1503_v31 = vmul.f32 %v5232_v32, %v1393_v12  ;;  %v2482_v12 = vsel %vm6396_vm11, %v2477_v3, %v2481_v37  ;;  %4384 = vmatprep.subr.bf16.mxu1 %v4504_v35 }
 0x1ab   : > { %v4361_v62 = vpop.f32.mrf.mxu0  ;;  %2853 = vrot.lane.b32.xlu1 %v5383_v39, %s4591_s12  ;;  %2736 = vrot.lane.b32.xlu0 %v5383_v39, %s4586_s30 }
 0x1ac   : > { %v1576_v51 = vmax.f32 %v1544_v16, 0.0  ;;  %v1542_v44 = vadd.f32 %v5238_v34, %v1503_v31  ;;  %v1506_v54 = vmul.f32 %v4361_v62, %v5232_v32  ;;  %v1698_v16 = vsel %vm5071_vm14, 0, %v1697_v28 }
 0x1ad   : > { %v1396_v29 = vpop.f32.mrf.mxu0  ;;  %1699 = vst [vmem:[#allocation2 + $0xa4] sm:$0x1] %v1698_v16  ;;  %4385 = vmatpush3.bf16.msra.mxu1 %v4504_v35 }
 0x1ae   : > { %v4284_v50 = vpack.c.bf16 %v1576_v51, %v1576_v51  ;;  %v1574_v52 = vmax.f32 %v1542_v44, 0.0  ;;  %v1545_v56 = vadd.f32 %v5238_v34, %v1506_v54  ;;  %v1504_v36 = vmul.f32 %v5232_v32, %v1396_v29  ;;  %v2161_v54 = vld [vmem:[#allocation2 + $0x44] sm:$0x1]  ;;  %4386 = vmatprep.subr.bf16.mxu1 %v4505_v58 }
 0x1af   : > { %2820 = vrot.lane.b32.xlu1 %v2661_v57, %s4587_s8  ;;  %2937 = vrot.lane.b32.xlu0 %v2661_v57, %s4593_s14 }
 0x1b0   : > { %v1893_v63 = vshrl.u32 %v4284_v50, 16  ;;  %v4282_v60 = vpack.c.bf16 %v1574_v52, %v1574_v52  ;;  %v1577_v1 = vmax.f32 %v1545_v56, 0.0  ;;  %v1543_v15 = vadd.f32 %v5238_v34, %v1504_v36 }
 0x1b1   : > { %v1896_v7 = vshll.u32 %v4284_v50, 16  ;;  %v2462_v56 = vshll.u32 %v5383_v39, 16  ;;  %4387 = vmatpush3.bf16.msra.mxu1 %v4505_v58  ;;  %v1656_v39 = vld [vmem:[#allocation2 + $0xc0] sm:$0x1] }
 0x1b2   : > { %v1895_v55 = vrot.slane %v1893_v63, 7  ;;  %v1876_v0 = vshrl.u32 %v4282_v60, 16  ;;  %v4285_v9 = vpack.c.bf16 %v1577_v1, %v1577_v1  ;;  %v1575_v11 = vmax.f32 %v1543_v15, 0.0 }
 0x1b3   : > { %v1879_v24 = vshll.u32 %v4282_v60, 16  ;;  %2701 = vrot.lane.b32.xlu1 %v2658_v18, %s4588_s9  ;;  %2703 = vrot.lane.b32.xlu0 %v2661_v57, %s4588_s9  ;;  %v2464_v45 = vrot.slane %v2462_v56, 1  ;;  %v2469_v1 = vrot.slane %v2467_v59, 1  ;;  %v2182_v59 = vld [vmem:[#allocation2 + $0x68] sm:$0x1] }
 0x1b4   : > { %v1898_v22 = vor.u32 %v1896_v7, %v1895_v55  ;;  %v1878_v23 = vrot.slane %v1876_v0, 7  ;;  %v1901_v25 = vshrl.u32 %v4285_v9, 16  ;;  %v4283_v4 = vpack.c.bf16 %v1575_v11, %v1575_v11 }
 0x1b5   : > { %v1904_v27 = vshll.u32 %v4285_v9, 16  ;;  %v1899_v31 = vrot.slane %v1895_v55, 4  ;;  %v2465_v60 = vor.u32 %v2464_v45, %v2460_v46  ;;  %v1657_v55 = vsel %vm5049_vm15, 0, %v1656_v39 }
 0x1b6   : > { %v2165_v13 = vsel %vm5264_vm13, %v1898_v22, %v2164_v17  ;;  %v1881_v33 = vor.u32 %v1879_v24, %v1878_v23  ;;  %v1903_v14 = vrot.slane %v1901_v25, 7  ;;  %v1884_v41 = vshrl.u32 %v4283_v4, 16  ;;  %1658 = vst [vmem:[#allocation2 + $0xc0] sm:$0x1] %v1657_v55 }
 0x1b7   : > { %2166 = vst [vmem:[#allocation2 + $0x48] sm:$0xf] %v2165_v13  ;;  %2785 = vrot.lane.b32.xlu1 %v2482_v12, %s4590_s11  ;;  %2935 = vrot.lane.b32.xlu0 %v2658_v18, %s4593_s14  ;;  %v1887_v49 = vshll.u32 %v4283_v4, 16  ;;  %v1882_v29 = vrot.slane %v1878_v23, 4  ;;  %v2470_v61 = vsel %vm6396_vm11, %v2465_v60, %v2469_v1  ;;  %v1653_v4 = vld [vmem:[#allocation2 + $0xb4] sm:$0x1]  ;;  %vm6400_vm11 = vmmov %vm6399_vm2 }
 0x1b8   : > { %v2158_v38 = vsel %vm5264_vm13, %v1881_v33, %v2157_v47  ;;  %v1906_v42 = vor.u32 %v1904_v27, %v1903_v14  ;;  %v1908_v62 = vrot.slane %v1903_v14, 4  ;;  %v1886_v43 = vrot.slane %v1884_v41, 7  ;;  %v1706_v14 = vld [vmem:[#allocation2 + $0xc8] sm:$0x1] }
 0x1b9   : > { %2159 = vst [vmem:[#allocation2 + $0x3c] sm:$0xf] %v2158_v38  ;;  %v1654_v28 = vsel %vm5049_vm15, 0, %v1653_v4  ;;  %v1703_v38 = vld [vmem:[#allocation2 + $0xbc] sm:$0x1] }
 0x1ba   : > { %v1907_v51 = vsel %vm5276_vm0, %v1899_v31, %v1906_v42  ;;  %v2169_v44 = vsel %vm5049_vm15, %v1908_v62, %v2168_v40  ;;  %v1889_v50 = vor.u32 %v1887_v49, %v1886_v43  ;;  %v1891_v52 = vrot.slane %v1886_v43, 4  ;;  %1655 = vst [vmem:[#allocation2 + $0xb4] sm:$0x1] %v1654_v28  ;;  %v2178_v42 = vld [vmem:[#allocation2 + $0x60] sm:$0xf] }
 0x1bb   : > { %2167 = vst.msk [vmem:[#allocation2 + $0x4c] sm:$0xf] %vm1598_vm12, %v1907_v51  ;;  %2170 = vst [vmem:[#allocation2 + $0x50] sm:$0x1] %v2169_v44  ;;  %2623 = vrot.lane.b32.xlu1 %v2482_v12, %s4589_s10  ;;  %2818 = vrot.lane.b32.xlu0 %v2658_v18, %s4587_s8  ;;  %v1707_v40 = vsel %vm5071_vm14, 0, %v1706_v14  ;;  %v1704_v51 = vsel %vm5071_vm14, 0, %v1703_v38 }
 0x1bc   : > { %v1890_v36 = vsel %vm5276_vm0, %v1882_v29, %v1889_v50  ;;  %v2162_v57 = vsel %vm5049_vm15, %v1891_v52, %v2161_v54  ;;  %1708 = vst [vmem:[#allocation2 + $0xc8] sm:$0x1] %v1707_v40  ;;  %1705 = vst [vmem:[#allocation2 + $0xbc] sm:$0x1] %v1704_v51  ;;  %v2171_v50 = vld [vmem:[#allocation2 + $0x54] sm:$0xf]  ;;  %v5534_v40 = vpop.permute.xlu0 %2615 }
 0x1bd   : > { %2160 = vst.msk [vmem:[#allocation2 + $0x40] sm:$0xf] %vm1598_vm12, %v1890_v36  ;;  %2163 = vst [vmem:[#allocation2 + $0x44] sm:$0x1] %v2162_v57 }
 0x1be   : > { %vm6398_vm14 = vmmov %vm6397_vm1 }
 0x1bf   : > { %2902 = vrot.lane.b32.xlu0 %v2482_v12, %s4592_s13 }
 0x1c2   : > { %v5446_v63 = vld [vmem:[#allocation2 + $0x48] sm:$0xff]   ;;  %v5453_v2 = vld [vmem:[#allocation2 + $0x50] ss:$0 sps:$4 sm:$0x11]  }
 0x1c3   : > { %2742 = vrot.lane.b32.xlu1 %v5446_v63, %s4586_s30  ;;  %2859 = vrot.lane.b32.xlu0 %v5446_v63, %s4591_s12  ;;  %v2665_v17 = vrot.slane %v5446_v63, 1  ;;  %v2666_v11 = vrot.slane %v5453_v2, 1  ;;  %v2498_v22 = vshll.u32 %v5446_v63, 16  ;;  %v2496_v56 = vshrl.u32 %v5446_v63, 16 }
 0x1c4   : > { %v5462_v9 = vld [vmem:[#allocation2 + $0x3c] sm:$0xff]   ;;  %v5475_v26 = vld [vmem:[#allocation2 + $0x44] ss:$0 sps:$4 sm:$0x11]   ;;  %v2503_v36 = vshll.u32 %v5453_v2, 16 }
 0x1c5   : > { %v2667_v37 = vsel %vm6397_vm1, %v2665_v17, %v2666_v11  ;;  %v2500_v35 = vrot.slane %v2498_v22, 1  ;;  %v2662_v43 = vrot.slane %v5462_v9, 1  ;;  %v2663_v49 = vrot.slane %v5475_v26, 1 }
 0x1c6   : > { %v2505_v55 = vrot.slane %v2503_v36, 1  ;;  %v2486_v17 = vshll.u32 %v5462_v9, 16  ;;  %v5553_v36 = vpop.permute.xlu0 %2695 }
 0x1c7   : > { %v4364_v15 = vpop.f32.mrf.mxu0  ;;  %2900 = vrot.lane.b32.xlu1 %v2470_v61, %s4592_s13  ;;  %2783 = vrot.lane.b32.xlu0 %v2470_v61, %s4590_s11  ;;  %v2664_v1 = vsel %vm6398_vm14, %v2662_v43, %v2663_v49  ;;  %vm6401_vm14 = vmmov %vm6397_vm1 }
 0x1c8   : > { %v1509_v53 = vmul.f32 %v4364_v15, %v5232_v32  ;;  %v2501_v15 = vor.u32 %v2500_v35, %v2496_v56 }
 0x1c9   : > { %v1409_v48 = vpop.f32.mrf.mxu0 }
 0x1ca   : > { %v1548_v7 = vadd.f32 %v5238_v34, %v1509_v53  ;;  %v1507_v0 = vmul.f32 %v5232_v32, %v1409_v48 }
 0x1cb   : > { %v4365_v10 = vpop.f32.mrf.mxu0  ;;  %2621 = vrot.lane.b32.xlu1 %v2470_v61, %s4589_s10  ;;  %2740 = vrot.lane.b32.xlu0 %v5462_v9, %s4586_s30 }
 0x1cc   : > { %v1580_v18 = vmax.f32 %v1548_v7, 0.0  ;;  %v1546_v3 = vadd.f32 %v5238_v34, %v1507_v0  ;;  %v1510_v20 = vmul.f32 %v4365_v10, %v5232_v32  ;;  %v2175_v10 = vld [vmem:[#allocation2 + $0x5c] sm:$0x1] }
 0x1cd   : > { %v1412_v21 = vpop.f32.mrf.mxu0 }
 0x1ce   : > { %v4288_v23 = vpack.c.bf16 %v1580_v18, %v1580_v18  ;;  %v1578_v24 = vmax.f32 %v1546_v3, 0.0  ;;  %v1549_v47 = vadd.f32 %v5238_v34, %v1510_v20  ;;  %v1508_v25 = vmul.f32 %v5232_v32, %v1412_v21 }
 0x1cf   : > { %2857 = vrot.lane.b32.xlu1 %v5462_v9, %s4591_s12  ;;  %2941 = vrot.lane.b32.xlu0 %v2667_v37, %s4593_s14  ;;  %v2506_v20 = vsel %vm6399_vm2, %v2501_v15, %v2505_v55 }
 0x1d0   : > { %v1927_v30 = vshrl.u32 %v4288_v23, 16  ;;  %v4286_v13 = vpack.c.bf16 %v1578_v24, %v1578_v24  ;;  %v1581_v33 = vmax.f32 %v1549_v47, 0.0  ;;  %v1547_v27 = vadd.f32 %v5238_v34, %v1508_v25 }
 0x1d1   : > { %v1930_v12 = vshll.u32 %v4288_v23, 16  ;;  %v2488_v23 = vrot.slane %v2486_v17, 1  ;;  %v2484_v24 = vshrl.u32 %v5462_v9, 16  ;;  %v2491_v47 = vshll.u32 %v5475_v26, 16 }
 0x1d2   : > { %v1929_v41 = vrot.slane %v1927_v30, 7  ;;  %v1910_v16 = vshrl.u32 %v4286_v13, 16  ;;  %v4289_v31 = vpack.c.bf16 %v1581_v33, %v1581_v33  ;;  %v1579_v62 = vmax.f32 %v1547_v27, 0.0 }
 0x1d3   : > { %v1913_v58 = vshll.u32 %v4286_v13, 16  ;;  %2824 = vrot.lane.b32.xlu1 %v2667_v37, %s4587_s8  ;;  %2707 = vrot.lane.b32.xlu0 %v2667_v37, %s4588_s9  ;;  %v2489_v4 = vor.u32 %v2488_v23, %v2484_v24  ;;  %v2493_v37 = vrot.slane %v2491_v47, 1 }
 0x1d4   : > { %v1932_v44 = vor.u32 %v1930_v12, %v1929_v41  ;;  %v1912_v54 = vrot.slane %v1910_v16, 7  ;;  %v1935_v29 = vshrl.u32 %v4289_v31, 16  ;;  %v4287_v52 = vpack.c.bf16 %v1579_v62, %v1579_v62 }
 0x1d5   : > { %v1938_v46 = vshll.u32 %v4289_v31, 16  ;;  %v1933_v61 = vrot.slane %v1929_v41, 4  ;;  %v2494_v13 = vsel %vm6400_vm11, %v2489_v4, %v2493_v37  ;;  %vm6402_vm11 = vmmov %vm6399_vm2 }
 0x1d6   : > { %v2179_v57 = vsel %vm5264_vm13, %v1932_v44, %v2178_v42  ;;  %v1915_v19 = vor.u32 %v1913_v58, %v1912_v54  ;;  %v1937_v45 = vrot.slane %v1935_v29, 7  ;;  %v1918_v60 = vshrl.u32 %v4287_v52, 16 }
 0x1d7   : > { %2180 = vst [vmem:[#allocation2 + $0x60] sm:$0xf] %v2179_v57  ;;  %2705 = vrot.lane.b32.xlu1 %v2664_v1, %s4588_s9  ;;  %2939 = vrot.lane.b32.xlu0 %v2664_v1, %s4593_s14  ;;  %v1921_v48 = vshll.u32 %v4287_v52, 16  ;;  %v1916_v11 = vrot.slane %v1912_v54, 4 }
 0x1d8   : > { %v2172_v53 = vsel %vm5264_vm13, %v1915_v19, %v2171_v50  ;;  %v1940_v39 = vor.u32 %v1938_v46, %v1937_v45  ;;  %v1942_v63 = vrot.slane %v1937_v45, 4  ;;  %v1920_v2 = vrot.slane %v1918_v60, 7  ;;  %v2192_v46 = vld [vmem:[#allocation2 + $0x78] sm:$0xf] }
 0x1d9   : > { %2173 = vst [vmem:[#allocation2 + $0x54] sm:$0xf] %v2172_v53 }
 0x1da   : > { %v1941_v7 = vsel %vm5276_vm0, %v1933_v61, %v1940_v39  ;;  %v2183_v0 = vsel %vm5049_vm15, %v1942_v63, %v2182_v59  ;;  %v1923_v18 = vor.u32 %v1921_v48, %v1920_v2  ;;  %v1925_v3 = vrot.slane %v1920_v2, 4  ;;  %v2185_v63 = vld [vmem:[#allocation2 + $0x6c] sm:$0xf] }
 0x1db   : > { %2181 = vst.msk [vmem:[#allocation2 + $0x64] sm:$0xf] %vm1598_vm12, %v1941_v7  ;;  %2184 = vst [vmem:[#allocation2 + $0x68] sm:$0x1] %v2183_v0  ;;  %2789 = vrot.lane.b32.xlu1 %v2506_v20, %s4590_s11  ;;  %2822 = vrot.lane.b32.xlu0 %v2664_v1, %s4587_s8 }
 0x1dc   : > { %v1924_v21 = vsel %vm5276_vm0, %v1916_v11, %v1923_v18  ;;  %v2176_v22 = vsel %vm5049_vm15, %v1925_v3, %v2175_v10  ;;  %v2196_v11 = vld [vmem:[#allocation2 + $0x80] sm:$0x1] }
 0x1dd   : > { %2174 = vst.msk [vmem:[#allocation2 + $0x58] sm:$0xf] %vm1598_vm12, %v1924_v21  ;;  %2177 = vst [vmem:[#allocation2 + $0x5c] sm:$0x1] %v2176_v22 }
 0x1df   : > { %2627 = vrot.lane.b32.xlu1 %v2506_v20, %s4589_s10  ;;  %2906 = vrot.lane.b32.xlu0 %v2506_v20, %s4592_s13 }
 0x1e2   : > { %v5518_v25 = vld [vmem:[#allocation2 + $0x60] sm:$0xff]   ;;  %v5526_v33 = vld [vmem:[#allocation2 + $0x68] ss:$0 sps:$4 sm:$0x11]  }
 0x1e3   : > { %2746 = vrot.lane.b32.xlu1 %v5518_v25, %s4586_s30  ;;  %2863 = vrot.lane.b32.xlu0 %v5518_v25, %s4591_s12  ;;  %v2671_v41 = vrot.slane %v5518_v25, 1  ;;  %v2672_v38 = vrot.slane %v5526_v33, 1  ;;  %v2522_v54 = vshll.u32 %v5518_v25, 16  ;;  %v2520_v48 = vshrl.u32 %v5518_v25, 16 }
 0x1e4   : > { %v5532_v35 = vld [vmem:[#allocation2 + $0x54] sm:$0xff]   ;;  %v5545_v44 = vld [vmem:[#allocation2 + $0x5c] ss:$0 sps:$4 sm:$0x11]   ;;  %v2527_v55 = vshll.u32 %v5526_v33, 16 }
 0x1e5   : > { %v2673_v52 = vsel %vm6397_vm1, %v2671_v41, %v2672_v38  ;;  %v2668_v60 = vrot.slane %v5532_v35, 1  ;;  %v2669_v1 = vrot.slane %v5545_v44, 1  ;;  %v2524_v15 = vrot.slane %v2522_v54, 1 }
 0x1e6   : > { %v2529_v33 = vrot.slane %v2527_v55, 1 }
 0x1e7   : > { %v4368_v28 = vpop.f32.mrf.mxu0  ;;  %2904 = vrot.lane.b32.xlu1 %v2494_v13, %s4592_s13  ;;  %2787 = vrot.lane.b32.xlu0 %v2494_v13, %s4590_s11  ;;  %v2670_v20 = vsel %vm6401_vm14, %v2668_v60, %v2669_v1  ;;  %v2525_v21 = vor.u32 %v2524_v15, %v2520_v48  ;;  %vm6403_vm14 = vmmov %vm6397_vm1 }
 0x1e8   : > { %v1513_v30 = vmul.f32 %v4368_v28, %v5232_v32 }
 0x1e9   : > { %v1425_v9 = vpop.f32.mrf.mxu0  ;;  %v2530_v41 = vsel %vm6399_vm2, %v2525_v21, %v2529_v33 }
 0x1ea   : > { %v1552_v26 = vadd.f32 %v5238_v34, %v1513_v30  ;;  %v1511_v14 = vmul.f32 %v5232_v32, %v1425_v9  ;;  %v2189_v30 = vld [vmem:[#allocation2 + $0x74] sm:$0x1] }
 0x1eb   : > { %v4369_v27 = vpop.f32.mrf.mxu0  ;;  %2625 = vrot.lane.b32.xlu1 %v2494_v13, %s4589_s10  ;;  %2744 = vrot.lane.b32.xlu0 %v5532_v35, %s4586_s30 }
 0x1ec   : > { %v1584_v12 = vmax.f32 %v1552_v26, 0.0  ;;  %v1550_v16 = vadd.f32 %v5238_v34, %v1511_v14  ;;  %v1514_v31 = vmul.f32 %v4369_v27, %v5232_v32 }
 0x1ed   : > { %v1428_v42 = vpop.f32.mrf.mxu0 }
 0x1ee   : > { %v4292_v62 = vpack.c.bf16 %v1584_v12, %v1584_v12  ;;  %v1582_v43 = vmax.f32 %v1550_v16, 0.0  ;;  %v1553_v49 = vadd.f32 %v5238_v34, %v1514_v31  ;;  %v1512_v51 = vmul.f32 %v5232_v32, %v1428_v42 }
 0x1ef   : > { %2861 = vrot.lane.b32.xlu1 %v5532_v35, %s4591_s12  ;;  %2945 = vrot.lane.b32.xlu0 %v2673_v52, %s4593_s14  ;;  %v2510_v12 = vshll.u32 %v5532_v35, 16 }
 0x1f0   : > { %v1961_v58 = vshrl.u32 %v4292_v62, 16  ;;  %v4290_v29 = vpack.c.bf16 %v1582_v43, %v1582_v43  ;;  %v1585_v50 = vmax.f32 %v1553_v49, 0.0  ;;  %v1551_v56 = vadd.f32 %v5238_v34, %v1512_v51 }
 0x1f1   : > { %v1964_v32 = vshll.u32 %v4292_v62, 16  ;;  %v2512_v42 = vrot.slane %v2510_v12, 1  ;;  %v2508_v43 = vshrl.u32 %v5532_v35, 16  ;;  %v2515_v51 = vshll.u32 %v5545_v44, 16  ;;  %v5611_v35 = vld [vmem:[%s6368_s2] ss:$0 sm:$0xff] }
 0x1f2   : > { %v1963_v57 = vrot.slane %v1961_v58, 7  ;;  %v1944_v19 = vshrl.u32 %v4290_v29, 16  ;;  %v4293_v45 = vpack.c.bf16 %v1585_v50, %v1585_v50  ;;  %v1583_v59 = vmax.f32 %v1551_v56, 0.0  ;;  %v2206_v12 = vld [vmem:[#allocation2 + $0x90] sm:$0xf] }
 0x1f3   : > { %v1947_v53 = vshll.u32 %v4290_v29, 16  ;;  %2828 = vrot.lane.b32.xlu1 %v2673_v52, %s4587_s8  ;;  %2711 = vrot.lane.b32.xlu0 %v2673_v52, %s4588_s9  ;;  %v2513_v54 = vor.u32 %v2512_v42, %v2508_v43  ;;  %v2517_v29 = vrot.slane %v2515_v51, 1 }
 0x1f4   : > { %v1966_v61 = vor.u32 %v1964_v32, %v1963_v57  ;;  %v1946_v34 = vrot.slane %v1944_v19, 7  ;;  %v1969_v39 = vshrl.u32 %v4293_v45, 16  ;;  %v4291_v2 = vpack.c.bf16 %v1583_v59, %v1583_v59 }
 0x1f5   : > { %v1972_v17 = vshll.u32 %v4293_v45, 16  ;;  %v1967_v22 = vrot.slane %v1963_v57, 4  ;;  %v5574_v13 = vpop.permute.xlu1 %2734  ;;  %v2518_v57 = vsel %vm6402_vm11, %v2513_v54, %v2517_v29  ;;  %v5620_v45 = vld [vmem:[%s6369_s3] ss:$0 sm:$0xff]  ;;  %vm6404_vm11 = vmmov %vm6399_vm2 }
 0x1f6   : > { %v2193_v7 = vsel %vm5264_vm13, %v1966_v61, %v2192_v46  ;;  %v1949_v0 = vor.u32 %v1947_v53, %v1946_v34  ;;  %v1971_v10 = vrot.slane %v1969_v39, 7  ;;  %v1952_v18 = vshrl.u32 %v4291_v2, 16  ;;  %v5563_v3 = vpop.permute.xlu0 %2851 }
 0x1f7   : > { %2194 = vst [vmem:[#allocation2 + $0x78] sm:$0xf] %v2193_v7  ;;  %v1955_v4 = vshll.u32 %v4291_v2, 16  ;;  %2709 = vrot.lane.b32.xlu1 %v2670_v20, %s4588_s9  ;;  %2943 = vrot.lane.b32.xlu0 %v2670_v20, %s4593_s14  ;;  %v1950_v9 = vrot.slane %v1946_v34, 4 }
 0x1f8   : > { %v2186_v23 = vsel %vm5264_vm13, %v1949_v0, %v2185_v63  ;;  %v1974_v24 = vor.u32 %v1972_v17, %v1971_v10  ;;  %v1976_v47 = vrot.slane %v1971_v10, 4  ;;  %v1954_v25 = vrot.slane %v1952_v18, 7 }
 0x1f9   : > { %2187 = vst [vmem:[#allocation2 + $0x6c] sm:$0xf] %v2186_v23  ;;  %v5588_v38 = vpop.permute.xlu1 %2816 }
 0x1fa   : > { %v1975_v37 = vsel %vm5276_vm0, %v1967_v22, %v1974_v24  ;;  %v2197_v28 = vsel %vm5049_vm15, %v1976_v47, %v2196_v11  ;;  %v1957_v26 = vor.u32 %v1955_v4, %v1954_v25  ;;  %v1959_v14 = vrot.slane %v1954_v25, 4  ;;  %v5577_v27 = vpop.permute.xlu0 %2732  ;;  %v4520_v25 = vld [vmem:[#allocation2] sm:$0xff]  }
 0x1fb   : > { %2195 = vst.msk [vmem:[#allocation2 + $0x7c] sm:$0xf] %vm1598_vm12, %v1975_v37  ;;  %2198 = vst [vmem:[#allocation2 + $0x80] sm:$0x1] %v2197_v28  ;;  %2793 = vrot.lane.b32.xlu1 %v2530_v41, %s4590_s11  ;;  %2826 = vrot.lane.b32.xlu0 %v2670_v20, %s4587_s8  ;;  %v2966_v4 = vsel %vm1006_vm3, %v4520_v25, %v5534_v40 }
 0x1fc   : > { %v1958_v16 = vsel %vm5276_vm0, %v1950_v9, %v1957_v26  ;;  %v2190_v31 = vsel %vm5049_vm15, %v1959_v14, %v2189_v30 }
 0x1fd   : > { %2188 = vst.msk [vmem:[#allocation2 + $0x70] sm:$0xf] %vm1598_vm12, %v1958_v16  ;;  %2191 = vst [vmem:[#allocation2 + $0x74] sm:$0x1] %v2190_v31  ;;  %v5602_v58 = vpop.permute.xlu1 %2697 }
 0x1fe   : > { %v5590_v62 = vpop.permute.xlu0 %2933 }
 0x1ff   : > { %2631 = vrot.lane.b32.xlu1 %v2530_v41, %s4589_s10  ;;  %2910 = vrot.lane.b32.xlu0 %v2530_v41, %s4592_s13 }
 0x201   : > { %v5628_v34 = vpop.permute.xlu1 %2781 }
 0x202   : > { %v5595_v49 = vld [vmem:[#allocation2 + $0x78] sm:$0xff]   ;;  %v5604_v50 = vpop.permute.xlu0 %2699  ;;  %v5625_v15 = vld [vmem:[#allocation2 + $0x80] ss:$0 sps:$4 sm:$0x11]  }
 0x203   : > { %2750 = vrot.lane.b32.xlu1 %v5595_v49, %s4586_s30  ;;  %2867 = vrot.lane.b32.xlu0 %v5595_v49, %s4591_s12  ;;  %v2677_v11 = vrot.slane %v5595_v49, 1  ;;  %v2678_v18 = vrot.slane %v5625_v15, 1  ;;  %v2546_v21 = vshll.u32 %v5595_v49, 16 }
 0x204   : > { %v5606_v56 = vld [vmem:[#allocation2 + $0x6c] sm:$0xff]   ;;  %v4499_v32 = vld [vmem:[#allocation2 + $0x74] ss:$0 sps:$4 sm:$0x11]  }
 0x205   : > { %v2674_v1 = vrot.slane %v5606_v56, 1  ;;  %v2534_v61 = vshll.u32 %v5606_v56, 16  ;;  %v2675_v2 = vrot.slane %v4499_v32, 1  ;;  %v2532_v28 = vshrl.u32 %v5606_v56, 16  ;;  %v5650_v41 = vpop.permute.xlu1 %2619 }
 0x206   : > { %v5632_v48 = vpop.permute.xlu0 %2814  ;;  %v2539_v30 = vshll.u32 %v4499_v32, 16  ;;  %v5653_v40 = vsel %vm6403_vm14, %v2677_v11, %v2678_v18  ;;  %v2548_v43 = vrot.slane %v2546_v21, 1  ;;  %v2203_v21 = vld [vmem:[#allocation2 + $0x8c] sm:$0x1] }
 0x207   : > { %v4372_v52 = vpop.f32.mrf.mxu0  ;;  %2908 = vrot.lane.b32.xlu1 %v2518_v57, %s4592_s13  ;;  %2791 = vrot.lane.b32.xlu0 %v2518_v57, %s4590_s11  ;;  %v2536_v20 = vrot.slane %v2534_v61, 1  ;;  %v2676_v47 = vsel %vm6397_vm1, %v2674_v1, %v2675_v2  ;;  %vm6405_vm1 = vcmask 293888  }
 0x208   : > { %v1517_v44 = vmul.f32 %v5611_v35, %v4372_v52  ;;  %v2541_v32 = vrot.slane %v2539_v30, 1 }
 0x209   : > { %v1441_v19 = vpop.f32.mrf.mxu0  ;;  %v2537_v42 = vor.u32 %v2536_v20, %v2532_v28 }
 0x20a   : > { %v1556_v46 = vadd.f32 %v5620_v45, %v1517_v44  ;;  %v1515_v59 = vmul.f32 %v5611_v35, %v1441_v19  ;;  %v2899_v16 = vpop.permute.xlu0 %2898  ;;  %v2199_v44 = vld [vmem:[#allocation2 + $0x84] sm:$0xf]  ;;  %v2544_v19 = vshrl.u32 %v5595_v49, 16 }
 0x20b   : > { %v4373_v60 = vpop.f32.mrf.mxu0  ;;  %2629 = vrot.lane.b32.xlu1 %v2518_v57, %s4589_s10  ;;  %2748 = vrot.lane.b32.xlu0 %v5606_v56, %s4586_s30  ;;  %v2542_v49 = vsel %vm6399_vm2, %v2537_v42, %v2541_v32 }
 0x20c   : > { %v1588_v53 = vmax.f32 %v1556_v46, 0.0  ;;  %v1554_v39 = vadd.f32 %v5620_v45, %v1515_v59  ;;  %v1518_v63 = vmul.f32 %v5611_v35, %v4373_v60  ;;  %v2551_v46 = vshll.u32 %v5625_v15, 16 }
 0x20d   : > { %v1444_v55 = vpop.f32.mrf.mxu0 }
 0x20e   : > { %v4296_v7 = vpack.c.bf16 %v1588_v53, %v1588_v53  ;;  %v1586_v0 = vmax.f32 %v1554_v39, 0.0  ;;  %v1557_v10 = vadd.f32 %v5620_v45, %v1518_v63  ;;  %v1516_v17 = vmul.f32 %v5611_v35, %v1444_v55  ;;  %v2210_v39 = vld [vmem:[#allocation2 + $0x98] sm:$0x1] }
 0x20f   : > { %2865 = vrot.lane.b32.xlu1 %v5606_v56, %s4591_s12  ;;  %2947 = vrot.lane.b32.xlu0 %v2676_v47, %s4593_s14  ;;  %v2998_v53 = vsel %vm1039_vm4, %v2966_v4, %v5553_v36 }
 0x210   : > { %v1995_v22 = vshrl.u32 %v4296_v7, 16  ;;  %v4294_v23 = vpack.c.bf16 %v1586_v0, %v1586_v0  ;;  %v1589_v24 = vmax.f32 %v1557_v10, 0.0  ;;  %v1555_v37 = vadd.f32 %v5620_v45, %v1516_v17 }
 0x211   : > { %v1998_v9 = vshll.u32 %v4296_v7, 16  ;;  %v2549_v7 = vor.u32 %v2548_v43, %v2544_v19 }
 0x212   : > { %v1997_v33 = vrot.slane %v1995_v22, 7  ;;  %v1978_v26 = vshrl.u32 %v4294_v23, 16  ;;  %v4297_v14 = vpack.c.bf16 %v1589_v24, %v1589_v24  ;;  %v1587_v31 = vmax.f32 %v1555_v37, 0.0 }
 0x213   : > { %v1981_v29 = vshll.u32 %v4294_v23, 16  ;;  %2832 = vrot.lane.b32.xlu1 %v5653_v40, %s4587_s8  ;;  %2830 = vrot.lane.b32.xlu0 %v2676_v47, %s4587_s8  ;;  %v2553_v22 = vrot.slane %v2551_v46, 1  ;;  %v3030_v23 = vsel %vm1072_vm5, %v2998_v53, %v5577_v27 }
 0x214   : > { %v2000_v51 = vor.u32 %v1998_v9, %v1997_v33  ;;  %v1980_v54 = vrot.slane %v1978_v26, 7  ;;  %v2003_v52 = vshrl.u32 %v4297_v14, 16  ;;  %v4295_v57 = vpack.c.bf16 %v1587_v31, %v1587_v31 }
 0x215   : > { %v2006_v61 = vshll.u32 %v4297_v14, 16  ;;  %v5664_v2 = vpop.permute.xlu1 %2738  ;;  %v5666_v55 = vpop.permute.xlu0 %2855  ;;  %v2001_v15 = vrot.slane %v1997_v33, 4  ;;  %v2554_v30 = vsel %vm6404_vm11, %v2549_v7, %v2553_v22  ;;  %vm6406_vm11 = vmmov %vm6405_vm1 }
 0x216   : > { %v2207_v59 = vsel %vm5264_vm13, %v2000_v51, %v2206_v12  ;;  %v1983_v60 = vor.u32 %v1981_v29, %v1980_v54  ;;  %v2005_v1 = vrot.slane %v2003_v52, 7  ;;  %v1986_v63 = vshrl.u32 %v4295_v57, 16  ;;  %v4521_v52 = vld [vmem:[#allocation2 + $0xc] sm:$0xff]  }
 0x217   : > { %2208 = vst [vmem:[#allocation2 + $0x90] sm:$0xf] %v2207_v59  ;;  %v1989_v18 = vshll.u32 %v4295_v57, 16  ;;  %2713 = vrot.lane.b32.xlu1 %v2676_v47, %s4588_s9  ;;  %2795 = vrot.lane.b32.xlu0 %v2542_v49, %s4590_s11  ;;  %v1984_v24 = vrot.slane %v1980_v54, 4 }
 0x218   : > { %v2200_v0 = vsel %vm5264_vm13, %v1983_v60, %v2199_v44  ;;  %v2008_v10 = vor.u32 %v2006_v61, %v2005_v1  ;;  %v2010_v17 = vrot.slane %v2005_v1, 4  ;;  %v1988_v11 = vrot.slane %v1986_v63, 7 }
 0x219   : > { %2201 = vst [vmem:[#allocation2 + $0x84] sm:$0xf] %v2200_v0  ;;  %v2618_v47 = vpop.permute.xlu1 %2617  ;;  %v2780_v37 = vpop.permute.xlu0 %2779 }
 0x21a   : > { %v2009_v36 = vsel %vm5276_vm0, %v2001_v15, %v2008_v10  ;;  %v2211_v20 = vsel %vm5049_vm15, %v2010_v17, %v2210_v39  ;;  %v1991_v25 = vor.u32 %v1989_v18, %v1988_v11  ;;  %v1993_v4 = vrot.slane %v1988_v11, 4 }
 0x21b   : > { %2209 = vst.msk [vmem:[#allocation2 + $0x94] sm:$0xf] %vm1598_vm12, %v2009_v36  ;;  %2212 = vst [vmem:[#allocation2 + $0x98] sm:$0x1] %v2211_v20  ;;  %v3062_v28 = vsel %vm1105_vm6, %v3030_v23, %v2780_v37  ;;  %2797 = vrot.lane.b32.xlu1 %v2554_v30, %s4590_s11  ;;  %2914 = vrot.lane.b32.xlu0 %v2554_v30, %s4592_s13  ;;  %v2968_v44 = vsel %vm1006_vm3, %v4521_v52, %v2618_v47 }
 0x21c   : > { %v1992_v33 = vsel %vm5276_vm0, %v1984_v24, %v1991_v25  ;;  %v2204_v9 = vsel %vm5049_vm15, %v1993_v4, %v2203_v21  ;;  %v3094_v27 = vsel %vm1138_vm7, %v3062_v28, %v5632_v48  ;;  %v3000_v63 = vsel %vm1039_vm4, %v2968_v44, %v5602_v58 }
 0x21d   : > { %2202 = vst.msk [vmem:[#allocation2 + $0x88] sm:$0xf] %vm1598_vm12, %v1992_v33  ;;  %2205 = vst [vmem:[#allocation2 + $0x8c] sm:$0x1] %v2204_v9  ;;  %v3126_v26 = vsel %vm1171_vm8, %v3094_v27, %v5563_v3  ;;  %v5693_v14 = vpop.permute.xlu1 %2853  ;;  %v5695_v12 = vpop.permute.xlu0 %2736  ;;  %v3032_v23 = vsel %vm1072_vm5, %v3000_v63, %v5574_v13 }
 0x21e   : > { %v3158_v31 = vsel %vm1204_vm9, %v3126_v26, %v2899_v16  ;;  %v2220_v26 = vld [vmem:[#allocation2 + $0xa8] sm:$0xf] }
 0x21f   : > { %v3190_v42 = vsel %vm1237_vm10, %v3158_v31, %v5590_v62  ;;  %2912 = vrot.lane.b32.xlu1 %v2542_v49, %s4592_s13  ;;  %2949 = vrot.lane.b32.xlu0 %v5653_v40, %s4593_s14 }
 0x220   : > { %4388 = vmatprep.mubr.msk.bf16.mxu1 %vm6405_vm1, %v3190_v42  ;;  %vm6407_vm1 = vmmov %vm6399_vm2 }
 0x221   : > { %v5704_v48 = vpop.permute.xlu1 %2820  ;;  %v5706_v43 = vpop.permute.xlu0 %2937 }
 0x222   : > { %v5744_v24 = vld [vmem:[#allocation2 + $0x90] sm:$0xff]  }
 0x223   : > { %2633 = vrot.lane.b32.xlu1 %v2542_v49, %s4589_s10 }
 0x224   : > { %v5709_v3 = vld [vmem:[#allocation2 + $0x84] sm:$0xff]   ;;  %v4502_v51 = vld [vmem:[#allocation2 + $0x8c] ss:$0 sps:$4 sm:$0x11]  }
 0x225   : > { %v5711_v16 = vpop.permute.xlu1 %2701  ;;  %v2680_v62 = vrot.slane %v5709_v3, 1  ;;  %v2558_v29 = vshll.u32 %v5709_v3, 16  ;;  %v5717_v32 = vpop.permute.xlu0 %2703  ;;  %v2681_v19 = vrot.slane %v4502_v51, 1  ;;  %v2563_v60 = vshll.u32 %v4502_v51, 16 }
 0x226   : > { %v2556_v39 = vshrl.u32 %v5709_v3, 16  ;;  %v2570_v51 = vshll.u32 %v5744_v24, 16 }
 0x227   : > { %v4376_v54 = vpop.f32.mrf.mxu0  ;;  %2869 = vrot.lane.b32.xlu1 %v5709_v3, %s4591_s12  ;;  %v2560_v59 = vrot.slane %v2558_v29, 1  ;;  %v5724_v53 = vsel %vm6403_vm14, %v2680_v62, %v2681_v19  ;;  %v2565_v36 = vrot.slane %v2563_v60, 1  ;;  %vm6408_vm14 = vmmov %vm6406_vm11 }
 0x228   : > { %v1521_v57 = vmul.f32 %v5611_v35, %v4376_v54  ;;  %2951 = vrot.lane.b32.xlu0 %v5724_v53, %s4593_s14 }
 0x229   : > { %v1457_v46 = vpop.f32.mrf.mxu0  ;;  %v5733_v10 = vpop.permute.xlu0 %2935  ;;  %v2561_v17 = vor.u32 %v2560_v59, %v2556_v39  ;;  %v4507_v39 = vld [vmem:[#allocation2 + $0x98] ss:$0 sps:$4 sm:$0x11]  }
 0x22a   : > { %v1560_v1 = vadd.f32 %v5620_v45, %v1521_v57  ;;  %v1519_v61 = vmul.f32 %v5611_v35, %v1457_v46  ;;  %v5735_v11 = vpop.permute.xlu1 %2785  ;;  %v4522_v57 = vld [vmem:[#allocation2 + $0x18] sm:$0xff]  }
 0x22b   : > { %v4377_v49 = vpop.f32.mrf.mxu0  ;;  %2635 = vrot.lane.b32.xlu1 %v2554_v30, %s4589_s10  ;;  %v2566_v28 = vsel %vm6399_vm2, %v2561_v17, %v2565_v36  ;;  %v2970_v19 = vsel %vm1006_vm3, %v4522_v57, %v5650_v41  ;;  %v2213_v46 = vld [vmem:[#allocation2 + $0x9c] sm:$0xf]  ;;  %vm6409_vm2 = vcmask 1046528  }
 0x22c   : > { %v1592_v7 = vmax.f32 %v1560_v1, 0.0  ;;  %v1558_v15 = vadd.f32 %v5620_v45, %v1519_v61  ;;  %v1522_v0 = vmul.f32 %v5611_v35, %v4377_v49  ;;  %2715 = vrot.lane.b32.xlu0 %v5653_v40, %s4588_s9  ;;  %v3064_v40 = vsel %vm1105_vm6, %v3032_v23, %v5628_v34  ;;  %v2224_v49 = vld [vmem:[#allocation2 + $0xb0] sm:$0x1] }
 0x22d   : > { %v1460_v18 = vpop.f32.mrf.mxu0  ;;  %v5746_v37 = vpop.permute.xlu0 %2818  ;;  %v3096_v63 = vsel %vm1138_vm7, %v3064_v40, %v5588_v38 }
 0x22e   : > { %v4300_v20 = vpack.c.bf16 %v1592_v7, %v1592_v7  ;;  %v1590_v58 = vmax.f32 %v1558_v15, 0.0  ;;  %v1561_v21 = vadd.f32 %v5620_v45, %v1522_v0  ;;  %v1520_v22 = vmul.f32 %v5611_v35, %v1460_v18  ;;  %v5753_v42 = vpop.permute.xlu1 %2623 }
 0x22f   : > { %2916 = vrot.lane.b32.xlu1 %v2566_v28, %s4592_s13  ;;  %v2572_v15 = vrot.slane %v2570_v51, 1 }
 0x230   : > { %v2029_v25 = vshrl.u32 %v4300_v20, 16  ;;  %v4298_v4 = vpack.c.bf16 %v1590_v58, %v1590_v58  ;;  %v1593_v47 = vmax.f32 %v1561_v21, 0.0  ;;  %v1559_v30 = vadd.f32 %v5620_v45, %v1520_v22  ;;  %2752 = vrot.lane.b32.xlu0 %v5709_v3, %s4586_s30 }
 0x231   : > { %v2032_v9 = vshll.u32 %v4300_v20, 16  ;;  %v2903_v44 = vpop.permute.xlu0 %2902  ;;  %v3002_v58 = vsel %vm1039_vm4, %v2970_v19, %v5604_v50  ;;  %v2683_v19 = vrot.slane %v5744_v24, 1 }
 0x232   : > { %v2031_v33 = vrot.slane %v2029_v25, 7  ;;  %v2012_v27 = vshrl.u32 %v4298_v4, 16  ;;  %v4301_v13 = vpack.c.bf16 %v1593_v47, %v1593_v47  ;;  %v1591_v31 = vmax.f32 %v1559_v30, 0.0  ;;  %v2217_v25 = vld [vmem:[#allocation2 + $0xa4] sm:$0x1] }
 0x233   : > { %v2015_v29 = vshll.u32 %v4298_v4, 16  ;;  %2637 = vrot.lane.b32.xlu1 %v2566_v28, %s4589_s10  ;;  %v2568_v4 = vshrl.u32 %v5744_v24, 16  ;;  %v2575_v47 = vshll.u32 %v4507_v39, 16 }
 0x234   : > { %v2034_v54 = vor.u32 %v2032_v9, %v2031_v33  ;;  %v2014_v62 = vrot.slane %v2012_v27, 7  ;;  %v2037_v52 = vshrl.u32 %v4301_v13, 16  ;;  %v4299_v34 = vpack.c.bf16 %v1591_v31, %v1591_v31  ;;  %2799 = vrot.lane.b32.xlu0 %v2566_v28, %s4590_s11 }
 0x235   : > { %v2040_v61 = vshll.u32 %v4301_v13, 16  ;;  %v5766_v41 = vpop.permute.xlu1 %2742  ;;  %v2035_v0 = vrot.slane %v2031_v33, 4  ;;  %v5770_v20 = vpop.permute.xlu0 %2859  ;;  %v3128_v28 = vsel %vm1171_vm8, %v3096_v63, %v5693_v14  ;;  %v3034_v27 = vsel %vm1072_vm5, %v3002_v58, %v5695_v12 }
 0x236   : > { %v2221_v59 = vsel %vm5264_vm13, %v2034_v54, %v2220_v26  ;;  %v2017_v60 = vor.u32 %v2015_v29, %v2014_v62  ;;  %v2039_v1 = vrot.slane %v2037_v52, 7  ;;  %v2020_v7 = vshrl.u32 %v4299_v34, 16 }
 0x237   : > { %2222 = vst [vmem:[#allocation2 + $0xa8] sm:$0xf] %v2221_v59  ;;  %v2023_v21 = vshll.u32 %v4299_v34, 16  ;;  %2717 = vrot.lane.b32.xlu1 %v5724_v53, %s4588_s9  ;;  %v2018_v50 = vrot.slane %v2014_v62, 4  ;;  %v2573_v26 = vor.u32 %v2572_v15, %v2568_v4  ;;  %v2577_v54 = vrot.slane %v2575_v47, 1 }
 0x238   : > { %v2214_v17 = vsel %vm5264_vm13, %v2017_v60, %v2213_v46  ;;  %v2042_v18 = vor.u32 %v2040_v61, %v2039_v1  ;;  %v2044_v36 = vrot.slane %v2039_v1, 4  ;;  %v2022_v38 = vrot.slane %v2020_v7, 7  ;;  %2834 = vrot.lane.b32.xlu0 %v5724_v53, %s4587_s8 }
 0x239   : > { %2215 = vst [vmem:[#allocation2 + $0x9c] sm:$0xf] %v2214_v17  ;;  %v2901_v9 = vpop.permute.xlu1 %2900  ;;  %v2784_v40 = vpop.permute.xlu0 %2783 }
 0x23a   : > { %v2043_v22 = vsel %vm5276_vm0, %v2035_v0, %v2042_v18  ;;  %v2225_v23 = vsel %vm5049_vm15, %v2044_v36, %v2224_v49  ;;  %v2025_v30 = vor.u32 %v2023_v21, %v2022_v38  ;;  %v2027_v33 = vrot.slane %v2022_v38, 4 }
 0x23b   : > { %2223 = vst.msk [vmem:[#allocation2 + $0xac] sm:$0xf] %vm1598_vm12, %v2043_v22  ;;  %2226 = vst [vmem:[#allocation2 + $0xb0] sm:$0x1] %v2225_v23  ;;  %v3160_v13 = vsel %vm1204_vm9, %v3128_v28, %v2901_v9  ;;  %v3066_v51 = vsel %vm1105_vm6, %v3034_v27, %v2784_v40  ;;  %2754 = vrot.lane.b32.xlu1 %v5744_v24, %s4586_s30  ;;  %v4523_v22 = vld [vmem:[#allocation2 + $0x24] sm:$0xff]  }
 0x23c   : > { %v2026_v14 = vsel %vm5276_vm0, %v2018_v50, %v2025_v30  ;;  %v2218_v31 = vsel %vm5049_vm15, %v2027_v33, %v2217_v25  ;;  %v3192_v53 = vsel %vm1237_vm10, %v3160_v13, %v5733_v10  ;;  %v3098_v12 = vsel %vm1138_vm7, %v3066_v51, %v5746_v37  ;;  %2871 = vrot.lane.b32.xlu0 %v5744_v24, %s4591_s12 }
 0x23d   : > { %2216 = vst.msk [vmem:[#allocation2 + $0xa0] sm:$0xf] %vm1598_vm12, %v2026_v14  ;;  %2219 = vst [vmem:[#allocation2 + $0xa4] sm:$0x1] %v2218_v31  ;;  %4389 = vmatmul.mubr.msk.bf16.vlgmr.msra.gmra.mxu1 %vm6406_vm11, %v3192_v53  ;;  %v3130_v62 = vsel %vm1171_vm8, %v3098_v12, %v5666_v55  ;;  %v2622_v29 = vpop.permute.xlu1 %2621  ;;  %v5806_v52 = vpop.permute.xlu0 %2740  ;;  %v5809_v10 = vsel %vm6407_vm1, %v2573_v26, %v2577_v54  ;;  %v2684_v37 = vrot.slane %v4507_v39, 1 }
 0x23e   : > { %v3162_v57 = vsel %vm1204_vm9, %v3130_v62, %v2903_v44  ;;  %v2972_v23 = vsel %vm1006_vm3, %v4523_v22, %v2622_v29  ;;  %vm6410_vm11 = vmmov %vm6409_vm2 }
 0x23f   : > { %2801 = vrot.lane.b32.xlu1 %v5809_v10, %s4590_s11  ;;  %v3194_v55 = vsel %vm1237_vm10, %v3162_v57, %v5706_v43  ;;  %v2685_v44 = vsel %vm6409_vm2, %v2683_v19, %v2684_v37  ;;  %v3004_v14 = vsel %vm1039_vm4, %v2972_v23, %v5711_v16  ;;  %v2234_v37 = vld [vmem:[#allocation2 + $0xc0] sm:$0xf] }
 0x240   : > { %4392 = vmatprep.mubr.msk.bf16.mxu1 %vm6408_vm14, %v3194_v55  ;;  %2918 = vrot.lane.b32.xlu0 %v5809_v10, %s4592_s13  ;;  %v3036_v16 = vsel %vm1072_vm5, %v3004_v14, %v5664_v2 }
 0x241   : > { %v5820_v46 = vpop.permute.xlu1 %2857  ;;  %v5822_v34 = vpop.permute.xlu0 %2941 }
 0x243   : > { %2836 = vrot.lane.b32.xlu1 %v2685_v44, %s4587_s8 }
 0x244   : > { %v4380_v59 = vpop.f32.mrf.mxu0  ;;  %v5827_v1 = vld [vmem:[#allocation2 + $0x9c] sm:$0xff]   ;;  %v4509_v43 = vld [vmem:[#allocation2 + $0xa4] ss:$0 sps:$4 sm:$0x11]   ;;  %2953 = vrot.lane.b32.xlu0 %v2685_v44, %s4593_s14 }
 0x245   : > { %v1525_v60 = vmul.f32 %v5611_v35, %v4380_v59  ;;  %v5832_v49 = vpop.permute.xlu1 %2824  ;;  %v2686_v7 = vrot.slane %v5827_v1, 1  ;;  %v5835_v15 = vpop.permute.xlu0 %2707  ;;  %v2687_v17 = vrot.slane %v4509_v43, 1  ;;  %v2582_v18 = vshll.u32 %v5827_v1, 16 }
 0x246   : > { %v1473_v61 = vpop.f32.mrf.mxu0  ;;  %v2587_v36 = vshll.u32 %v4509_v43, 16  ;;  %v2580_v47 = vshrl.u32 %v5827_v1, 16 }
 0x247   : > { %v1564_v39 = vadd.f32 %v5620_v45, %v1525_v60  ;;  %v1523_v63 = vmul.f32 %v5611_v35, %v1473_v61  ;;  %2873 = vrot.lane.b32.xlu1 %v5827_v1, %s4591_s12  ;;  %v5844_v4 = vsel %vm6410_vm11, %v2686_v7, %v2687_v17  ;;  %v2584_v28 = vrot.slane %v2582_v18, 1  ;;  %v5865_v7 = vld [vmem:[#allocation2 + $0xa8] sm:$0xff]  }
 0x248   : > { %v4381_v0 = vpop.f32.mrf.mxu0  ;;  %2955 = vrot.lane.b32.xlu0 %v5844_v4, %s4593_s14  ;;  %v2589_v26 = vrot.slane %v2587_v36, 1  ;;  %v3068_v36 = vsel %vm1105_vm6, %v3036_v16, %v5735_v11 }
 0x249   : > { %v1596_v58 = vmax.f32 %v1564_v39, 0.0  ;;  %v1562_v38 = vadd.f32 %v5620_v45, %v1523_v63  ;;  %v1526_v21 = vmul.f32 %v5611_v35, %v4381_v0  ;;  %v5851_v27 = vpop.permute.xlu1 %2705  ;;  %v5853_v13 = vpop.permute.xlu0 %2939  ;;  %v2585_v40 = vor.u32 %v2584_v28, %v2580_v47  ;;  %v2227_v39 = vld [vmem:[#allocation2 + $0xb4] sm:$0xf] }
 0x24a   : > { %v1476_v25 = vpop.f32.mrf.mxu0 }
 0x24b   : > { %v4304_v50 = vpack.c.bf16 %v1596_v58, %v1596_v58  ;;  %v1594_v30 = vmax.f32 %v1562_v38, 0.0  ;;  %v1565_v33 = vadd.f32 %v5620_v45, %v1526_v21  ;;  %v1524_v9 = vmul.f32 %v5611_v35, %v1476_v25  ;;  %v2238_v58 = vld [vmem:[#allocation2 + $0xc8] sm:$0x1] }
 0x24c   : > { %v2590_v54 = vsel %vm6407_vm1, %v2585_v40, %v2589_v26  ;;  %2719 = vrot.lane.b32.xlu0 %v2685_v44, %s4588_s9  ;;  %v2231_v40 = vld [vmem:[#allocation2 + $0xbc] sm:$0x1]  ;;  %v3100_v26 = vsel %vm1138_vm7, %v3068_v36, %v5704_v48 }
 0x24d   : > { %v2063_v31 = vshrl.u32 %v4304_v50, 16  ;;  %v4302_v51 = vpack.c.bf16 %v1594_v30, %v1594_v30  ;;  %v1597_v53 = vmax.f32 %v1565_v33, 0.0  ;;  %v1563_v12 = vadd.f32 %v5620_v45, %v1524_v9  ;;  %2920 = vrot.lane.b32.xlu1 %v2590_v54, %s4592_s13  ;;  %v5861_v19 = vpop.permute.xlu1 %2789  ;;  %v2823_v59 = vpop.permute.xlu0 %2822  ;;  %v4524_v30 = vld [vmem:[#allocation2 + $0x30] sm:$0xff]  }
 0x24e   : > { %v2066_v62 = vshll.u32 %v4304_v50, 16  ;;  %v2594_v50 = vshll.u32 %v5865_v7, 16  ;;  %v2974_v33 = vsel %vm1006_vm3, %v4524_v30, %v5753_v42  ;;  %v3132_v48 = vsel %vm1171_vm8, %v3100_v26, %v5820_v46 }
 0x24f   : > { %v2065_v35 = vrot.slane %v2063_v31, 7  ;;  %v2046_v29 = vshrl.u32 %v4302_v51, 16  ;;  %v4305_v57 = vpack.c.bf16 %v1597_v53, %v1597_v53  ;;  %v1595_v55 = vmax.f32 %v1563_v12, 0.0  ;;  %v4511_v53 = vld [vmem:[#allocation2 + $0xb0] ss:$0 sps:$4 sm:$0x11]  }
 0x250   : > { %v2049_v61 = vshll.u32 %v4302_v51, 16  ;;  %2756 = vrot.lane.b32.xlu0 %v5827_v1, %s4586_s30  ;;  %v2599_v16 = vshll.u32 %v4511_v53, 16 }
 0x251   : > { %v2068_v60 = vor.u32 %v2066_v62, %v2065_v35  ;;  %v2048_v45 = vrot.slane %v2046_v29, 7  ;;  %v2071_v43 = vshrl.u32 %v4305_v57, 16  ;;  %v4303_v63 = vpack.c.bf16 %v1595_v55, %v1595_v55  ;;  %2639 = vrot.lane.b32.xlu1 %v5809_v10, %s4589_s10  ;;  %v5873_v2 = vpop.permute.xlu1 %2627  ;;  %v2907_v21 = vpop.permute.xlu0 %2906 }
 0x252   : > { %v2074_v18 = vshll.u32 %v4305_v57, 16  ;;  %v2069_v22 = vrot.slane %v2065_v35, 4  ;;  %v2596_v35 = vrot.slane %v2594_v50, 1  ;;  %v3006_v62 = vsel %vm1039_vm4, %v2974_v33, %v5717_v32  ;;  %v4525_v50 = vld [vmem:[#allocation2 + $0x3c] sm:$0xff]  }
 0x253   : > { %v2235_v0 = vsel %vm5264_vm13, %v2068_v60, %v2234_v37  ;;  %v2051_v44 = vor.u32 %v2049_v61, %v2048_v45  ;;  %v2073_v17 = vrot.slane %v2071_v43, 7  ;;  %v2054_v38 = vshrl.u32 %v4303_v63, 16 }
 0x254   : > { %2236 = vst [vmem:[#allocation2 + $0xc0] sm:$0xf] %v2235_v0  ;;  %v2057_v28 = vshll.u32 %v4303_v63, 16  ;;  %2803 = vrot.lane.b32.xlu0 %v2590_v54, %s4590_s11  ;;  %v2052_v14 = vrot.slane %v2048_v45, 4  ;;  %v3038_v6 = vsel %vm1072_vm5, %v3006_v62, %v5806_v52  ;;  %v2592_v32 = vshrl.u32 %v5865_v7, 16  ;;  %v4526_v62 = vld [vmem:[#allocation2 + $0x48] sm:$0xff]  }
 0x255   : > { %v2228_v23 = vsel %vm5264_vm13, %v2051_v44, %v2227_v39  ;;  %v2076_v25 = vor.u32 %v2074_v18, %v2073_v17  ;;  %v2078_v47 = vrot.slane %v2073_v17, 4  ;;  %v2056_v10 = vrot.slane %v2054_v38, 7  ;;  %2641 = vrot.lane.b32.xlu1 %v2590_v54, %s4589_s10  ;;  %v5888_v5 = vpop.permute.xlu1 %2746  ;;  %v5893_v51 = vpop.permute.xlu0 %2863  ;;  %vm6414_vm13 = vmmov %vm6409_vm2 }
 0x256   : > { %2229 = vst [vmem:[#allocation2 + $0xb4] sm:$0xf] %v2228_v23  ;;  %v2689_v43 = vrot.slane %v5865_v7, 1  ;;  %v2690_v39 = vrot.slane %v4511_v53, 1 }
 0x257   : > { %v2077_v11 = vsel %vm5276_vm0, %v2069_v22, %v2076_v25  ;;  %v2239_v9 = vsel %vm5049_vm15, %v2078_v47, %v2238_v58  ;;  %v2059_v42 = vor.u32 %v2057_v28, %v2056_v10  ;;  %v2061_v31 = vrot.slane %v2056_v10, 4 }
 0x258   : > { %2237 = vst.msk [vmem:[#allocation2 + $0xc4] sm:$0xf] %vm1598_vm12, %v2077_v11  ;;  %2240 = vst [vmem:[#allocation2 + $0xc8] sm:$0x1] %v2239_v9  ;;  %2838 = vrot.lane.b32.xlu0 %v5844_v4, %s4587_s8 }
 0x259   : > { %v2060_v12 = vsel %vm5276_vm0, %v2052_v14, %v2059_v42  ;;  %v2232_v54 = vsel %vm5049_vm15, %v2061_v31, %v2231_v40  ;;  %2721 = vrot.lane.b32.xlu1 %v5844_v4, %s4588_s9  ;;  %v2905_v8 = vpop.permute.xlu1 %2904  ;;  %v2788_v57 = vpop.permute.xlu0 %2787  ;;  %vm6411_vm0 = vmmov %vm6408_vm14  ;;  %v2597_v4 = vor.u32 %v2596_v35, %v2592_v32 }
 0x25a   : > { %2230 = vst.msk [vmem:[#allocation2 + $0xb8] sm:$0xf] %vm1598_vm12, %v2060_v12  ;;  %2233 = vst [vmem:[#allocation2 + $0xbc] sm:$0x1] %v2232_v54  ;;  %v3164_v29 = vsel %vm1204_vm9, %v3132_v48, %v2905_v8  ;;  %v3070_v46 = vsel %vm1105_vm6, %v3038_v6, %v2788_v57 }
 0x25b   : > { %v3196_v37 = vsel %vm1237_vm10, %v3164_v29, %v5853_v13  ;;  %v3102_v55 = vsel %vm1138_vm7, %v3070_v46, %v2823_v59  ;;  %v2601_v13 = vrot.slane %v2599_v16, 1  ;;  %vm6412_vm12 = vmmov %vm6411_vm0 }
 0x25c   : > { %4393 = vmatmul.mubr.msk.bf16.gmra.mxu1 %vm6411_vm0, %v3196_v37  ;;  %v3134_v60 = vsel %vm1171_vm8, %v3102_v55, %v5770_v20  ;;  %2875 = vrot.lane.b32.xlu0 %v5865_v7, %s4591_s12  ;;  %vm6413_vm15 = vmmov %vm6407_vm1  ;;  %v4516_v55 = vld [vmem:[#allocation2 + $0xcc] sm:$0xff]  }
 0x25d   : > { %2758 = vrot.lane.b32.xlu1 %v5865_v7, %s4586_s30  ;;  %v2626_v52 = vpop.permute.xlu1 %2625  ;;  %v5923_v45 = vpop.permute.xlu0 %2744  ;;  %v3166_v61 = vsel %vm1204_vm9, %v3134_v60, %v2907_v21  ;;  %v2602_v20 = vsel %vm6413_vm15, %v2597_v4, %v2601_v13  ;;  %vm6415_vm14 = vmmov %vm6409_vm2 }
 0x25e   : > { %v3198_v59 = vsel %vm1237_vm10, %v3166_v61, %v5822_v34  ;;  %v2691_v34 = vsel %vm6414_vm13, %v2689_v43, %v2690_v39  ;;  %v2976_v30 = vsel %vm1006_vm3, %v4525_v50, %v2626_v52  ;;  %vm6416_vm2 = vmmov %vm6407_vm1  ;;  %v2889_v39 = vshll.u32 %v4516_v55, 16 }
 0x25f   : > { %4396 = vmatprep.mubr.msk.bf16.mxu1 %vm6412_vm12, %v3198_v59  ;;  %v3008_v40 = vsel %vm1039_vm4, %v2976_v30, %v5851_v27  ;;  %v4514_v31 = vld [vmem:[#allocation2 + $0xc0] sm:$0xff]   ;;  %v4515_v6 = vld [vmem:[#allocation2 + $0xc8] ss:$0 sps:$4 sm:$0x11]   ;;  %vm6417_vm11 = vmmov %vm6411_vm0 }
 0x260   : > { %2922 = vrot.lane.b32.xlu0 %v2602_v20, %s4592_s13  ;;  %v3040_v42 = vsel %vm1072_vm5, %v3008_v40, %v5766_v41  ;;  %v2770_v54 = vshll.u32 %v4514_v31, 16  ;;  %v2978_v41 = vsel %vm1006_vm3, %v4526_v62, %v5873_v2  ;;  %v2768_v46 = vshrl.u32 %v4514_v31, 16  ;;  %vm6418_vm1 = vmmov %vm6411_vm0  ;;  %v4528_v30 = vld [vmem:[#allocation2 + $0x60] sm:$0xff]  }
 0x261   : > { %v5931_v63 = vld [vmem:[#allocation2 + $0xb4] sm:$0xff]   ;;  %2805 = vrot.lane.b32.xlu1 %v2602_v20, %s4590_s11  ;;  %v2862_v0 = vpop.permute.xlu1 %2861  ;;  %v4513_v44 = vld [vmem:[#allocation2 + $0xbc] ss:$0 sps:$4 sm:$0x11]   ;;  %v5935_v17 = vpop.permute.xlu0 %2945  ;;  %v3072_v27 = vsel %vm1105_vm6, %v3040_v42, %v5861_v19  ;;  %v3010_v19 = vsel %vm1039_vm4, %v2978_v41, %v5835_v15  ;;  %v2775_v37 = vshll.u32 %v4515_v6, 16  ;;  %vm6419_vm0 = vmmov %vm6416_vm2 }
 0x262   : > { %v2606_v18 = vshll.u32 %v5931_v63, 16  ;;  %v2692_v36 = vrot.slane %v5931_v63, 1  ;;  %v2693_v58 = vrot.slane %v4513_v44, 1  ;;  %v2604_v23 = vshrl.u32 %v5931_v63, 16  ;;  %vm6420_vm12 = vmmov %vm6414_vm13 }
 0x263   : > { %v2611_v25 = vshll.u32 %v4513_v44, 16  ;;  %v3104_v48 = vsel %vm1138_vm7, %v3072_v27, %v5832_v49  ;;  %v2772_v29 = vrot.slane %v2770_v54, 1  ;;  %v3042_v2 = vsel %vm1072_vm5, %v3010_v19, %v5923_v45  ;;  %vm6421_vm15 = vmmov %vm6419_vm0 }
 0x264   : > { %v2608_v38 = vrot.slane %v2606_v18, 1  ;;  %2957 = vrot.lane.b32.xlu0 %v2691_v34, %s4593_s14  ;;  %v2694_v47 = vsel %vm6415_vm14, %v2692_v36, %v2693_v58  ;;  %v3136_v57 = vsel %vm1171_vm8, %v3104_v48, %v2862_v0  ;;  %v2777_v43 = vrot.slane %v2775_v37, 1  ;;  %v4527_v36 = vld [vmem:[#allocation2 + $0x54] sm:$0xff]   ;;  %vm6422_vm13 = vmmov %vm6420_vm12 }
 0x265   : > { %2840 = vrot.lane.b32.xlu1 %v2691_v34, %s4587_s8  ;;  %v5942_v21 = vpop.permute.xlu1 %2828  ;;  %v5944_v22 = vpop.permute.xlu0 %2711  ;;  %v2613_v11 = vrot.slane %v2611_v25, 1  ;;  %v2773_v52 = vor.u32 %v2772_v29, %v2768_v46  ;;  %v2811_v18 = vrot.slane %v4514_v31, 1  ;;  %v2891_v25 = vrot.slane %v2889_v39, 1  ;;  %vm6423_vm14 = vmmov %vm6418_vm1 }
 0x266   : > { %v2609_v10 = vor.u32 %v2608_v38, %v2604_v23  ;;  %v2887_v23 = vshrl.u32 %v4516_v55, 16  ;;  %v2930_v54 = vrot.slane %v4516_v55, 1 }
 0x267   : > { %v2778_v44 = vsel %vm6419_vm0, %v2773_v52, %v2777_v43  ;;  %vm6426_vm0 = vmmov %vm6418_vm1 }
 0x268   : > { %2959 = vrot.lane.b32.xlu0 %v2694_v47, %s4593_s14  ;;  %v2614_v9 = vsel %vm6416_vm2, %v2609_v10, %v2613_v11  ;;  %vm6424_vm2 = vmmov %vm6418_vm1 }
 0x269   : > { %2877 = vrot.lane.b32.xlu1 %v5931_v63, %s4591_s12  ;;  %v5951_v28 = vpop.permute.xlu1 %2709  ;;  %v2944_v33 = vpop.permute.xlu0 %2943 }
 0x26c   : > { %2723 = vrot.lane.b32.xlu0 %v2691_v34, %s4588_s9 }
 0x26d   : > { %2924 = vrot.lane.b32.xlu1 %v2614_v9, %s4592_s13  ;;  %v5959_v26 = vpop.permute.xlu1 %2793  ;;  %v2827_v14 = vpop.permute.xlu0 %2826 }
 0x270   : > { %2760 = vrot.lane.b32.xlu0 %v5931_v63, %s4586_s30 }
 0x271   : > { %2643 = vrot.lane.b32.xlu1 %v2602_v20, %s4589_s10  ;;  %v2632_v53 = vpop.permute.xlu1 %2631  ;;  %v2911_v12 = vpop.permute.xlu0 %2910  ;;  %v4517_v20 = vld [vmem:[#allocation2 + $0xd4] ss:$0 sps:$4 sm:$0x11]  }
 0x272   : > { %v2931_v62 = vrot.slane %v4517_v20, 1 }
 0x274   : > { %2807 = vrot.lane.b32.xlu0 %v2614_v9, %s4590_s11  ;;  %v2932_v29 = vsel %vm6422_vm13, %v2930_v54, %v2931_v62  ;;  %vm3437_vm13 = vsmask.f32 3328 }
 0x275   : > { %2645 = vrot.lane.b32.xlu1 %v2614_v9, %s4589_s10  ;;  %v5970_v35 = vpop.permute.xlu1 %2750  ;;  %v5976_v8 = vpop.permute.xlu0 %2867  ;;  %v2892_v9 = vor.u32 %v2891_v25, %v2887_v23 }
 0x278   : > { %2842 = vrot.lane.b32.xlu0 %v2694_v47, %s4587_s8 }
 0x279   : > { %2725 = vrot.lane.b32.xlu1 %v2694_v47, %s4588_s9  ;;  %v2909_v32 = vpop.permute.xlu1 %2908  ;;  %v2792_v49 = vpop.permute.xlu0 %2791  ;;  %v2894_v47 = vshll.u32 %v4517_v20, 16 }
 0x27a   : > { %v3168_v16 = vsel %vm1204_vm9, %v3136_v57, %v2909_v32  ;;  %v3074_v4 = vsel %vm1105_vm6, %v3042_v2, %v2792_v49 }
 0x27b   : > { %v3200_v15 = vsel %vm1237_vm10, %v3168_v16, %v2944_v33  ;;  %v3106_v60 = vsel %vm1138_vm7, %v3074_v4, %v2827_v14  ;;  %v2982_v33 = vsel %vm1006_vm3, %v4528_v30, %v2632_v53  ;;  %v2896_v40 = vrot.slane %v2894_v47, 1 }
 0x27c   : > { %4397 = vmatmul.mubr.msk.bf16.gmra.mxu1 %vm6417_vm11, %v3200_v15  ;;  %v3138_v61 = vsel %vm1171_vm8, %v3106_v60, %v5893_v51  ;;  %2879 = vrot.lane.b32.xlu0 %v4514_v31, %s4591_s12  ;;  %v2812_v51 = vrot.slane %v4515_v6, 1  ;;  %v3014_v42 = vsel %vm1039_vm4, %v2982_v33, %v5944_v22  ;;  %vm6425_vm11 = vmmov %vm6418_vm1 }
 0x27d   : > { %2762 = vrot.lane.b32.xlu1 %v4514_v31, %s4586_s30  ;;  %v2630_v45 = vpop.permute.xlu1 %2629  ;;  %v2749_v13 = vpop.permute.xlu0 %2748  ;;  %v3170_v59 = vsel %vm1204_vm9, %v3138_v61, %v2911_v12  ;;  %v2897_v27 = vsel %vm6421_vm15, %v2892_v9, %v2896_v40  ;;  %vm6428_vm15 = vmmov %vm6426_vm0 }
 0x27e   : > { %v3202_v0 = vsel %vm1237_vm10, %v3170_v59, %v5935_v17  ;;  %v2980_v58 = vsel %vm1006_vm3, %v4527_v36, %v2630_v45  ;;  %v2813_v17 = vsel %vm6420_vm12, %v2811_v18, %v2812_v51  ;;  %v3046_v31 = vsel %vm1072_vm5, %v3014_v42, %v2749_v13  ;;  %v4529_v51 = vld [vmem:[#allocation2 + $0x78] sm:$0xff]   ;;  %vm6427_vm12 = vmmov %vm6426_vm0 }
 0x27f   : > { %4400 = vmatprep.mubr.msk.bf16.mxu1 %vm6418_vm1, %v3202_v0  ;;  %v3012_v10 = vsel %vm1039_vm4, %v2980_v58, %v5951_v28 }
 0x280   : > { %2926 = vrot.lane.b32.xlu0 %v2778_v44, %s4592_s13  ;;  %v3044_v14 = vsel %vm1072_vm5, %v3012_v10, %v5888_v5 }
 0x281   : > { %2809 = vrot.lane.b32.xlu1 %v2778_v44, %s4590_s11  ;;  %v2866_v34 = vpop.permute.xlu1 %2865  ;;  %v2948_v38 = vpop.permute.xlu0 %2947  ;;  %v3076_v53 = vsel %vm1105_vm6, %v3044_v14, %v5959_v26  ;;  %s4273_s11 = sshll.u32 %s6434_s25, 8 }
 0x282   : > { %v3108_v48 = vsel %vm1138_vm7, %v3076_v53, %v5942_v21 }
 0x283   : > { %v3140_v57 = vsel %vm1171_vm8, %v3108_v48, %v2866_v34 }
 0x284   : > { %2961 = vrot.lane.b32.xlu0 %v2813_v17, %s4593_s14 }
 0x285   : > { %2844 = vrot.lane.b32.xlu1 %v2813_v17, %s4587_s8  ;;  %v2833_v50 = vpop.permute.xlu1 %2832  ;;  %v2831_v11 = vpop.permute.xlu0 %2830 }
 0x289   : > { %2881 = vrot.lane.b32.xlu1 %v4516_v55, %s4591_s12  ;;  %v2714_v28 = vpop.permute.xlu1 %2713  ;;  %v2796_v12 = vpop.permute.xlu0 %2795 }
 0x28a   : > { %v3078_v41 = vsel %vm1105_vm6, %v3046_v31, %v2796_v12 }
 0x28b   : > { %v3110_v5 = vsel %vm1138_vm7, %v3078_v41, %v2831_v11 }
 0x28c   : > { %v3142_v19 = vsel %vm1171_vm8, %v3110_v5, %v5976_v8 }
 0x28d   : > { %2928 = vrot.lane.b32.xlu1 %v2897_v27, %s4592_s13  ;;  %v2798_v22 = vpop.permute.xlu1 %2797  ;;  %v2915_v6 = vpop.permute.xlu0 %2914  ;;  %s6137_s13 = scalar_lea.vmem %s6373_s7, %s4273_s11 }
 0x28e   : > { %v3174_v16 = vsel %vm1204_vm9, %v3142_v19, %v2915_v6 }
 0x291   : > { %2963 = vrot.lane.b32.xlu1 %v2932_v29, %s4593_s14  ;;  %v2913_v26 = vpop.permute.xlu1 %2912  ;;  %v2950_v2 = vpop.permute.xlu0 %2949 }
 0x292   : > { %v3172_v32 = vsel %vm1204_vm9, %v3140_v57, %v2913_v26  ;;  %v3206_v21 = vsel %vm1237_vm10, %v3174_v16, %v2950_v2 }
 0x293   : > { %v3204_v49 = vsel %vm1237_vm10, %v3172_v32, %v2948_v38 }
 0x294   : > { %4401 = vmatmul.mubr.msk.bf16.gmra.mxu1 %vm6423_vm14, %v3204_v49  ;;  %vm3438_vm14 = vsmask.f32 7440 }
 0x295   : > { %v2634_v46 = vpop.permute.xlu1 %2633  ;;  %4404 = vmatprep.mubr.msk.bf16.mxu1 %vm6424_vm2, %v3206_v21  ;;  %vm6097_vm2 = vmor %vm3437_vm13, %vm3438_vm14 }
 0x296   : > { %v2984_v8 = vsel %vm1006_vm3, %v5606_v56, %v2634_v46 }
 0x297   : > { %v3016_v37 = vsel %vm1039_vm4, %v2984_v8, %v2714_v28 }
 0x298   : > { %v3048_v55 = vsel %vm1072_vm5, %v3016_v37, %v5970_v35 }
 0x299   : > { %v2870_v4 = vpop.permute.xlu1 %2869  ;;  %v3080_v15 = vsel %vm1105_vm6, %v3048_v55, %v2798_v22 }
 0x29a   : > { %v2952_v60 = vpop.permute.xlu0 %2951  ;;  %v3112_v61 = vsel %vm1138_vm7, %v3080_v15, %v2833_v50 }
 0x29b   : > { %v3144_v13 = vsel %vm1171_vm8, %v3112_v61, %v2870_v4 }
 0x29d   : > { %v2636_v52 = vpop.permute.xlu1 %2635 }
 0x29e   : > { %v2716_v45 = vpop.permute.xlu0 %2715  ;;  %v2986_v34 = vsel %vm1006_vm3, %v4529_v51, %v2636_v52  ;;  %v4530_v51 = vld [vmem:[%s4649_s29 + $0x18] sm:$0xf] }
 0x29f   : > { %v3018_v38 = vsel %vm1039_vm4, %v2986_v34, %v2716_v45  ;;  %v3465_v34 = vshrl.u32 %v4530_v51, 16 }
 0x2a1   : > { %v2917_v59 = vpop.permute.xlu1 %2916 }
 0x2a2   : > { %v3176_v43 = vsel %vm1204_vm9, %v3144_v13, %v2917_v59  ;;  %v2753_v20 = vpop.permute.xlu0 %2752 }
 0x2a3   : > { %v3208_v56 = vsel %vm1237_vm10, %v3176_v43, %v2952_v60  ;;  %v3050_v23 = vsel %vm1072_vm5, %v3018_v38, %v2753_v20 }
 0x2a4   : > { %4405 = vmatmul.mubr.msk.bf16.gmra.mxu1 %vm6425_vm11, %v3208_v56  ;;  %vm6431_vm11 = vmmov %vm6426_vm0 }
 0x2a5   : > { %v2638_v39 = vpop.permute.xlu1 %2637 }
 0x2a6   : > { %v2800_v35 = vpop.permute.xlu0 %2799  ;;  %v2988_v40 = vsel %vm1006_vm3, %v5709_v3, %v2638_v39 }
 0x2a7   : > { %v3082_v47 = vsel %vm1105_vm6, %v3050_v23, %v2800_v35 }
 0x2a9   : > { %v2718_v0 = vpop.permute.xlu1 %2717 }
 0x2aa   : > { %v2835_v44 = vpop.permute.xlu0 %2834  ;;  %v3020_v14 = vsel %vm1039_vm4, %v2988_v40, %v2718_v0 }
 0x2ab   : > { %v3114_v17 = vsel %vm1138_vm7, %v3082_v47, %v2835_v44 }
 0x2ad   : > { %v2755_v18 = vpop.permute.xlu1 %2754 }
 0x2ae   : > { %v2872_v36 = vpop.permute.xlu0 %2871  ;;  %v3052_v28 = vsel %vm1072_vm5, %v3020_v14, %v2755_v18 }
 0x2af   : > { %v3146_v50 = vsel %vm1171_vm8, %v3114_v17, %v2872_v36  ;;  %v3468_v36 = vshll.u32 %v4530_v51, 16 }
 0x2b1   : > { %v2802_v58 = vpop.permute.xlu1 %2801 }
 0x2b2   : > { %v2919_v25 = vpop.permute.xlu0 %2918  ;;  %v3084_v31 = vsel %vm1105_vm6, %v3052_v28, %v2802_v58 }
 0x2b3   : > { %v3178_v30 = vsel %vm1204_vm9, %v3146_v50, %v2919_v25  ;;  %v4531_v25 = vld [vmem:[%s4649_s29 + $0xc] sm:$0xf] }
 0x2b4   : > { %v3441_v47 = vshrl.u32 %v4531_v25, 16  ;;  %v3444_v17 = vshll.u32 %v4531_v25, 16 }
 0x2b5   : > { %v2837_v10 = vpop.permute.xlu1 %2836 }
 0x2b6   : > { %v2954_v33 = vpop.permute.xlu0 %2953  ;;  %v3116_v12 = vsel %vm1138_vm7, %v3084_v31, %v2837_v10  ;;  %v4532_v10 = vld [vmem:[%s4649_s29 + $0x1c] sm:$0xf]  ;;  %v3446_v28 = vrot.slane %v3444_v17, 5  ;;  %v4533_v31 = vld [vmem:[%s4649_s29 + $0x10] sm:$0xf] }
 0x2b7   : > { %v3210_v11 = vsel %vm1237_vm10, %v3178_v30, %v2954_v33  ;;  %v3474_v50 = vshll.u32 %v4532_v10, 16  ;;  %v3478_v30 = vshrl.u32 %v4532_v10, 16 }
 0x2b8   : > { %4408 = vmatprep.mubr.msk.bf16.mxu1 %vm6418_vm1, %v3210_v11  ;;  %v3467_v11 = vrot.slane %v3465_v34, 4 }
 0x2b9   : > { %v2874_v9 = vpop.permute.xlu1 %2873 }
 0x2ba   : > { %v2956_v42 = vpop.permute.xlu0 %2955  ;;  %v3148_v27 = vsel %vm1171_vm8, %v3116_v12, %v2874_v9  ;;  %v3470_v9 = vrot.slane %v3468_v36, 5  ;;  %v3454_v12 = vshrl.u32 %v4533_v31, 16 }
 0x2be   : > { %v2720_v62 = vpop.permute.xlu0 %2719 }
 0x2bf   : > { %v2921_v54 = vpop.permute.xlu1 %2920 }
 0x2c0   : > { %v3180_v53 = vsel %vm1204_vm9, %v3148_v27, %v2921_v54  ;;  %v3476_v54 = vrot.slane %v3474_v50, 5 }
 0x2c1   : > { %v3212_v41 = vsel %vm1237_vm10, %v3180_v53, %v2956_v42  ;;  %v3443_v42 = vrot.slane %v3441_v47, 4  ;;  %v3471_v53 = vor.u32 %v3470_v9, %v3467_v11 }
 0x2c2   : > { %4409 = vmatmul.mubr.msk.bf16.gmra.mxu1 %vm6426_vm0, %v3212_v41  ;;  %v2757_v5 = vpop.permute.xlu0 %2756 }
 0x2c3   : > { %v2640_v3 = vpop.permute.xlu1 %2639 }
 0x2c4   : > { %v2990_v6 = vsel %vm1006_vm3, %v5744_v24, %v2640_v3 }
 0x2c5   : > { %v3022_v57 = vsel %vm1039_vm4, %v2990_v6, %v2720_v62  ;;  %v3480_v62 = vrot.slane %v3478_v30, 4 }
 0x2c6   : > { %v2804_v48 = vpop.permute.xlu0 %2803  ;;  %v3054_v2 = vsel %vm1072_vm5, %v3022_v57, %v2757_v5  ;;  %v3447_v5 = vor.u32 %v3446_v28, %v3443_v42 }
 0x2c7   : > { %v2642_v22 = vpop.permute.xlu1 %2641  ;;  %v3086_v21 = vsel %vm1105_vm6, %v3054_v2, %v2804_v48  ;;  %v3456_v48 = vrot.slane %v3454_v12, 4  ;;  %v3472_v2 = vrot.slane %v3471_v53, 4 }
 0x2c8   : > { %v2992_v15 = vsel %vm1006_vm3, %v5827_v1, %v2642_v22 }
 0x2ca   : > { %v2839_v19 = vpop.permute.xlu0 %2838 }
 0x2cb   : > { %v2722_v29 = vpop.permute.xlu1 %2721  ;;  %v3118_v46 = vsel %vm1138_vm7, %v3086_v21, %v2839_v19 }
 0x2cc   : > { %v3024_v60 = vsel %vm1039_vm4, %v2992_v15, %v2722_v29  ;;  %v4534_v29 = vld [vmem:[%s4649_s29 + $0x20] sm:$0x1] }
 0x2cd   : > { %v3484_v19 = vshll.u32 %v4534_v29, 16 }
 0x2ce   : > { %v2876_v32 = vpop.permute.xlu0 %2875 }
 0x2cf   : > { %v2759_v26 = vpop.permute.xlu1 %2758  ;;  %v3150_v8 = vsel %vm1171_vm8, %v3118_v46, %v2876_v32  ;;  %v3486_v15 = vrot.slane %v3484_v19, 5 }
 0x2d0   : > { %v3056_v45 = vsel %vm1072_vm5, %v3024_v60, %v2759_v26  ;;  %v3481_v26 = vor.u32 %v3480_v62, %v3476_v54 }
 0x2d2   : > { %v2923_v49 = vpop.permute.xlu0 %2922  ;;  %v3482_v60 = vrot.slane %v3481_v26, 4 }
 0x2d3   : > { %v2806_v16 = vpop.permute.xlu1 %2805  ;;  %v3182_v37 = vsel %vm1204_vm9, %v3150_v8, %v2923_v49 }
 0x2d4   : > { %v3088_v13 = vsel %vm1105_vm6, %v3056_v45, %v2806_v16  ;;  %v4535_v16 = vld [vmem:[%s4649_s29 + $0x14] sm:$0x1] }
 0x2d5   : > { %v3460_v49 = vshll.u32 %v4535_v16, 16 }
 0x2d6   : > { %v2958_v24 = vpop.permute.xlu0 %2957 }
 0x2d7   : > { %v2841_v55 = vpop.permute.xlu1 %2840  ;;  %v3214_v4 = vsel %vm1237_vm10, %v3182_v37, %v2958_v24  ;;  %v3462_v45 = vrot.slane %v3460_v49, 5  ;;  %v4539_v49 = vld [vmem:[%s4649_s29 + $0x28] sm:$0xf] }
 0x2d8   : > { %4412 = vmatprep.mubr.msk.bf16.mxu1 %vm6427_vm12, %v3214_v4  ;;  %v3120_v59 = vsel %vm1138_vm7, %v3088_v13, %v2841_v55  ;;  %v3448_v55 = vrot.slane %v3447_v5, 4  ;;  %v4536_v5 = vld [vmem:[%s4649_s29 + $0x30] sm:$0xf] }
 0x2da   : > { %v2960_v61 = vpop.permute.xlu0 %2959 }
 0x2db   : > { %v2878_v52 = vpop.permute.xlu1 %2877 }
 0x2dc   : > { %v3152_v43 = vsel %vm1171_vm8, %v3120_v59, %v2878_v52  ;;  %v3477_v52 = vsel %vm6097_vm2, %v3472_v2, %v3476_v54 }
 0x2de   : > { %v2724_v56 = vpop.permute.xlu0 %2723 }
 0x2df   : > { %v2925_v20 = vpop.permute.xlu1 %2924 }
 0x2e0   : > { %v3184_v39 = vsel %vm1204_vm9, %v3152_v43, %v2925_v20 }
 0x2e1   : > { %v3216_v1 = vsel %vm1237_vm10, %v3184_v39, %v2960_v61  ;;  %v6108_v61 = vld [vmem:[%s6371_s5] ss:$0 sm:$0xff] }
 0x2e2   : > { %4413 = vmatmul.mubr.msk.bf16.gmra.mxu1 %vm6428_vm15, %v3216_v1  ;;  %v2761_v0 = vpop.permute.xlu0 %2760  ;;  %v6117_v39 = vld [vmem:[%s6372_s6] ss:$0 sm:$0xff] }
 0x2e3   : > { %v2644_v35 = vpop.permute.xlu1 %2643 }
 0x2e4   : > { %v2994_v58 = vsel %vm1006_vm3, %v5865_v7, %v2644_v35  ;;  %v3450_v7 = vshll.u32 %v4533_v31, 16  ;;  %v3858_v35 = vunpack.c.l.bf16 %v3477_v52 }
 0x2e5   : > { %v3026_v33 = vsel %vm1039_vm4, %v2994_v58, %v2724_v56 }
 0x2e6   : > { %v2808_v18 = vpop.permute.xlu0 %2807  ;;  %v3058_v27 = vsel %vm1072_vm5, %v3026_v33, %v2761_v0  ;;  %v3452_v22 = vrot.slane %v3450_v7, 5 }
 0x2e7   : > { %v2646_v44 = vpop.permute.xlu1 %2645  ;;  %v3090_v6 = vsel %vm1105_vm6, %v3058_v27, %v2808_v18  ;;  %v3487_v18 = vsel %vm6097_vm2, %v3482_v60, %v3486_v15 }
 0x2e8   : > { %v3457_v24 = vor.u32 %v3456_v48, %v3452_v22  ;;  %v3453_v59 = vsel %vm6097_vm2, %v3448_v55, %v3452_v22  ;;  %v2996_v20 = vsel %vm1006_vm3, %v5931_v63, %v2646_v44  ;;  %v3859_v17 = vunpack.c.l.bf16 %v3487_v18 }
 0x2e9   : > { %v3856_v36 = vunpack.c.l.bf16 %v3453_v59  ;;  %v3513_v22 = vshrl.u32 %v4536_v5, 16  ;;  %v3516_v48 = vshll.u32 %v4536_v5, 16 }
 0x2ea   : > { %v2843_v23 = vpop.permute.xlu0 %2842  ;;  %v3458_v43 = vrot.slane %v3457_v24, 4 }
 0x2eb   : > { %v2726_v38 = vpop.permute.xlu1 %2725  ;;  %v3122_v57 = vsel %vm1138_vm7, %v3090_v6, %v2843_v23  ;;  %v4537_v6 = vld [vmem:[%s4649_s29 + $0x24] sm:$0xf]  ;;  %v3518_v26 = vrot.slane %v3516_v48, 5 }
 0x2ec   : > { %v3028_v1 = vsel %vm1039_vm4, %v2996_v20, %v2726_v38  ;;  %v3463_v38 = vsel %vm6097_vm2, %v3458_v43, %v3462_v45  ;;  %vm6432_vm4 = vmmov %vm6426_vm0  ;;  %v3489_v29 = vshrl.u32 %v4537_v6, 16  ;;  %v3492_v19 = vshll.u32 %v4537_v6, 16 }
 0x2ee   : > { %v2880_v14 = vpop.permute.xlu0 %2879  ;;  %v3494_v55 = vrot.slane %v3492_v19, 5 }
 0x2ef   : > { %v2763_v40 = vpop.permute.xlu1 %2762  ;;  %v3154_v32 = vsel %vm1171_vm8, %v3122_v57, %v2880_v14  ;;  %v3515_v57 = vrot.slane %v3513_v22, 4  ;;  %v4542_v22 = vld [vmem:[%s4649_s29 + $0x48] sm:$0xf] }
 0x2f0   : > { %v3060_v51 = vsel %vm1072_vm5, %v3028_v1, %v2763_v40  ;;  %v3857_v40 = vunpack.c.l.bf16 %v3463_v38  ;;  %v3561_v48 = vshrl.u32 %v4542_v22, 16  ;;  %v3564_v6 = vshll.u32 %v4542_v22, 16 }
 0x2f1   : > { %v3519_v24 = vor.u32 %v3518_v26, %v3515_v57 }
 0x2f2   : > { %v2927_v3 = vpop.permute.xlu0 %2926  ;;  %v3563_v26 = vrot.slane %v3561_v48, 4 }
 0x2f3   : > { %v2810_v41 = vpop.permute.xlu1 %2809  ;;  %v3186_v21 = vsel %vm1204_vm9, %v3154_v32, %v2927_v3  ;;  %v4538_v32 = vld [vmem:[%s4649_s29 + $0x34] sm:$0xf]  ;;  %v3520_v43 = vrot.slane %v3519_v24, 4 }
 0x2f4   : > { %v3092_v63 = vsel %vm1105_vm6, %v3060_v51, %v2810_v41  ;;  %v3522_v2 = vshll.u32 %v4538_v32, 16  ;;  %v3526_v16 = vshrl.u32 %v4538_v32, 16  ;;  %v3566_v32 = vrot.slane %v3564_v6, 5  ;;  %v4550_v6 = vld [vmem:[%s4649_s29 + $0x64] sm:$0xf] }
 0x2f6   : > { %v2962_v8 = vpop.permute.xlu0 %2961  ;;  %v3528_v15 = vrot.slane %v3526_v16, 4 }
 0x2f7   : > { %v2845_v46 = vpop.permute.xlu1 %2844  ;;  %v3218_v4 = vsel %vm1237_vm10, %v3186_v21, %v2962_v8  ;;  %v3498_v21 = vshll.u32 %v4539_v49, 16  ;;  %v3491_v8 = vrot.slane %v3489_v29, 4  ;;  %v4543_v29 = vld [vmem:[%s4649_s29 + $0x3c] sm:$0xf] }
 0x2f8   : > { %4416 = vmatprep.mubr.msk.bf16.mxu1 %vm6431_vm11, %v3218_v4  ;;  %v3124_v25 = vsel %vm1138_vm7, %v3092_v63, %v2845_v46  ;;  %v3502_v46 = vshrl.u32 %v4539_v49, 16  ;;  %v3524_v4 = vrot.slane %v3522_v2, 5  ;;  %v3537_v19 = vshrl.u32 %v4543_v29, 16  ;;  %v4544_v2 = vld [vmem:[%s4649_s29 + $0x4c] sm:$0xf] }
 0x2f9   : > { %v3500_v60 = vrot.slane %v3498_v21, 5  ;;  %v3495_v45 = vor.u32 %v3494_v55, %v3491_v8  ;;  %v3540_v57 = vshll.u32 %v4543_v29, 16  ;;  %v3570_v16 = vshll.u32 %v4544_v2, 16  ;;  %v4545_v21 = vld [vmem:[%s4649_s29 + $0x40] sm:$0xf] }
 0x2fa   : > { %v3504_v52 = vrot.slane %v3502_v46, 4  ;;  %v3529_v20 = vor.u32 %v3528_v15, %v3524_v4  ;;  %v3525_v18 = vsel %vm6097_vm2, %v3520_v43, %v3524_v4  ;;  %v3574_v49 = vshrl.u32 %v4544_v2, 16 }
 0x2fb   : > { %v2882_v13 = vpop.permute.xlu1 %2881  ;;  %v3546_v46 = vshll.u32 %v4545_v21, 16  ;;  %v3550_v8 = vshrl.u32 %v4545_v21, 16  ;;  %v3539_v55 = vrot.slane %v3537_v19, 4  ;;  %v3542_v24 = vrot.slane %v3540_v57, 5  ;;  %v4551_v57 = vld [vmem:[%s4649_s29 + $0x58] sm:$0xf] }
 0x2fc   : > { %v3156_v10 = vsel %vm1171_vm8, %v3124_v25, %v2882_v13  ;;  %v4540_v13 = vld [vmem:[%s4649_s29 + $0x38] sm:$0x1]  ;;  %v3530_v51 = vrot.slane %v3529_v20, 4  ;;  %v3567_v4 = vor.u32 %v3566_v32, %v3563_v26  ;;  %v3572_v15 = vrot.slane %v3570_v16, 5 }
 0x2fd   : > { %v4390_v56 = vpop.f32.mrf.mxu1  ;;  %v3532_v59 = vshll.u32 %v4540_v13, 16  ;;  %v3543_v13 = vor.u32 %v3542_v24, %v3539_v55  ;;  %v3618_v29 = vshll.u32 %v4550_v6, 16  ;;  %v3594_v26 = vshll.u32 %v4551_v57, 16 }
 0x2fe   : > { %v3897_v0 = vmul.f32 %v4390_v56, %v6108_v61  ;;  %v4541_v56 = vld [vmem:[%s4649_s29 + $0x2c] sm:$0x1]  ;;  %v3568_v20 = vrot.slane %v3567_v4, 4  ;;  %v3622_v32 = vshrl.u32 %v4550_v6, 16  ;;  %v3598_v21 = vshrl.u32 %v4551_v57, 16 }
 0x2ff   : > { %v3310_v34 = vpop.f32.mrf.mxu1  ;;  %v2929_v58 = vpop.permute.xlu1 %2928  ;;  %v3508_v1 = vshll.u32 %v4541_v56, 16  ;;  %v3620_v24 = vrot.slane %v3618_v29, 5 }
 0x300   : > { %v3936_v44 = vadd.f32 %v6117_v39, %v3897_v0  ;;  %v3895_v23 = vmul.f32 %v6108_v61, %v3310_v34  ;;  %v3188_v11 = vsel %vm1204_vm9, %v3156_v10, %v2929_v58  ;;  %v3496_v0 = vrot.slane %v3495_v45, 4 }
 0x301   : > { %v4391_v47 = vpop.f32.mrf.mxu1  ;;  %v3534_v34 = vrot.slane %v3532_v59, 5  ;;  %v3510_v63 = vrot.slane %v3508_v1, 5  ;;  %v3552_v45 = vrot.slane %v3550_v8, 4  ;;  %v4546_v59 = vld [vmem:[%s4649_s29 + $0x50] sm:$0x1] }
 0x302   : > { %v3968_v50 = vadd.f32 %v3936_v44, %v3858_v35  ;;  %v3934_v30 = vadd.f32 %v6117_v39, %v3895_v23  ;;  %v3898_v33 = vmul.f32 %v4391_v47, %v6108_v61  ;;  %v3505_v35 = vor.u32 %v3504_v52, %v3500_v60  ;;  %v4547_v1 = vld [vmem:[%s4649_s29 + $0x44] sm:$0x1] }
 0x303   : > { %v3313_v9 = vpop.f32.mrf.mxu1  ;;  %v2964_v31 = vpop.permute.xlu1 %2963  ;;  %v3501_v58 = vsel %vm6097_vm2, %v3496_v0, %v3500_v60  ;;  %v3862_v23 = vunpack.c.l.bf16 %v3525_v18  ;;  %v3535_v47 = vsel %vm6097_vm2, %v3530_v51, %v3534_v34  ;;  %v3576_v60 = vrot.slane %v3574_v49, 4 }
 0x304   : > { %v4000_v14 = vmax.f32 %v3968_v50, 0.0  ;;  %v3966_v42 = vadd.f32 %v3934_v30, %v3856_v36  ;;  %v3937_v28 = vadd.f32 %v6117_v39, %v3898_v33  ;;  %v3896_v7 = vmul.f32 %v6108_v61, %v3313_v9 }
 0x305   : > { %v3220_v12 = vsel %vm1237_vm10, %v3188_v11, %v2964_v31  ;;  %v3506_v36 = vrot.slane %v3505_v35, 4  ;;  %v3860_v10 = vunpack.c.l.bf16 %v3501_v58  ;;  %v3548_v52 = vrot.slane %v3546_v46, 5 }
 0x306   : > { %4032 = vst.msk [vmem:[%s6137_s13 + $0x10] sm:$0xff] %vm1006_vm3, %v4000_v14  ;;  %v3998_v27 = vmax.f32 %v3966_v42, 0.0  ;;  %v3969_v54 = vadd.f32 %v3937_v28, %v3859_v17  ;;  %v3935_v62 = vadd.f32 %v6117_v39, %v3896_v7  ;;  %4417 = vmatmul.mubr.msk.bf16.gmra.mxu1 %vm6432_vm4, %v3220_v12  ;;  %v3580_v43 = vshll.u32 %v4546_v59, 16  ;;  %v4552_v59 = vld [vmem:[%s4649_s29 + $0x68] sm:$0x1] }
 0x307   : > { %v3511_v30 = vsel %vm6097_vm2, %v3506_v36, %v3510_v63  ;;  %v3577_v56 = vor.u32 %v3576_v60, %v3572_v15  ;;  %v3556_v35 = vshll.u32 %v4547_v1, 16  ;;  %v3553_v0 = vor.u32 %v3552_v45, %v3548_v52 }
 0x308   : > { %4030 = vst.msk [vmem:[%s6137_s13] sm:$0xff] %vm1006_vm3, %v3998_v27  ;;  %v4001_v53 = vmax.f32 %v3969_v54, 0.0  ;;  %v3967_v41 = vadd.f32 %v3935_v62, %v3857_v40  ;;  %v3863_v40 = vunpack.c.l.bf16 %v3535_v47  ;;  %v3861_v28 = vunpack.c.l.bf16 %v3511_v30 }
 0x309   : > { %v3544_v18 = vrot.slane %v3543_v13, 4  ;;  %v3573_v51 = vsel %vm6097_vm2, %v3568_v20, %v3572_v15  ;;  %v3578_v34 = vrot.slane %v3577_v56, 4  ;;  %v3582_v36 = vrot.slane %v3580_v43, 5 }
 0x30a   : > { %4033 = vst.msk [vmem:[%s6137_s13 + $0x18] sm:$0xff] %vm1006_vm3, %v4001_v53  ;;  %v3999_v3 = vmax.f32 %v3967_v41, 0.0  ;;  %v3554_v63 = vrot.slane %v3553_v0, 4  ;;  %v3624_v60 = vrot.slane %v3622_v32, 4  ;;  %v3596_v45 = vrot.slane %v3594_v26, 5 }
 0x30b   : > { %v3600_v13 = vrot.slane %v3598_v21, 4  ;;  %v3628_v43 = vshll.u32 %v4552_v59, 16 }
 0x30c   : > { %4031 = vst.msk [vmem:[%s6137_s13 + $0x8] sm:$0xff] %vm1006_vm3, %v3999_v3  ;;  %v3625_v1 = vor.u32 %v3624_v60, %v3620_v24 }
 0x31c   : > { %v4394_v44 = vpop.f32.mrf.mxu1 }
 0x31d   : > { %v3901_v38 = vmul.f32 %v4394_v44, %v6108_v61  ;;  %v3558_v44 = vrot.slane %v3556_v35, 5  ;;  %v4553_v35 = vld [vmem:[%s4649_s29 + $0x5c] sm:$0x1] }
 0x31e   : > { %v3326_v25 = vpop.f32.mrf.mxu1  ;;  %v3604_v0 = vshll.u32 %v4553_v35, 16 }
 0x31f   : > { %v3940_v17 = vadd.f32 %v6117_v39, %v3901_v38  ;;  %v3899_v50 = vmul.f32 %v6108_v61, %v3326_v25  ;;  %v3866_v38 = vunpack.c.l.bf16 %v3573_v51 }
 0x320   : > { %v4395_v33 = vpop.f32.mrf.mxu1 }
 0x321   : > { %v3972_v11 = vadd.f32 %v3940_v17, %v3862_v23  ;;  %v3938_v9 = vadd.f32 %v6117_v39, %v3899_v50  ;;  %v3902_v14 = vmul.f32 %v4395_v33, %v6108_v61  ;;  %v3549_v23 = vsel %vm6097_vm2, %v3544_v18, %v3548_v52 }
 0x322   : > { %v3329_v42 = vpop.f32.mrf.mxu1  ;;  %v3583_v17 = vsel %vm6097_vm2, %v3578_v34, %v3582_v36  ;;  %v3601_v18 = vor.u32 %v3600_v13, %v3596_v45  ;;  %v3626_v36 = vrot.slane %v3625_v1, 4  ;;  %v4558_v13 = vld [vmem:[%s4649_s29 + $0x80] sm:$0x1] }
 0x323   : > { %v4004_v31 = vmax.f32 %v3972_v11, 0.0  ;;  %v3970_v7 = vadd.f32 %v3938_v9, %v3860_v10  ;;  %v3941_v12 = vadd.f32 %v6117_v39, %v3902_v14  ;;  %v3900_v27 = vmul.f32 %v6108_v61, %v3329_v42  ;;  %v4548_v10 = vld [vmem:[%s4649_s29 + $0x60] sm:$0xf] }
 0x324   : > { %v3609_v50 = vshrl.u32 %v4548_v10, 16  ;;  %v3612_v30 = vshll.u32 %v4548_v10, 16  ;;  %v3864_v11 = vunpack.c.l.bf16 %v3549_v23  ;;  %v4554_v23 = vld [vmem:[%s4649_s29 + $0x78] sm:$0xf]  ;;  %v3676_v59 = vshll.u32 %v4558_v13, 16 }
 0x325   : > { %4036 = vst.msk [vmem:[%s6137_s13 + $0x30] sm:$0xff] %vm1006_vm3, %v4004_v31  ;;  %v4002_v54 = vmax.f32 %v3970_v7, 0.0  ;;  %v3973_v62 = vadd.f32 %v3941_v12, %v3863_v40  ;;  %v3939_v53 = vadd.f32 %v6117_v39, %v3900_v27  ;;  %v3559_v40 = vsel %vm6097_vm2, %v3554_v63, %v3558_v44 }
 0x326   : > { %v3867_v31 = vunpack.c.l.bf16 %v3583_v17  ;;  %v3865_v27 = vunpack.c.l.bf16 %v3559_v40  ;;  %v3630_v63 = vrot.slane %v3628_v43, 5  ;;  %v3602_v44 = vrot.slane %v3601_v18, 4 }
 0x327   : > { %4034 = vst.msk [vmem:[%s6137_s13 + $0x20] sm:$0xff] %vm1006_vm3, %v4002_v54  ;;  %v4005_v41 = vmax.f32 %v3973_v62, 0.0  ;;  %v3971_v3 = vadd.f32 %v3939_v53, %v3861_v28  ;;  %v3611_v54 = vrot.slane %v3609_v50, 4  ;;  %v3614_v62 = vrot.slane %v3612_v30, 5  ;;  %v4549_v53 = vld [vmem:[%s4649_s29 + $0x54] sm:$0xf] }
 0x328   : > { %v3588_v19 = vshll.u32 %v4549_v53, 16  ;;  %v3631_v50 = vsel %vm6097_vm2, %v3626_v36, %v3630_v63  ;;  %v4555_v30 = vld [vmem:[%s4649_s29 + $0x6c] sm:$0xf] }
 0x329   : > { %4037 = vst.msk [vmem:[%s6137_s13 + $0x38] sm:$0xff] %vm1006_vm3, %v4005_v41  ;;  %v4003_v5 = vmax.f32 %v3971_v3, 0.0  ;;  %v3585_v41 = vshrl.u32 %v4549_v53, 16  ;;  %v3615_v55 = vor.u32 %v3614_v62, %v3611_v54 }
 0x32a   : > { %v3590_v15 = vrot.slane %v3588_v19, 5 }
 0x32b   : > { %4035 = vst.msk [vmem:[%s6137_s13 + $0x28] sm:$0xff] %vm1006_vm3, %v4003_v5  ;;  %v3587_v4 = vrot.slane %v3585_v41, 4  ;;  %v3616_v20 = vrot.slane %v3615_v55, 4 }
 0x32d   : > { %v3591_v56 = vor.u32 %v3590_v15, %v3587_v4  ;;  %v3621_v51 = vsel %vm6097_vm2, %v3616_v20, %v3620_v24 }
 0x32f   : > { %v3592_v34 = vrot.slane %v3591_v56, 4  ;;  %v4559_v56 = vld [vmem:[%s4649_s29 + $0x74] sm:$0x1] }
 0x330   : > { %v3652_v1 = vshll.u32 %v4559_v56, 16  ;;  %v4564_v56 = vld [vmem:[%s4649_s29 + $0x98] sm:$0x1] }
 0x331   : > { %v3597_v10 = vsel %vm6097_vm2, %v3592_v34, %v3596_v45 }
 0x332   : > { %v3868_v41 = vunpack.c.l.bf16 %v3597_v10 }
 0x33c   : > { %v4398_v58 = vpop.f32.mrf.mxu1 }
 0x33d   : > { %v3905_v25 = vmul.f32 %v4398_v58, %v6108_v61  ;;  %v3606_v58 = vrot.slane %v3604_v0, 5 }
 0x33e   : > { %v3342_v47 = vpop.f32.mrf.mxu1 }
 0x33f   : > { %v3944_v33 = vadd.f32 %v6117_v39, %v3905_v25  ;;  %v3903_v9 = vmul.f32 %v6108_v61, %v3342_v47  ;;  %v3660_v25 = vshll.u32 %v4554_v23, 16  ;;  %v3870_v47 = vunpack.c.l.bf16 %v3621_v51 }
 0x340   : > { %v4399_v14 = vpop.f32.mrf.mxu1  ;;  %v3607_v40 = vsel %vm6097_vm2, %v3602_v44, %v3606_v58  ;;  %v3678_v44 = vrot.slane %v3676_v59, 5 }
 0x341   : > { %v3976_v42 = vadd.f32 %v3944_v33, %v3866_v38  ;;  %v3942_v28 = vadd.f32 %v6117_v39, %v3903_v9  ;;  %v3906_v7 = vmul.f32 %v4399_v14, %v6108_v61  ;;  %v3657_v38 = vshrl.u32 %v4554_v23, 16 }
 0x342   : > { %v3345_v12 = vpop.f32.mrf.mxu1  ;;  %v3633_v33 = vshrl.u32 %v4555_v30, 16  ;;  %v3654_v23 = vrot.slane %v3652_v1, 5  ;;  %v3724_v1 = vshll.u32 %v4564_v56, 16 }
 0x343   : > { %v4008_v3 = vmax.f32 %v3976_v42, 0.0  ;;  %v3974_v5 = vadd.f32 %v3942_v28, %v3864_v11  ;;  %v3945_v22 = vadd.f32 %v6117_v39, %v3906_v7  ;;  %v3904_v48 = vmul.f32 %v6108_v61, %v3345_v12  ;;  %v4557_v12 = vld [vmem:[%s4649_s29 + $0x70] sm:$0xf] }
 0x344   : > { %v3636_v11 = vshll.u32 %v4555_v30, 16  ;;  %v3659_v14 = vrot.slane %v3657_v38, 4  ;;  %v3662_v42 = vrot.slane %v3660_v25, 5  ;;  %v3646_v62 = vshrl.u32 %v4557_v12, 16 }
 0x345   : > { %4040 = vst.msk [vmem:[%s6137_s13 + $0x50] sm:$0xff] %vm1006_vm3, %v4008_v3  ;;  %v4006_v2 = vmax.f32 %v3974_v5, 0.0  ;;  %v3977_v16 = vadd.f32 %v3945_v22, %v3867_v31  ;;  %v3943_v49 = vadd.f32 %v6117_v39, %v3904_v48  ;;  %v4556_v31 = vld [vmem:[%s4649_s29 + $0x7c] sm:$0xf]  ;;  %v3871_v22 = vunpack.c.l.bf16 %v3631_v50 }
 0x346   : > { %v3666_v7 = vshll.u32 %v4556_v31, 16  ;;  %v3670_v54 = vshrl.u32 %v4556_v31, 16  ;;  %v3869_v48 = vunpack.c.l.bf16 %v3607_v40  ;;  %v3635_v6 = vrot.slane %v3633_v33, 4 }
 0x347   : > { %4038 = vst.msk [vmem:[%s6137_s13 + $0x40] sm:$0xff] %vm1006_vm3, %v4006_v2  ;;  %v4009_v46 = vmax.f32 %v3977_v16, 0.0  ;;  %v3975_v8 = vadd.f32 %v3943_v49, %v3865_v27  ;;  %v3642_v27 = vshll.u32 %v4557_v12, 16  ;;  %v3638_v29 = vrot.slane %v3636_v11, 5 }
 0x348   : > { %v3663_v32 = vor.u32 %v3662_v42, %v3659_v14  ;;  %v3668_v16 = vrot.slane %v3666_v7, 5  ;;  %v3672_v21 = vrot.slane %v3670_v54, 4 }
 0x349   : > { %4041 = vst.msk [vmem:[%s6137_s13 + $0x58] sm:$0xff] %vm1006_vm3, %v4009_v46  ;;  %v4007_v52 = vmax.f32 %v3975_v8, 0.0  ;;  %v3644_v49 = vrot.slane %v3642_v27, 5  ;;  %v3648_v46 = vrot.slane %v3646_v62, 4  ;;  %v3639_v15 = vor.u32 %v3638_v29, %v3635_v6  ;;  %v4560_v6 = vld [vmem:[%s4649_s29 + $0x90] sm:$0xf] }
 0x34a   : > { %v3664_v43 = vrot.slane %v3663_v32, 4  ;;  %v3673_v20 = vor.u32 %v3672_v21, %v3668_v16  ;;  %v3705_v29 = vshrl.u32 %v4560_v6, 16  ;;  %v4562_v21 = vld [vmem:[%s4649_s29 + $0x94] sm:$0xf] }
 0x34b   : > { %4039 = vst.msk [vmem:[%s6137_s13 + $0x48] sm:$0xff] %vm1006_vm3, %v4007_v52  ;;  %v3649_v18 = vor.u32 %v3648_v46, %v3644_v49  ;;  %v3640_v51 = vrot.slane %v3639_v15, 4  ;;  %v3714_v46 = vshll.u32 %v4562_v21, 16 }
 0x34c   : > { %v3669_v36 = vsel %vm6097_vm2, %v3664_v43, %v3668_v16  ;;  %v3674_v63 = vrot.slane %v3673_v20, 4  ;;  %v3707_v16 = vrot.slane %v3705_v29, 4 }
 0x34d   : > { %v3650_v58 = vrot.slane %v3649_v18, 4  ;;  %v3645_v25 = vsel %vm6097_vm2, %v3640_v51, %v3644_v49  ;;  %v4565_v18 = vld [vmem:[%s4649_s29 + $0x8c] sm:$0x1] }
 0x34e   : > { %v3679_v50 = vsel %vm6097_vm2, %v3674_v63, %v3678_v44  ;;  %v3872_v33 = vunpack.c.l.bf16 %v3645_v25  ;;  %v3700_v51 = vshll.u32 %v4565_v18, 16 }
 0x354   : > { %v4402_v17 = vpop.f32.mrf.mxu1 }
 0x355   : > { %v3909_v9 = vmul.f32 %v4402_v17, %v6108_v61 }
 0x356   : > { %v3358_v28 = vpop.f32.mrf.mxu1 }
 0x357   : > { %v3948_v53 = vadd.f32 %v6117_v39, %v3909_v9  ;;  %v3907_v3 = vmul.f32 %v6108_v61, %v3358_v28  ;;  %v3655_v9 = vsel %vm6097_vm2, %v3650_v58, %v3654_v23  ;;  %v3875_v28 = vunpack.c.l.bf16 %v3679_v50 }
 0x358   : > { %v4403_v5 = vpop.f32.mrf.mxu1  ;;  %v3873_v12 = vunpack.c.l.bf16 %v3655_v9  ;;  %v3726_v58 = vrot.slane %v3724_v1, 5 }
 0x359   : > { %v3980_v19 = vadd.f32 %v3948_v53, %v3870_v47  ;;  %v3946_v57 = vadd.f32 %v6117_v39, %v3907_v3  ;;  %v3910_v26 = vmul.f32 %v4403_v5, %v6108_v61  ;;  %v3874_v47 = vunpack.c.l.bf16 %v3669_v36 }
 0x35a   : > { %v3361_v2 = vpop.f32.mrf.mxu1 }
 0x35b   : > { %v4012_v8 = vmax.f32 %v3980_v19, 0.0  ;;  %v3978_v55 = vadd.f32 %v3946_v57, %v3868_v41  ;;  %v3949_v24 = vadd.f32 %v6117_v39, %v3910_v26  ;;  %v3908_v4 = vmul.f32 %v6108_v61, %v3361_v2  ;;  %v4561_v26 = vld [vmem:[%s4649_s29 + $0x84] sm:$0xf] }
 0x35c   : > { %v3708_v19 = vshll.u32 %v4560_v6, 16  ;;  %v3681_v32 = vshrl.u32 %v4561_v26, 16  ;;  %v3684_v2 = vshll.u32 %v4561_v26, 16 }
 0x35d   : > { %4044 = vst.msk [vmem:[%s6137_s13 + $0x70] sm:$0xff] %vm1006_vm3, %v4012_v8  ;;  %v4010_v60 = vmax.f32 %v3978_v55, 0.0  ;;  %v3981_v52 = vadd.f32 %v3949_v24, %v3871_v22  ;;  %v3947_v45 = vadd.f32 %v6117_v39, %v3908_v4  ;;  %v3718_v8 = vshrl.u32 %v4562_v21, 16  ;;  %v4563_v55 = vld [vmem:[%s4649_s29 + $0x88] sm:$0xf] }
 0x35e   : > { %v3710_v49 = vrot.slane %v3708_v19, 5  ;;  %v3690_v24 = vshll.u32 %v4563_v55, 16  ;;  %v3694_v4 = vshrl.u32 %v4563_v55, 16  ;;  %v3683_v15 = vrot.slane %v3681_v32, 4  ;;  %v4566_v19 = vld [vmem:[%s4649_s29 + $0xa8] sm:$0xf] }
 0x35f   : > { %4042 = vst.msk [vmem:[%s6137_s13 + $0x60] sm:$0xff] %vm1006_vm3, %v4010_v60  ;;  %v4013_v35 = vmax.f32 %v3981_v52, 0.0  ;;  %v3979_v0 = vadd.f32 %v3947_v45, %v3869_v48  ;;  %v3686_v60 = vrot.slane %v3684_v2, 5  ;;  %v3716_v45 = vrot.slane %v3714_v46, 5  ;;  %v4567_v32 = vld [vmem:[%s4649_s29 + $0x9c] sm:$0xf] }
 0x360   : > { %v3711_v52 = vor.u32 %v3710_v49, %v3707_v16  ;;  %v3720_v13 = vrot.slane %v3718_v8, 4  ;;  %v3692_v59 = vrot.slane %v3690_v24, 5  ;;  %v3696_v43 = vrot.slane %v3694_v4, 4  ;;  %v4568_v46 = vld [vmem:[%s4649_s29 + $0xac] sm:$0xf] }
 0x361   : > { %4045 = vst.msk [vmem:[%s6137_s13 + $0x78] sm:$0xff] %vm1006_vm3, %v4013_v35  ;;  %v4011_v34 = vmax.f32 %v3979_v0, 0.0  ;;  %v3687_v20 = vor.u32 %v3686_v60, %v3683_v15  ;;  %v3756_v26 = vshll.u32 %v4566_v19, 16  ;;  %v3729_v2 = vshrl.u32 %v4567_v32, 16  ;;  %v4569_v24 = vld [vmem:[%s4649_s29 + $0xa0] sm:$0xf] }
 0x362   : > { %v3712_v35 = vrot.slane %v3711_v52, 4  ;;  %v3721_v0 = vor.u32 %v3720_v13, %v3716_v45  ;;  %v3732_v16 = vshll.u32 %v4567_v32, 16  ;;  %v3762_v8 = vshll.u32 %v4568_v46, 16 }
 0x363   : > { %4043 = vst.msk [vmem:[%s6137_s13 + $0x68] sm:$0xff] %vm1006_vm3, %v4011_v34  ;;  %v3697_v34 = vor.u32 %v3696_v43, %v3692_v59  ;;  %v3688_v36 = vrot.slane %v3687_v20, 4  ;;  %v3758_v21 = vrot.slane %v3756_v26, 5  ;;  %v3766_v55 = vshrl.u32 %v4568_v46, 16 }
 0x364   : > { %v4406_v38 = vpop.f32.mrf.mxu1  ;;  %v3717_v63 = vsel %vm6097_vm2, %v3712_v35, %v3716_v45  ;;  %v3722_v44 = vrot.slane %v3721_v0, 4  ;;  %v3738_v4 = vshll.u32 %v4569_v24, 16  ;;  %v3742_v15 = vshrl.u32 %v4569_v24, 16  ;;  %v4570_v0 = vld [vmem:[%s4649_s29 + $0xb0] sm:$0x1] }
 0x365   : > { %v3913_v17 = vmul.f32 %v4406_v38, %v6108_v61  ;;  %v3698_v23 = vrot.slane %v3697_v34, 4  ;;  %v3702_v38 = vrot.slane %v3700_v51, 5  ;;  %v3731_v60 = vrot.slane %v3729_v2, 4  ;;  %v4571_v51 = vld [vmem:[%s4649_s29 + $0xa4] sm:$0x1] }
 0x366   : > { %v3374_v10 = vpop.f32.mrf.mxu1  ;;  %v3734_v52 = vrot.slane %v3732_v16, 5  ;;  %v3764_v13 = vrot.slane %v3762_v8, 5  ;;  %v3740_v43 = vrot.slane %v3738_v4, 5  ;;  %v3744_v20 = vrot.slane %v3742_v15, 4  ;;  %v4573_v2 = vld [vmem:[%s4649_s29 + $0xb4] sm:$0xf] }
 0x367   : > { %v3952_v30 = vadd.f32 %v6117_v39, %v3913_v17  ;;  %v3911_v11 = vmul.f32 %v6108_v61, %v3374_v10  ;;  %v3878_v17 = vunpack.c.l.bf16 %v3717_v63  ;;  %v3772_v18 = vshll.u32 %v4570_v0, 16  ;;  %v4574_v8 = vld [vmem:[%s4649_s29 + $0xc4] sm:$0xf]  ;;  %v4575_v4 = vld [vmem:[%s4649_s29 + $0xb8] sm:$0xf] }
 0x368   : > { %v4407_v40 = vpop.f32.mrf.mxu1  ;;  %v3735_v56 = vor.u32 %v3734_v52, %v3731_v60  ;;  %v3748_v34 = vshll.u32 %v4571_v51, 16  ;;  %v3777_v16 = vshrl.u32 %v4573_v2, 16  ;;  %v3814_v24 = vshrl.u32 %v4574_v8, 16 }
 0x369   : > { %v3984_v14 = vadd.f32 %v3952_v30, %v3874_v47  ;;  %v3950_v42 = vadd.f32 %v6117_v39, %v3911_v11  ;;  %v3914_v31 = vmul.f32 %v4407_v40, %v6108_v61  ;;  %v3693_v47 = vsel %vm6097_vm2, %v3688_v36, %v3692_v59 }
 0x36a   : > { %v3377_v7 = vpop.f32.mrf.mxu1  ;;  %v3727_v30 = vsel %vm6097_vm2, %v3722_v44, %v3726_v58  ;;  %v3876_v11 = vunpack.c.l.bf16 %v3693_v47  ;;  %v3703_v40 = vsel %vm6097_vm2, %v3698_v23, %v3702_v38  ;;  %v3768_v59 = vrot.slane %v3766_v55, 4 }
 0x36b   : > { %v4016_v27 = vmax.f32 %v3984_v14, 0.0  ;;  %v3982_v54 = vadd.f32 %v3950_v42, %v3872_v33  ;;  %v3953_v62 = vadd.f32 %v6117_v39, %v3914_v31  ;;  %v3912_v53 = vmul.f32 %v6108_v61, %v3377_v7 }
 0x36c   : > { %v3879_v31 = vunpack.c.l.bf16 %v3727_v30  ;;  %v3769_v35 = vor.u32 %v3768_v59, %v3764_v13  ;;  %v3745_v36 = vor.u32 %v3744_v20, %v3740_v43  ;;  %v3736_v63 = vrot.slane %v3735_v56, 4 }
 0x36d   : > { %4048 = vst.msk [vmem:[%s6137_s13 + $0x90] sm:$0xff] %vm1006_vm3, %v4016_v27  ;;  %v4014_v41 = vmax.f32 %v3982_v54, 0.0  ;;  %v3985_v3 = vadd.f32 %v3953_v62, %v3875_v28  ;;  %v3951_v5 = vadd.f32 %v6117_v39, %v3912_v53  ;;  %v3877_v27 = vunpack.c.l.bf16 %v3703_v40 }
 0x36e   : > { %v3770_v58 = vrot.slane %v3769_v35, 4  ;;  %v3774_v23 = vrot.slane %v3772_v18, 5  ;;  %v3746_v38 = vrot.slane %v3745_v36, 4  ;;  %v3810_v55 = vshll.u32 %v4574_v8, 16  ;;  %v4576_v18 = vld [vmem:[%s4649_s29 + $0xc8] sm:$0x1] }
 0x36f   : > { %4046 = vst.msk [vmem:[%s6137_s13 + $0x80] sm:$0xff] %vm1006_vm3, %v4014_v41  ;;  %v4017_v22 = vmax.f32 %v3985_v3, 0.0  ;;  %v3983_v48 = vadd.f32 %v3951_v5, %v3873_v12  ;;  %v3786_v15 = vshll.u32 %v4575_v4, 16  ;;  %v3790_v60 = vshrl.u32 %v4575_v4, 16  ;;  %v4577_v36 = vld [vmem:[%s4649_s29 + $0xbc] sm:$0x1] }
 0x370   : > { %v3779_v52 = vrot.slane %v3777_v16, 4  ;;  %v3812_v59 = vrot.slane %v3810_v55, 5  ;;  %v3820_v51 = vshll.u32 %v4576_v18, 16 }
 0x371   : > { %4049 = vst.msk [vmem:[%s6137_s13 + $0x98] sm:$0xff] %vm1006_vm3, %v4017_v22  ;;  %v4015_v57 = vmax.f32 %v3983_v48, 0.0  ;;  %v3788_v20 = vrot.slane %v3786_v15, 5  ;;  %v3792_v56 = vrot.slane %v3790_v60, 4 }
 0x373   : > { %4047 = vst.msk [vmem:[%s6137_s13 + $0x88] sm:$0xff] %vm1006_vm3, %v4015_v57  ;;  %v3753_v57 = vshrl.u32 %v4566_v19, 16 }
 0x375   : > { %v3755_v49 = vrot.slane %v3753_v57, 4  ;;  %v4572_v57 = vld [vmem:[%s4649_s29 + $0xc0] sm:$0xf] }
 0x376   : > { %v3801_v26 = vshrl.u32 %v4572_v57, 16  ;;  %v3804_v32 = vshll.u32 %v4572_v57, 16 }
 0x377   : > { %v3759_v45 = vor.u32 %v3758_v21, %v3755_v49  ;;  %v3780_v49 = vshll.u32 %v4573_v2, 16 }
 0x378   : > { %v3803_v21 = vrot.slane %v3801_v26, 4  ;;  %v3806_v46 = vrot.slane %v3804_v32, 5 }
 0x379   : > { %v3760_v1 = vrot.slane %v3759_v45, 4  ;;  %v3782_v45 = vrot.slane %v3780_v49, 5 }
 0x37b   : > { %v3765_v44 = vsel %vm6097_vm2, %v3760_v1, %v3764_v13  ;;  %v3807_v13 = vor.u32 %v3806_v46, %v3803_v21  ;;  %v3783_v1 = vor.u32 %v3782_v45, %v3779_v52 }
 0x37d   : > { %v3808_v35 = vrot.slane %v3807_v13, 4 }
 0x382   : > { %v4410_v25 = vpop.f32.mrf.mxu1 }
 0x383   : > { %v3917_v10 = vmul.f32 %v4410_v25, %v6108_v61  ;;  %v3750_v25 = vrot.slane %v3748_v34, 5  ;;  %v3793_v34 = vor.u32 %v3792_v56, %v3788_v20 }
 0x384   : > { %v3390_v50 = vpop.f32.mrf.mxu1 }
 0x385   : > { %v3956_v33 = vadd.f32 %v6117_v39, %v3917_v10  ;;  %v3915_v9 = vmul.f32 %v6108_v61, %v3390_v50  ;;  %v3882_v10 = vunpack.c.l.bf16 %v3765_v44  ;;  %v3784_v44 = vrot.slane %v3783_v1, 4 }
 0x386   : > { %v4411_v14 = vpop.f32.mrf.mxu1 }
 0x387   : > { %v3988_v42 = vadd.f32 %v3956_v33, %v3878_v17  ;;  %v3954_v28 = vadd.f32 %v6117_v39, %v3915_v9  ;;  %v3918_v7 = vmul.f32 %v4411_v14, %v6108_v61  ;;  %v3741_v17 = vsel %vm6097_vm2, %v3736_v63, %v3740_v43 }
 0x388   : > { %v3393_v12 = vpop.f32.mrf.mxu1  ;;  %v3775_v33 = vsel %vm6097_vm2, %v3770_v58, %v3774_v23  ;;  %v3880_v9 = vunpack.c.l.bf16 %v3741_v17  ;;  %v3751_v14 = vsel %vm6097_vm2, %v3746_v38, %v3750_v25  ;;  %v3816_v43 = vrot.slane %v3814_v24, 4 }
 0x389   : > { %v4020_v54 = vmax.f32 %v3988_v42, 0.0  ;;  %v3986_v62 = vadd.f32 %v3954_v28, %v3876_v11  ;;  %v3957_v53 = vadd.f32 %v6117_v39, %v3918_v7  ;;  %v3916_v41 = vmul.f32 %v6108_v61, %v3393_v12 }
 0x38a   : > { %v3883_v7 = vunpack.c.l.bf16 %v3775_v33  ;;  %v3817_v0 = vor.u32 %v3816_v43, %v3812_v59  ;;  %v3796_v63 = vshll.u32 %v4577_v36, 16  ;;  %v3813_v58 = vsel %vm6097_vm2, %v3808_v35, %v3812_v59 }
 0x38b   : > { %4052 = vst.msk [vmem:[%s6137_s13 + $0xb0] sm:$0xff] %vm1006_vm3, %v4020_v54  ;;  %v4018_v3 = vmax.f32 %v3986_v62, 0.0  ;;  %v3989_v5 = vadd.f32 %v3957_v53, %v3879_v31  ;;  %v3955_v22 = vadd.f32 %v6117_v39, %v3916_v41  ;;  %v3881_v54 = vunpack.c.l.bf16 %v3751_v14 }
 0x38c   : > { %v3818_v23 = vrot.slane %v3817_v0, 4  ;;  %v3822_v38 = vrot.slane %v3820_v51, 5  ;;  %v3794_v25 = vrot.slane %v3793_v34, 4 }
 0x38d   : > { %4050 = vst.msk [vmem:[%s6137_s13 + $0xa0] sm:$0xff] %vm1006_vm3, %v4018_v3  ;;  %v4021_v48 = vmax.f32 %v3989_v5, 0.0  ;;  %v3987_v6 = vadd.f32 %v3955_v22, %v3877_v27 }
 0x38f   : > { %4053 = vst.msk [vmem:[%s6137_s13 + $0xb8] sm:$0xff] %vm1006_vm3, %v4021_v48  ;;  %v4019_v29 = vmax.f32 %v3987_v6, 0.0 }
 0x391   : > { %4051 = vst.msk [vmem:[%s6137_s13 + $0xa8] sm:$0xff] %vm1006_vm3, %v4019_v29 }
 0x3a2   : > { %v4414_v47 = vpop.f32.mrf.mxu1 }
 0x3a3   : > { %v3921_v50 = vmul.f32 %v4414_v47, %v6108_v61  ;;  %v3798_v47 = vrot.slane %v3796_v63, 5 }
 0x3a4   : > { %v3406_v30 = vpop.f32.mrf.mxu1 }
 0x3a5   : > { %v3960_v11 = vadd.f32 %v6117_v39, %v3921_v50  ;;  %v3919_v40 = vmul.f32 %v6108_v61, %v3406_v30  ;;  %v3886_v50 = vunpack.c.l.bf16 %v3813_v58 }
 0x3a6   : > { %v4415_v42 = vpop.f32.mrf.mxu1 }
 0x3a7   : > { %v3992_v28 = vadd.f32 %v3960_v11, %v3882_v10  ;;  %v3958_v31 = vadd.f32 %v6117_v39, %v3919_v40  ;;  %v3922_v12 = vmul.f32 %v4415_v42, %v6108_v61  ;;  %v3789_v10 = vsel %vm6097_vm2, %v3784_v44, %v3788_v20 }
 0x3a8   : > { %v3409_v27 = vpop.f32.mrf.mxu1  ;;  %v3823_v11 = vsel %vm6097_vm2, %v3818_v23, %v3822_v38  ;;  %v3884_v40 = vunpack.c.l.bf16 %v3789_v10  ;;  %v3799_v42 = vsel %vm6097_vm2, %v3794_v25, %v3798_v47 }
 0x3a9   : > { %v4024_v62 = vmax.f32 %v3992_v28, 0.0  ;;  %v3990_v53 = vadd.f32 %v3958_v31, %v3880_v9  ;;  %v3961_v41 = vadd.f32 %v6117_v39, %v3922_v12  ;;  %v3920_v3 = vmul.f32 %v6108_v61, %v3409_v27 }
 0x3aa   : > { %v3887_v12 = vunpack.c.l.bf16 %v3823_v11 }
 0x3ab   : > { %4056 = vst.msk [vmem:[%s6137_s13 + $0xd0] sm:$0xff] %vm1006_vm3, %v4024_v62  ;;  %v4022_v5 = vmax.f32 %v3990_v53, 0.0  ;;  %v3993_v22 = vadd.f32 %v3961_v41, %v3883_v7  ;;  %v3959_v48 = vadd.f32 %v6117_v39, %v3920_v3  ;;  %v3885_v62 = vunpack.c.l.bf16 %v3799_v42 }
 0x3ad   : > { %4054 = vst.msk [vmem:[%s6137_s13 + $0xc0] sm:$0xff] %vm1006_vm3, %v4022_v5  ;;  %v4025_v6 = vmax.f32 %v3993_v22, 0.0  ;;  %v3991_v29 = vadd.f32 %v3959_v48, %v3881_v54 }
 0x3af   : > { %4057 = vst.msk [vmem:[%s6137_s13 + $0xd8] sm:$0xff] %vm1006_vm3, %v4025_v6  ;;  %v4023_v19 = vmax.f32 %v3991_v29, 0.0 }
 0x3b1   : > { %4055 = vst.msk [vmem:[%s6137_s13 + $0xc8] sm:$0xff] %vm1006_vm3, %v4023_v19 }
 0x3c6   : > { %v4418_v17 = vpop.f32.mrf.mxu1 }
 0x3c7   : > { %v3925_v30 = vmul.f32 %v4418_v17, %v6108_v61 }
 0x3c8   : > { %v3422_v33 = vpop.f32.mrf.mxu1 }
 0x3c9   : > { %v3964_v9 = vadd.f32 %v6117_v39, %v3925_v30  ;;  %v3923_v14 = vmul.f32 %v6108_v61, %v3422_v33 }
 0x3ca   : > { %v4419_v28 = vpop.f32.mrf.mxu1 }
 0x3cb   : > { %v3996_v31 = vadd.f32 %v3964_v9, %v3886_v50  ;;  %v3962_v7 = vadd.f32 %v6117_v39, %v3923_v14  ;;  %v3926_v27 = vmul.f32 %v4419_v28, %v6108_v61 }
 0x3cc   : > { %v3425_v54 = vpop.f32.mrf.mxu1 }
 0x3cd   : > { %v4028_v53 = vmax.f32 %v3996_v31, 0.0  ;;  %v3994_v41 = vadd.f32 %v3962_v7, %v3884_v40  ;;  %v3965_v3 = vadd.f32 %v6117_v39, %v3926_v27  ;;  %v3924_v5 = vmul.f32 %v6108_v61, %v3425_v54 }
 0x3cf   : > { %4060 = vst.msk [vmem:[%s6137_s13 + $0xf0] sm:$0xff] %vm1006_vm3, %v4028_v53  ;;  %v4026_v37 = vmax.f32 %v3994_v41, 0.0  ;;  %v3997_v22 = vadd.f32 %v3965_v3, %v3887_v12  ;;  %v3963_v48 = vadd.f32 %v6117_v39, %v3924_v5 }
 0x3d1   : > { %4058 = vst.msk [vmem:[%s6137_s13 + $0xe0] sm:$0xff] %vm1006_vm3, %v4026_v37  ;;  %v4029_v6 = vmax.f32 %v3997_v22, 0.0  ;;  %v3995_v29 = vadd.f32 %v3963_v48, %v3885_v62 }
 0x3d3   : > { %4061 = vst.msk [vmem:[%s6137_s13 + $0xf8] sm:$0xff] %vm1006_vm3, %v4029_v6  ;;  %v4027_v19 = vmax.f32 %v3995_v29, 0.0 }
 0x3d5   : > { %4059 = vst.msk [vmem:[%s6137_s13 + $0xe8] sm:$0xff] %vm1006_vm3, %v4027_v19 }
 0x3d6 PF: > { %s17_s24 = sadd.s32 1, %s4584_s24  }
 0x3d7   : > { %p14_p4 = scmp.ge.s32.totalorder %s17_s24, 4  }
 0x3d9   :  { %16 = sbr.rel (!%p14_p4) target bundleno = 1 (0x1), region = 80 }

</bundles_post_ra>
